<compile_context>
chip_gen: v7x
topology: tpu7x:2x2x1
jax: 0.10.0
libtpu: 0.0.40
codegen_flags: <defaults>
</compile_context>

<pallas_src>
import functools

import jax
import jax.numpy as jnp
from jax import lax
from jax.experimental import pallas as pl
from jax.experimental.pallas import tpu as pltpu


_VMEM = pl.BlockSpec(memory_space=pltpu.MemorySpace.VMEM)


@functools.lru_cache(maxsize=None)
def _vmem_budget():
    """~0.75 * physical VMEM: ~96 MiB on v5e/v6e, ~48 MiB on v7x."""
    try:
        cap = int(pltpu.get_tpu_info().vmem_capacity_bytes)
    except Exception:
        cap = 64 * 1024 * 1024
    return max(int(cap * 3 // 4), 32 * 1024 * 1024)


# ----------------------------- Pallas kernels ------------------------------- #

def _build_patches(phase_refs, *, cin, wo1):
    """Rebuild the (9*Cin, TILE) im2col patch tile from 4 polyphase tiles.

    Tap (kh, kw) of a 3x3 / stride-2 / pad-1 conv equals the polyphase
    component of parity (kh%2, kw%2) shifted by (kh//2)*(Wo+1) + (kw//2) on the
    per-image (Ho+1)x(Wo+1) flat grid; the shifted-in tail only ever feeds
    "garbage" grid slots (last row / last column), which are cropped outside.
    """
    ph = [r[...] for r in phase_refs]                     # 4 x (Cin, TILE) bf16
    taps = []
    for kh in range(3):
        for kw in range(3):
            t = ph[(kh % 2) * 2 + (kw % 2)]
            s = (kh // 2) * wo1 + (kw // 2)
            if s:
                t = jnp.concatenate(
                    [t[:, s:], jnp.zeros((cin, s), t.dtype)], axis=1)
            taps.append(t)
    return jnp.concatenate(taps, axis=0)                  # (9*Cin, TILE)


def _conv_lrelu(w_ref, phase_refs, b_ref, *, cin, wo1, neg_slope):
    pat = _build_patches(phase_refs, cin=cin, wo1=wo1)
    y = jnp.dot(w_ref[...], pat, preferred_element_type=jnp.float32)
    y = y + b_ref[...]                                    # (Cout, TILE) + (Cout, 1)
    return jnp.maximum(y, neg_slope * y)                  # LeakyReLU via one vmax


def _conv_lrelu_kernel(w_ref, p00, p01, p10, p11, b_ref, y_ref, *,
                       cin, wo1, neg_slope):
    y = _conv_lrelu(w_ref, (p00, p01, p10, p11), b_ref,
                    cin=cin, wo1=wo1, neg_slope=neg_slope)
    y_ref[...] = y.astype(y_ref.dtype)                    # bf16 store


def _conv_lrelu_bn_kernel(w_ref, p00, p01, p10, p11, b_ref, g_ref, be_ref,
                          m_ref, y_ref, *, cin, wo1, neg_slope, count, eps):
    # Fully fused single pass: conv + bias + LeakyReLU + batch-stat BatchNorm.
    y = _conv_lrelu(w_ref, (p00, p01, p10, p11), b_ref,
                    cin=cin, wo1=wo1, neg_slope=neg_slope)
    m = m_ref[...]                                        # (1, TILE) validity mask
    inv = 1.0 / count
    mean = jnp.sum(y * m, axis=1, keepdims=True) * inv    # (Cout, 1)
    d = (y - mean) * m
    var = jnp.sum(d * d, axis=1, keepdims=True) * inv     # centered (stable) form
    scale = g_ref[...] * lax.rsqrt(var + eps)
    shift = be_ref[...] - mean * scale
    y_ref[...] = (y * scale + shift).astype(y_ref.dtype)


def _conv_lrelu_stats_kernel(w_ref, p00, p01, p10, p11, b_ref, m_ref,
                             y_ref, stat_ref, *, cin, wo1, neg_slope):
    # Tiled fallback pass A: conv + LeakyReLU, bf16 y_pre + packed partial stats.
    y = _conv_lrelu(w_ref, (p00, p01, p10, p11), b_ref,
                    cin=cin, wo1=wo1, neg_slope=neg_slope)
    m = m_ref[...]
    ym = y * m
    s1 = jnp.sum(ym, axis=1, keepdims=True)               # (Cout, 1)
    s2 = jnp.sum(ym * y, axis=1, keepdims=True)
    stat_ref[...] = jnp.concatenate([s1, s2], axis=1).reshape(stat_ref.shape)
    y_ref[...] = y.astype(y_ref.dtype)


def _affine_kernel(y_ref, scale_ref, shift_ref, o_ref):
    # Tiled fallback pass B: folded per-channel BatchNorm affine, bf16 in/out.
    y = y_ref[...].astype(jnp.float32)
    o_ref[...] = (y * scale_ref[...] + shift_ref[...]).astype(o_ref.dtype)


def _head_kernel(x_ref, w_ref, b_ref, o_ref):
    # Fused heads: one (TN, 512) @ (512, 128) matmul, sigmoid + exact softmax,
    # emitted as a single dense 128-lane block (col 0 = adv, cols 1..10 = aux).
    logits = jnp.dot(x_ref[...], w_ref[...],
                     preferred_element_type=jnp.float32) + b_ref[...]
    adv = 1.0 / (1.0 + jnp.exp(-logits[:, 0:1]))          # Linear(512,1)+Sigmoid
    aux = logits[:, 1:11]                                 # Linear(512,10)+Softmax
    mx = jnp.max(aux, axis=1, keepdims=True)
    e = jnp.exp(aux - mx)
    soft = e / jnp.sum(e, axis=1, keepdims=True)          # exact divide
    pad = jnp.zeros((x_ref.shape[0], o_ref.shape[1] - 11), jnp.float32)
    o_ref[...] = jnp.concatenate([adv, soft, pad], axis=1)


# ------------------------------ JAX wrappers --------------------------------- #

def _make_phases(x_cm):
    """Polyphase split of the padded activation (no size expansion).

    x_cm: (C, N, H, W) -> 4 arrays (C, N*(Ho+1)*(Wo+1)) bf16, parity order
    (row, col) = (0,0), (0,1), (1,0), (1,1).
    """
    C, N, H, W = x_cm.shape
    Ho, Wo = H // 2, W // 2
    xp = jnp.pad(x_cm.astype(jnp.bfloat16), ((0, 0), (0, 0), (1, 1), (1, 1)))
    phases = []
    for a in range(2):
        for b in range(2):
            ph = xp[:, :, a::2, b::2]                     # (C, N, Ho+1, Wo+1)
            phases.append(ph.reshape(C, N * (Ho + 1) * (Wo + 1)))
    return phases


def _valid_mask(n_real, n_total, ho, wo):
    """(1, n_total*G) mask: 1 on real output slots of real images, else 0."""
    g = (ho + 1) * (wo + 1)
    l = jnp.arange(g)
    v = ((l // (wo + 1) < ho) & (l % (wo + 1) < wo)).astype(jnp.float32)
    img = (jnp.arange(n_total) < n_real).astype(jnp.float32)
    return (img[:, None] * v[None, :]).reshape(1, n_total * g)


def _crop_from_grid(y_grid, n, ho, wo):
    """(Cout, Npad*G) grid layout -> (Cout, n, Ho, Wo)."""
    cout = y_grid.shape[0]
    y4 = y_grid.reshape(cout, -1, ho + 1, wo + 1)
    return y4[:, :n, :ho, :wo]


def _fused_bytes(cin, cout, n, g):
    # phases (4*Cin bf16) + in-kernel patches (9*Cin bf16) + f32 conv result
    # + bf16 output, all of lane width n*g, plus weights + headroom.
    per_col = (4 * cin + 9 * cin) * 2 + cout * (4 + 4 + 2)
    return per_col * n * g + cout * cin * 9 * 2 + (2 << 20)


def _tile_bytes(cin, cout, tn, g):
    # double-buffered streamed phases + in-kernel patch/accumulator temporaries.
    per_col = (4 * cin * 2) * 2 + 9 * cin * 2 + cout * (4 + 4 + 2 * 2)
    return per_col * tn * g + cout * cin * 9 * 2 + (2 << 20)


def _conv_block_fused(x_cm, w_mat, bcol, gcol, becol, apply_bn, ho, wo, budget):
    cin, n = x_cm.shape[0], x_cm.shape[1]
    cout = w_mat.shape[0]
    g = (ho + 1) * (wo + 1)
    phases = _make_phases(x_cm)
    cparams = pltpu.CompilerParams(vmem_limit_bytes=budget)
    out_shape = jax.ShapeDtypeStruct((cout, n * g), jnp.bfloat16)

    if not apply_bn:
        y = pl.pallas_call(
            functools.partial(_conv_lrelu_kernel, cin=cin, wo1=wo + 1,
                              neg_slope=0.2),
            out_shape=out_shape,
            in_specs=[_VMEM] * 6,
            out_specs=_VMEM,
            compiler_params=cparams,
        )(w_mat, *phases, bcol)
    else:
        mask = _valid_mask(n, n, ho, wo)
        y = pl.pallas_call(
            functools.partial(_conv_lrelu_bn_kernel, cin=cin, wo1=wo + 1,
                              neg_slope=0.2, count=float(n * ho * wo), eps=0.8),
            out_shape=out_shape,
            in_specs=[_VMEM] * 9,
            out_specs=_VMEM,
            compiler_params=cparams,
        )(w_mat, *phases, bcol, gcol, becol, mask)
    return _crop_from_grid(y, n, ho, wo)


def _conv_block_tiled(x_cm, w_mat, bcol, gcol, becol, apply_bn, ho, wo, budget):
    cin, n = x_cm.shape[0], x_cm.shape[1]
    cout = w_mat.shape[0]
    g = (ho + 1) * (wo + 1)

    # Batch tile that is a multiple of 128 images (G is odd, so TN % 128 == 0
    # keeps every block lane-aligned -> dense vst) and fits the VMEM budget.
    tn = 128
    for cand in (1024, 768, 512, 384, 256, 128):
        if _tile_bytes(cin, cout, cand, g) <= budget:
            tn = cand
            break
    n_pad = ((n + tn - 1) // tn) * tn
    t = n_pad // tn
    if n_pad != n:
        x_cm = jnp.pad(x_cm, ((0, 0), (0, n_pad - n), (0, 0), (0, 0)))

    phases = _make_phases(x_cm)
    mask = _valid_mask(n, n_pad, ho, wo)                  # padded images masked out
    count = float(n * ho * wo)

    w_spec = pl.BlockSpec((cout, w_mat.shape[1]), lambda i: (0, 0))
    p_spec = pl.BlockSpec((cin, tn * g), lambda i: (0, i))
    col_spec = pl.BlockSpec((cout, 1), lambda i: (0, 0))
    m_spec = pl.BlockSpec((1, tn * g), lambda i: (0, i))
    y_spec = pl.BlockSpec((cout, tn * g), lambda i: (0, i))
    cparams = pltpu.CompilerParams(dimension_semantics=("parallel",),
                                   vmem_limit_bytes=budget)

    if not apply_bn:
        y = pl.pallas_call(
            functools.partial(_conv_lrelu_kernel, cin=cin, wo1=wo + 1,
                              neg_slope=0.2),
            out_shape=jax.ShapeDtypeStruct((cout, n_pad * g), jnp.bfloat16),
            grid=(t,),
            in_specs=[w_spec] + [p_spec] * 4 + [col_spec],
            out_specs=y_spec,
            compiler_params=cparams,
        )(w_mat, *phases, bcol)
        return _crop_from_grid(y, n, ho, wo)

    # pass A: conv + LeakyReLU + masked per-tile partial stats (bf16 y_pre).
    stat_spec = pl.BlockSpec((1, cout, 2), lambda i: (i, 0, 0))
    y_pre, stats = pl.pallas_call(
        functools.partial(_conv_lrelu_stats_kernel, cin=cin, wo1=wo + 1,
                          neg_slope=0.2),
        out_shape=(jax.ShapeDtypeStruct((cout, n_pad * g), jnp.bfloat16),
                   jax.ShapeDtypeStruct((t, cout, 2), jnp.float32)),
        grid=(t,),
        in_specs=[w_spec] + [p_spec] * 4 + [col_spec, m_spec],
        out_specs=(y_spec, stat_spec),
        compiler_params=cparams,
    )(w_mat, *phases, bcol, mask)

    # Finalize batch statistics over the full (unpadded) batch; eps = 0.8
    # matches nn.BatchNorm2d(d, 0.8) (positional arg sets eps).
    # TODO(synk): E[x^2]-E[x]^2 form here; the fused path uses the centered form.
    s = jnp.sum(stats, axis=0)                            # (Cout, 2)
    mean = s[:, 0:1] / count
    var = jnp.maximum(s[:, 1:2] / count - mean * mean, 0.0)
    scale = gcol * lax.rsqrt(var + 0.8)
    shift = becol - mean * scale

    # pass B: folded per-channel affine, bf16 in / bf16 out.
    y = pl.pallas_call(
        _affine_kernel,
        out_shape=jax.ShapeDtypeStruct((cout, n_pad * g), jnp.bfloat16),
        grid=(t,),
        in_specs=[y_spec, col_spec, col_spec],
        out_specs=y_spec,
        compiler_params=cparams,
    )(y_pre, scale, shift)
    return _crop_from_grid(y, n, ho, wo)


def conv_block(x_cm, w, b, gamma, beta, apply_bn):
    """Conv2d(k=3,s=2,p=1) -> LeakyReLU(0.2) [-> BatchNorm2d(eps=0.8)].

    x_cm: (Cin, N, H, W) channel-major.  Returns (Cout, N, Ho, Wo) bf16.
    """
    cin, n, h, w_sz = x_cm.shape
    cout = w.shape[0]
    ho, wo = h // 2, w_sz // 2
    g = (ho + 1) * (wo + 1)
    budget = _vmem_budget()

    # (Cout, 9*Cin) weight, tap-major rows, matching the in-kernel patch order.
    w_mat = jnp.transpose(w, (0, 2, 3, 1)).reshape(cout, 9 * cin).astype(jnp.bfloat16)
    bcol = b.reshape(cout, 1).astype(jnp.float32)
    gcol = gamma.reshape(cout, 1).astype(jnp.float32)
    becol = beta.reshape(cout, 1).astype(jnp.float32)

    if _fused_bytes(cin, cout, n, g) <= budget:
        return _conv_block_fused(x_cm, w_mat, bcol, gcol, becol, apply_bn,
                                 ho, wo, budget)
    return _conv_block_tiled(x_cm, w_mat, bcol, gcol, becol, apply_bn,
                             ho, wo, budget)


def heads(feat, adv_w, adv_b, aux_w, aux_b):
    n, f = feat.shape
    budget = _vmem_budget()
    # Fuse both heads into one lane-dense (F, 128) matmul: col 0 = adversarial
    # logit, cols 1..10 = aux logits, cols 11..127 zero padding.
    w_cat = jnp.concatenate([adv_w, aux_w], axis=0)       # (11, F)
    w_pad = jnp.zeros((128, f), jnp.float32).at[:11].set(w_cat).T.astype(jnp.bfloat16)
    b_pad = jnp.zeros((1, 128), jnp.float32).at[0, :11].set(
        jnp.concatenate([adv_b, aux_b], axis=0))

    tn = min(n, 512)
    out = pl.pallas_call(
        _head_kernel,
        out_shape=jax.ShapeDtypeStruct((n, 128), jnp.float32),
        grid=(pl.cdiv(n, tn),),
        in_specs=[pl.BlockSpec((tn, f), lambda i: (i, 0)),
                  pl.BlockSpec((f, 128), lambda i: (0, 0)),
                  pl.BlockSpec((1, 128), lambda i: (0, 0))],
        out_specs=pl.BlockSpec((tn, 128), lambda i: (i, 0)),
        compiler_params=pltpu.CompilerParams(dimension_semantics=("parallel",),
                                             vmem_limit_bytes=budget),
    )(feat.astype(jnp.bfloat16), w_pad, b_pad)
    return out[:, 0:1], out[:, 1:11]


@jax.jit
def discriminator_forward(x, params):
    # One transpose at the boundary: NCHW -> channel-major (C, N, H, W).
    out = jnp.transpose(x, (1, 0, 2, 3))
    for i, layer in enumerate(params["conv"]):
        out = conv_block(out, layer["w"], layer["b"], layer["gamma"],
                         layer["beta"], apply_bn=(i > 0))  # first block: no BN
    c, n, ho, wo = out.shape                               # (128, N, 2, 2)
    # Channel-major -> PyTorch's out.view(N, -1) on NCHW.
    feat = jnp.transpose(out, (1, 0, 2, 3)).reshape(n, c * ho * wo)
    return heads(feat, params["adv_w"], params["adv_b"],
                 params["aux_w"], params["aux_b"])


# --------------------------- parameter initialization ------------------------ #

def init_params(key, in_channels=3):
    dims = [16, 32, 64, 128]
    params = {"conv": []}
    cin = in_channels
    for d in dims:
        key, k1, k2 = jax.random.split(key, 3)
        fan_in = cin * 9
        bound = float(fan_in) ** -0.5
        params["conv"].append({
            "w": jax.random.uniform(k1, (d, cin, 3, 3), jnp.float32, -bound, bound),
            "b": jax.random.uniform(k2, (d,), jnp.float32, -bound, bound),
            "gamma": jnp.ones((d,), jnp.float32),          # PyTorch BN defaults
            "beta": jnp.zeros((d,), jnp.float32),
        })
        cin = d
    flat = 128 * (32 // 2 ** 4) ** 2                       # 512
    key, k1, k2, k3, k4 = jax.random.split(key, 5)
    bound = float(flat) ** -0.5
    params["adv_w"] = jax.random.uniform(k1, (1, flat), jnp.float32, -bound, bound)
    params["adv_b"] = jax.random.uniform(k2, (1,), jnp.float32, -bound, bound)
    params["aux_w"] = jax.random.uniform(k3, (10, flat), jnp.float32, -bound, bound)
    params["aux_b"] = jax.random.uniform(k4, (10,), jnp.float32, -bound, bound)
    return params


if __name__ == "__main__":
    key = jax.random.PRNGKey(0)
    kx, kp = jax.random.split(key)
    # 32x32 input is implied by `newSize = 32 // 2**4` in the module.
    x = jax.random.normal(kx, (2, 3, 32, 32), jnp.float32)
    params = init_params(kp, in_channels=3)

    probs, label = discriminator_forward(x, params)
    jax.block_until_ready((probs, label))

    assert probs.shape == (2, 1) and label.shape == (2, 10)
    assert bool(jnp.all(jnp.isfinite(probs))) and bool(jnp.all(jnp.isfinite(label)))
    assert bool(jnp.all((probs >= 0.0) & (probs <= 1.0)))
    assert bool(jnp.allclose(jnp.sum(label, axis=1), 1.0, atol=1e-3))
    print("KERNEL_OK")
</pallas_src>

<mosaic_0001>
module attributes {stable_mosaic.version = 11 : i64} {
  func.func @_conv_lrelu_kernel(%arg0: memref<16x27xbf16, #tpu.memory_space<vmem>>, %arg1: memref<3x578xbf16, #tpu.memory_space<vmem>>, %arg2: memref<3x578xbf16, #tpu.memory_space<vmem>>, %arg3: memref<3x578xbf16, #tpu.memory_space<vmem>>, %arg4: memref<3x578xbf16, #tpu.memory_space<vmem>>, %arg5: memref<16x1xf32, #tpu.memory_space<vmem>>, %arg6: memref<16x578xbf16, #tpu.memory_space<vmem>>) attributes {dimension_semantics = [], scalar_prefetch = 0 : i64, scratch_operands = 0 : i64, tpu.core_type = #tpu.core_type<tc>} {
    %c0 = arith.constant 0 : index
    %c0_0 = arith.constant 0 : index
    %0 = vector.load %arg1[%c0, %c0_0] : memref<3x578xbf16, #tpu.memory_space<vmem>>, vector<3x578xbf16>
    %c0_1 = arith.constant 0 : index
    %c0_2 = arith.constant 0 : index
    %1 = vector.load %arg2[%c0_1, %c0_2] : memref<3x578xbf16, #tpu.memory_space<vmem>>, vector<3x578xbf16>
    %c0_3 = arith.constant 0 : index
    %c0_4 = arith.constant 0 : index
    %2 = vector.load %arg3[%c0_3, %c0_4] : memref<3x578xbf16, #tpu.memory_space<vmem>>, vector<3x578xbf16>
    %c0_5 = arith.constant 0 : index
    %c0_6 = arith.constant 0 : index
    %3 = vector.load %arg4[%c0_5, %c0_6] : memref<3x578xbf16, #tpu.memory_space<vmem>>, vector<3x578xbf16>
    %4 = vector.extract_strided_slice %0 {offsets = [0, 1], sizes = [3, 577], strides = [1, 1]} : vector<3x578xbf16> to vector<3x577xbf16>
    %cst = arith.constant 0.000000e+00 : bf16
    %5 = vector.broadcast %cst : bf16 to vector<3x1xbf16>
    %6 = tpu.concatenate %4, %5 in 1 : vector<3x577xbf16>, vector<3x1xbf16> -> vector<3x578xbf16>
    %7 = vector.extract_strided_slice %2 {offsets = [0, 1], sizes = [3, 577], strides = [1, 1]} : vector<3x578xbf16> to vector<3x577xbf16>
    %cst_7 = arith.constant 0.000000e+00 : bf16
    %8 = vector.broadcast %cst_7 : bf16 to vector<3x1xbf16>
    %9 = tpu.concatenate %7, %8 in 1 : vector<3x577xbf16>, vector<3x1xbf16> -> vector<3x578xbf16>
    %10 = vector.extract_strided_slice %0 {offsets = [0, 17], sizes = [3, 561], strides = [1, 1]} : vector<3x578xbf16> to vector<3x561xbf16>
    %cst_8 = arith.constant 0.000000e+00 : bf16
    %11 = vector.broadcast %cst_8 : bf16 to vector<3x17xbf16>
    %12 = tpu.concatenate %10, %11 in 1 : vector<3x561xbf16>, vector<3x17xbf16> -> vector<3x578xbf16>
    %13 = vector.extract_strided_slice %1 {offsets = [0, 17], sizes = [3, 561], strides = [1, 1]} : vector<3x578xbf16> to vector<3x561xbf16>
    %cst_9 = arith.constant 0.000000e+00 : bf16
    %14 = vector.broadcast %cst_9 : bf16 to vector<3x17xbf16>
    %15 = tpu.concatenate %13, %14 in 1 : vector<3x561xbf16>, vector<3x17xbf16> -> vector<3x578xbf16>
    %16 = vector.extract_strided_slice %0 {offsets = [0, 18], sizes = [3, 560], strides = [1, 1]} : vector<3x578xbf16> to vector<3x560xbf16>
    %cst_10 = arith.constant 0.000000e+00 : bf16
    %17 = vector.broadcast %cst_10 : bf16 to vector<3x18xbf16>
    %18 = tpu.concatenate %16, %17 in 1 : vector<3x560xbf16>, vector<3x18xbf16> -> vector<3x578xbf16>
    %19 = tpu.concatenate %0, %1, %6, %2, %3, %9, %12, %15, %18 in 0 : vector<3x578xbf16>, vector<3x578xbf16>, vector<3x578xbf16>, vector<3x578xbf16>, vector<3x578xbf16>, vector<3x578xbf16>, vector<3x578xbf16>, vector<3x578xbf16>, vector<3x578xbf16> -> vector<27x578xbf16>
    %c0_11 = arith.constant 0 : index
    %c0_12 = arith.constant 0 : index
    %20 = vector.load %arg0[%c0_11, %c0_12] : memref<16x27xbf16, #tpu.memory_space<vmem>>, vector<16x27xbf16>
    %cst_13 = arith.constant dense<0.000000e+00> : vector<16x578xf32>
    %21 = tpu.matmul %20, %19, %cst_13 {dimension_numbers = #tpu.dot_dimension_numbers<[1], [0], [0], [1], [0, 0, 1, 1], [], []>} : vector<16x27xbf16>, vector<27x578xbf16>, vector<16x578xf32> -> vector<16x578xf32>
    %c0_14 = arith.constant 0 : index
    %c0_15 = arith.constant 0 : index
    %22 = vector.load %arg5[%c0_14, %c0_15] : memref<16x1xf32, #tpu.memory_space<vmem>>, vector<16x1xf32>
    %23 = vector.broadcast %22 : vector<16x1xf32> to vector<16x578xf32>
    %24 = arith.addf %21, %23 : vector<16x578xf32>
    %cst_16 = arith.constant 2.000000e-01 : f32
    %25 = vector.broadcast %cst_16 : f32 to vector<16x578xf32>
    %26 = arith.mulf %25, %24 : vector<16x578xf32>
    %27 = arith.maximumf %24, %26 : vector<16x578xf32>
    %28 = arith.truncf %27 : vector<16x578xf32> to vector<16x578xbf16>
    %c0_17 = arith.constant 0 : index
    %c0_18 = arith.constant 0 : index
    %29 = vector.load %arg6[%c0_17, %c0_18] : memref<16x578xbf16, #tpu.memory_space<vmem>>, vector<16x578xbf16>
    tpu.vector_store %arg6[%c0_17, %c0_18], %28 {strides = array<i32>} : memref<16x578xbf16, #tpu.memory_space<vmem>>, vector<16x578xbf16>,
    return
  }
}

module attributes {stable_mosaic.version = 11 : i64} {
  func.func @_conv_lrelu_bn_kernel(%arg0: memref<32x144xbf16, #tpu.memory_space<vmem>>, %arg1: memref<16x162xbf16, #tpu.memory_space<vmem>>, %arg2: memref<16x162xbf16, #tpu.memory_space<vmem>>, %arg3: memref<16x162xbf16, #tpu.memory_space<vmem>>, %arg4: memref<16x162xbf16, #tpu.memory_space<vmem>>, %arg5: memref<32x1xf32, #tpu.memory_space<vmem>>, %arg6: memref<32x1xf32, #tpu.memory_space<vmem>>, %arg7: memref<32x1xf32, #tpu.memory_space<vmem>>, %arg8: memref<1x162xf32, #tpu.memory_space<vmem>>, %arg9: memref<32x162xbf16, #tpu.memory_space<vmem>>) attributes {dimension_semantics = [], scalar_prefetch = 0 : i64, scratch_operands = 0 : i64, tpu.core_type = #tpu.core_type<tc>} {
    %c0 = arith.constant 0 : index
    %c0_0 = arith.constant 0 : index
    %0 = vector.load %arg1[%c0, %c0_0] : memref<16x162xbf16, #tpu.memory_space<vmem>>, vector<16x162xbf16>
    %c0_1 = arith.constant 0 : index
    %c0_2 = arith.constant 0 : index
    %1 = vector.load %arg2[%c0_1, %c0_2] : memref<16x162xbf16, #tpu.memory_space<vmem>>, vector<16x162xbf16>
    %c0_3 = arith.constant 0 : index
    %c0_4 = arith.constant 0 : index
    %2 = vector.load %arg3[%c0_3, %c0_4] : memref<16x162xbf16, #tpu.memory_space<vmem>>, vector<16x162xbf16>
    %c0_5 = arith.constant 0 : index
    %c0_6 = arith.constant 0 : index
    %3 = vector.load %arg4[%c0_5, %c0_6] : memref<16x162xbf16, #tpu.memory_space<vmem>>, vector<16x162xbf16>
    %4 = vector.extract_strided_slice %0 {offsets = [0, 1], sizes = [16, 161], strides = [1, 1]} : vector<16x162xbf16> to vector<16x161xbf16>
    %cst = arith.constant 0.000000e+00 : bf16
    %5 = vector.broadcast %cst : bf16 to vector<16x1xbf16>
    %6 = tpu.concatenate %4, %5 in 1 : vector<16x161xbf16>, vector<16x1xbf16> -> vector<16x162xbf16>
    %7 = vector.extract_strided_slice %2 {offsets = [0, 1], sizes = [16, 161], strides = [1, 1]} : vector<16x162xbf16> to vector<16x161xbf16>
    %cst_7 = arith.constant 0.000000e+00 : bf16
    %8 = vector.broadcast %cst_7 : bf16 to vector<16x1xbf16>
    %9 = tpu.concatenate %7, %8 in 1 : vector<16x161xbf16>, vector<16x1xbf16> -> vector<16x162xbf16>
    %10 = vector.extract_strided_slice %0 {offsets = [0, 9], sizes = [16, 153], strides = [1, 1]} : vector<16x162xbf16> to vector<16x153xbf16>
    %cst_8 = arith.constant 0.000000e+00 : bf16
    %11 = vector.broadcast %cst_8 : bf16 to vector<16x9xbf16>
    %12 = tpu.concatenate %10, %11 in 1 : vector<16x153xbf16>, vector<16x9xbf16> -> vector<16x162xbf16>
    %13 = vector.extract_strided_slice %1 {offsets = [0, 9], sizes = [16, 153], strides = [1, 1]} : vector<16x162xbf16> to vector<16x153xbf16>
    %cst_9 = arith.constant 0.000000e+00 : bf16
    %14 = vector.broadcast %cst_9 : bf16 to vector<16x9xbf16>
    %15 = tpu.concatenate %13, %14 in 1 : vector<16x153xbf16>, vector<16x9xbf16> -> vector<16x162xbf16>
    %16 = vector.extract_strided_slice %0 {offsets = [0, 10], sizes = [16, 152], strides = [1, 1]} : vector<16x162xbf16> to vector<16x152xbf16>
    %cst_10 = arith.constant 0.000000e+00 : bf16
    %17 = vector.broadcast %cst_10 : bf16 to vector<16x10xbf16>
    %18 = tpu.concatenate %16, %17 in 1 : vector<16x152xbf16>, vector<16x10xbf16> -> vector<16x162xbf16>
    %19 = tpu.concatenate %0, %1, %6, %2, %3, %9, %12, %15, %18 in 0 : vector<16x162xbf16>, vector<16x162xbf16>, vector<16x162xbf16>, vector<16x162xbf16>, vector<16x162xbf16>, vector<16x162xbf16>, vector<16x162xbf16>, vector<16x162xbf16>, vector<16x162xbf16> -> vector<144x162xbf16>
    %c0_11 = arith.constant 0 : index
    %c0_12 = arith.constant 0 : index
    %20 = vector.load %arg0[%c0_11, %c0_12] : memref<32x144xbf16, #tpu.memory_space<vmem>>, vector<32x144xbf16>
    %cst_13 = arith.constant dense<0.000000e+00> : vector<32x162xf32>
    %21 = tpu.matmul %20, %19, %cst_13 {dimension_numbers = #tpu.dot_dimension_numbers<[1], [0], [0], [1], [0, 0, 1, 1], [], []>} : vector<32x144xbf16>, vector<144x162xbf16>, vector<32x162xf32> -> vector<32x162xf32>
    %c0_14 = arith.constant 0 : index
    %c0_15 = arith.constant 0 : index
    %22 = vector.load %arg5[%c0_14, %c0_15] : memref<32x1xf32, #tpu.memory_space<vmem>>, vector<32x1xf32>
    %23 = vector.broadcast %22 : vector<32x1xf32> to vector<32x162xf32>
    %24 = arith.addf %21, %23 : vector<32x162xf32>
    %cst_16 = arith.constant 2.000000e-01 : f32
    %25 = vector.broadcast %cst_16 : f32 to vector<32x162xf32>
    %26 = arith.mulf %25, %24 : vector<32x162xf32>
    %27 = arith.maximumf %24, %26 : vector<32x162xf32>
    %c0_17 = arith.constant 0 : index
    %c0_18 = arith.constant 0 : index
    %28 = vector.load %arg8[%c0_17, %c0_18] : memref<1x162xf32, #tpu.memory_space<vmem>>, vector<1x162xf32>
    %29 = vector.broadcast %28 : vector<1x162xf32> to vector<32x162xf32>
    %30 = arith.mulf %27, %29 : vector<32x162xf32>
    %cst_19 = arith.constant dense<0.000000e+00> : vector<32xf32>
    %31 = vector.multi_reduction <add>, %30, %cst_19 [1] : vector<32x162xf32> to vector<32xf32>
    %32 = vector.shape_cast %31 : vector<32xf32> to vector<32x1xf32>
    %cst_20 = arith.constant 7.812500e-03 : f32
    %33 = vector.broadcast %cst_20 : f32 to vector<32x1xf32>
    %34 = arith.mulf %32, %33 : vector<32x1xf32>
    %35 = vector.broadcast %34 : vector<32x1xf32> to vector<32x162xf32>
    %36 = arith.subf %27, %35 : vector<32x162xf32>
    %37 = vector.broadcast %28 : vector<1x162xf32> to vector<32x162xf32>
    %38 = arith.mulf %36, %37 : vector<32x162xf32>
    %39 = arith.mulf %38, %38 : vector<32x162xf32>
    %cst_21 = arith.constant dense<0.000000e+00> : vector<32xf32>
    %40 = vector.multi_reduction <add>, %39, %cst_21 [1] : vector<32x162xf32> to vector<32xf32>
    %41 = vector.shape_cast %40 : vector<32xf32> to vector<32x1xf32>
    %cst_22 = arith.constant 7.812500e-03 : f32
    %42 = vector.broadcast %cst_22 : f32 to vector<32x1xf32>
    %43 = arith.mulf %41, %42 : vector<32x1xf32>
    %c0_23 = arith.constant 0 : index
    %c0_24 = arith.constant 0 : index
    %44 = vector.load %arg6[%c0_23, %c0_24] : memref<32x1xf32, #tpu.memory_space<vmem>>, vector<32x1xf32>
    %cst_25 = arith.constant 8.000000e-01 : f32
    %45 = vector.broadcast %cst_25 : f32 to vector<32x1xf32>
    %46 = arith.addf %43, %45 : vector<32x1xf32>
    %47 = math.rsqrt %46 : vector<32x1xf32>
    %48 = arith.mulf %44, %47 : vector<32x1xf32>
    %c0_26 = arith.constant 0 : index
    %c0_27 = arith.constant 0 : index
    %49 = vector.load %arg7[%c0_26, %c0_27] : memref<32x1xf32, #tpu.memory_space<vmem>>, vector<32x1xf32>
    %50 = arith.mulf %34, %48 : vector<32x1xf32>
    %51 = arith.subf %49, %50 : vector<32x1xf32>
    %52 = vector.broadcast %48 : vector<32x1xf32> to vector<32x162xf32>
    %53 = arith.mulf %27, %52 : vector<32x162xf32>
    %54 = vector.broadcast %51 : vector<32x1xf32> to vector<32x162xf32>
    %55 = arith.addf %53, %54 : vector<32x162xf32>
    %56 = arith.truncf %55 : vector<32x162xf32> to vector<32x162xbf16>
    %c0_28 = arith.constant 0 : index
    %c0_29 = arith.constant 0 : index
    %57 = vector.load %arg9[%c0_28, %c0_29] : memref<32x162xbf16, #tpu.memory_space<vmem>>, vector<32x162xbf16>
    tpu.vector_store %arg9[%c0_28, %c0_29], %56 {strides = array<i32>} : memref<32x162xbf16, #tpu.memory_space<vmem>>, vector<32x162xbf16>,
    return
  }
}

module attributes {stable_mosaic.version = 11 : i64} {
  func.func @_conv_lrelu_bn_kernel(%arg0: memref<64x288xbf16, #tpu.memory_space<vmem>>, %arg1: memref<32x50xbf16, #tpu.memory_space<vmem>>, %arg2: memref<32x50xbf16, #tpu.memory_space<vmem>>, %arg3: memref<32x50xbf16, #tpu.memory_space<vmem>>, %arg4: memref<32x50xbf16, #tpu.memory_space<vmem>>, %arg5: memref<64x1xf32, #tpu.memory_space<vmem>>, %arg6: memref<64x1xf32, #tpu.memory_space<vmem>>, %arg7: memref<64x1xf32, #tpu.memory_space<vmem>>, %arg8: memref<1x50xf32, #tpu.memory_space<vmem>>, %arg9: memref<64x50xbf16, #tpu.memory_space<vmem>>) attributes {dimension_semantics = [], scalar_prefetch = 0 : i64, scratch_operands = 0 : i64, tpu.core_type = #tpu.core_type<tc>} {
    %c0 = arith.constant 0 : index
    %c0_0 = arith.constant 0 : index
    %0 = vector.load %arg1[%c0, %c0_0] : memref<32x50xbf16, #tpu.memory_space<vmem>>, vector<32x50xbf16>
    %c0_1 = arith.constant 0 : index
    %c0_2 = arith.constant 0 : index
    %1 = vector.load %arg2[%c0_1, %c0_2] : memref<32x50xbf16, #tpu.memory_space<vmem>>, vector<32x50xbf16>
    %c0_3 = arith.constant 0 : index
    %c0_4 = arith.constant 0 : index
    %2 = vector.load %arg3[%c0_3, %c0_4] : memref<32x50xbf16, #tpu.memory_space<vmem>>, vector<32x50xbf16>
    %c0_5 = arith.constant 0 : index
    %c0_6 = arith.constant 0 : index
    %3 = vector.load %arg4[%c0_5, %c0_6] : memref<32x50xbf16, #tpu.memory_space<vmem>>, vector<32x50xbf16>
    %4 = vector.extract_strided_slice %0 {offsets = [0, 1], sizes = [32, 49], strides = [1, 1]} : vector<32x50xbf16> to vector<32x49xbf16>
    %cst = arith.constant 0.000000e+00 : bf16
    %5 = vector.broadcast %cst : bf16 to vector<32x1xbf16>
    %6 = tpu.concatenate %4, %5 in 1 : vector<32x49xbf16>, vector<32x1xbf16> -> vector<32x50xbf16>
    %7 = vector.extract_strided_slice %2 {offsets = [0, 1], sizes = [32, 49], strides = [1, 1]} : vector<32x50xbf16> to vector<32x49xbf16>
    %cst_7 = arith.constant 0.000000e+00 : bf16
    %8 = vector.broadcast %cst_7 : bf16 to vector<32x1xbf16>
    %9 = tpu.concatenate %7, %8 in 1 : vector<32x49xbf16>, vector<32x1xbf16> -> vector<32x50xbf16>
    %10 = vector.extract_strided_slice %0 {offsets = [0, 5], sizes = [32, 45], strides = [1, 1]} : vector<32x50xbf16> to vector<32x45xbf16>
    %cst_8 = arith.constant 0.000000e+00 : bf16
    %11 = vector.broadcast %cst_8 : bf16 to vector<32x5xbf16>
    %12 = tpu.concatenate %10, %11 in 1 : vector<32x45xbf16>, vector<32x5xbf16> -> vector<32x50xbf16>
    %13 = vector.extract_strided_slice %1 {offsets = [0, 5], sizes = [32, 45], strides = [1, 1]} : vector<32x50xbf16> to vector<32x45xbf16>
    %cst_9 = arith.constant 0.000000e+00 : bf16
    %14 = vector.broadcast %cst_9 : bf16 to vector<32x5xbf16>
    %15 = tpu.concatenate %13, %14 in 1 : vector<32x45xbf16>, vector<32x5xbf16> -> vector<32x50xbf16>
    %16 = vector.extract_strided_slice %0 {offsets = [0, 6], sizes = [32, 44], strides = [1, 1]} : vector<32x50xbf16> to vector<32x44xbf16>
    %cst_10 = arith.constant 0.000000e+00 : bf16
    %17 = vector.broadcast %cst_10 : bf16 to vector<32x6xbf16>
    %18 = tpu.concatenate %16, %17 in 1 : vector<32x44xbf16>, vector<32x6xbf16> -> vector<32x50xbf16>
    %19 = tpu.concatenate %0, %1, %6, %2, %3, %9, %12, %15, %18 in 0 : vector<32x50xbf16>, vector<32x50xbf16>, vector<32x50xbf16>, vector<32x50xbf16>, vector<32x50xbf16>, vector<32x50xbf16>, vector<32x50xbf16>, vector<32x50xbf16>, vector<32x50xbf16> -> vector<288x50xbf16>
    %c0_11 = arith.constant 0 : index
    %c0_12 = arith.constant 0 : index
    %20 = vector.load %arg0[%c0_11, %c0_12] : memref<64x288xbf16, #tpu.memory_space<vmem>>, vector<64x288xbf16>
    %cst_13 = arith.constant dense<0.000000e+00> : vector<64x50xf32>
    %21 = tpu.matmul %20, %19, %cst_13 {dimension_numbers = #tpu.dot_dimension_numbers<[1], [0], [0], [1], [0, 0, 1, 1], [], []>} : vector<64x288xbf16>, vector<288x50xbf16>, vector<64x50xf32> -> vector<64x50xf32>
    %c0_14 = arith.constant 0 : index
    %c0_15 = arith.constant 0 : index
    %22 = vector.load %arg5[%c0_14, %c0_15] : memref<64x1xf32, #tpu.memory_space<vmem>>, vector<64x1xf32>
    %23 = vector.broadcast %22 : vector<64x1xf32> to vector<64x50xf32>
    %24 = arith.addf %21, %23 : vector<64x50xf32>
    %cst_16 = arith.constant 2.000000e-01 : f32
    %25 = vector.broadcast %cst_16 : f32 to vector<64x50xf32>
    %26 = arith.mulf %25, %24 : vector<64x50xf32>
    %27 = arith.maximumf %24, %26 : vector<64x50xf32>
    %c0_17 = arith.constant 0 : index
    %c0_18 = arith.constant 0 : index
    %28 = vector.load %arg8[%c0_17, %c0_18] : memref<1x50xf32, #tpu.memory_space<vmem>>, vector<1x50xf32>
    %29 = vector.broadcast %28 : vector<1x50xf32> to vector<64x50xf32>
    %30 = arith.mulf %27, %29 : vector<64x50xf32>
    %cst_19 = arith.constant dense<0.000000e+00> : vector<64xf32>
    %31 = vector.multi_reduction <add>, %30, %cst_19 [1] : vector<64x50xf32> to vector<64xf32>
    %32 = vector.shape_cast %31 : vector<64xf32> to vector<64x1xf32>
    %cst_20 = arith.constant 3.125000e-02 : f32
    %33 = vector.broadcast %cst_20 : f32 to vector<64x1xf32>
    %34 = arith.mulf %32, %33 : vector<64x1xf32>
    %35 = vector.broadcast %34 : vector<64x1xf32> to vector<64x50xf32>
    %36 = arith.subf %27, %35 : vector<64x50xf32>
    %37 = vector.broadcast %28 : vector<1x50xf32> to vector<64x50xf32>
    %38 = arith.mulf %36, %37 : vector<64x50xf32>
    %39 = arith.mulf %38, %38 : vector<64x50xf32>
    %cst_21 = arith.constant dense<0.000000e+00> : vector<64xf32>
    %40 = vector.multi_reduction <add>, %39, %cst_21 [1] : vector<64x50xf32> to vector<64xf32>
    %41 = vector.shape_cast %40 : vector<64xf32> to vector<64x1xf32>
    %cst_22 = arith.constant 3.125000e-02 : f32
    %42 = vector.broadcast %cst_22 : f32 to vector<64x1xf32>
    %43 = arith.mulf %41, %42 : vector<64x1xf32>
    %c0_23 = arith.constant 0 : index
    %c0_24 = arith.constant 0 : index
    %44 = vector.load %arg6[%c0_23, %c0_24] : memref<64x1xf32, #tpu.memory_space<vmem>>, vector<64x1xf32>
    %cst_25 = arith.constant 8.000000e-01 : f32
    %45 = vector.broadcast %cst_25 : f32 to vector<64x1xf32>
    %46 = arith.addf %43, %45 : vector<64x1xf32>
    %47 = math.rsqrt %46 : vector<64x1xf32>
    %48 = arith.mulf %44, %47 : vector<64x1xf32>
    %c0_26 = arith.constant 0 : index
    %c0_27 = arith.constant 0 : index
    %49 = vector.load %arg7[%c0_26, %c0_27] : memref<64x1xf32, #tpu.memory_space<vmem>>, vector<64x1xf32>
    %50 = arith.mulf %34, %48 : vector<64x1xf32>
    %51 = arith.subf %49, %50 : vector<64x1xf32>
    %52 = vector.broadcast %48 : vector<64x1xf32> to vector<64x50xf32>
    %53 = arith.mulf %27, %52 : vector<64x50xf32>
    %54 = vector.broadcast %51 : vector<64x1xf32> to vector<64x50xf32>
    %55 = arith.addf %53, %54 : vector<64x50xf32>
    %56 = arith.truncf %55 : vector<64x50xf32> to vector<64x50xbf16>
    %c0_28 = arith.constant 0 : index
    %c0_29 = arith.constant 0 : index
    %57 = vector.load %arg9[%c0_28, %c0_29] : memref<64x50xbf16, #tpu.memory_space<vmem>>, vector<64x50xbf16>
    tpu.vector_store %arg9[%c0_28, %c0_29], %56 {strides = array<i32>} : memref<64x50xbf16, #tpu.memory_space<vmem>>, vector<64x50xbf16>,
    return
  }
}

module attributes {stable_mosaic.version = 11 : i64} {
  func.func @_conv_lrelu_bn_kernel(%arg0: memref<128x576xbf16, #tpu.memory_space<vmem>>, %arg1: memref<64x18xbf16, #tpu.memory_space<vmem>>, %arg2: memref<64x18xbf16, #tpu.memory_space<vmem>>, %arg3: memref<64x18xbf16, #tpu.memory_space<vmem>>, %arg4: memref<64x18xbf16, #tpu.memory_space<vmem>>, %arg5: memref<128x1xf32, #tpu.memory_space<vmem>>, %arg6: memref<128x1xf32, #tpu.memory_space<vmem>>, %arg7: memref<128x1xf32, #tpu.memory_space<vmem>>, %arg8: memref<1x18xf32, #tpu.memory_space<vmem>>, %arg9: memref<128x18xbf16, #tpu.memory_space<vmem>>) attributes {dimension_semantics = [], scalar_prefetch = 0 : i64, scratch_operands = 0 : i64, tpu.core_type = #tpu.core_type<tc>} {
    %c0 = arith.constant 0 : index
    %c0_0 = arith.constant 0 : index
    %0 = vector.load %arg1[%c0, %c0_0] : memref<64x18xbf16, #tpu.memory_space<vmem>>, vector<64x18xbf16>
    %c0_1 = arith.constant 0 : index
    %c0_2 = arith.constant 0 : index
    %1 = vector.load %arg2[%c0_1, %c0_2] : memref<64x18xbf16, #tpu.memory_space<vmem>>, vector<64x18xbf16>
    %c0_3 = arith.constant 0 : index
    %c0_4 = arith.constant 0 : index
    %2 = vector.load %arg3[%c0_3, %c0_4] : memref<64x18xbf16, #tpu.memory_space<vmem>>, vector<64x18xbf16>
    %c0_5 = arith.constant 0 : index
    %c0_6 = arith.constant 0 : index
    %3 = vector.load %arg4[%c0_5, %c0_6] : memref<64x18xbf16, #tpu.memory_space<vmem>>, vector<64x18xbf16>
    %4 = vector.extract_strided_slice %0 {offsets = [0, 1], sizes = [64, 17], strides = [1, 1]} : vector<64x18xbf16> to vector<64x17xbf16>
    %cst = arith.constant 0.000000e+00 : bf16
    %5 = vector.broadcast %cst : bf16 to vector<64x1xbf16>
    %6 = tpu.concatenate %4, %5 in 1 : vector<64x17xbf16>, vector<64x1xbf16> -> vector<64x18xbf16>
    %7 = vector.extract_strided_slice %2 {offsets = [0, 1], sizes = [64, 17], strides = [1, 1]} : vector<64x18xbf16> to vector<64x17xbf16>
    %cst_7 = arith.constant 0.000000e+00 : bf16
    %8 = vector.broadcast %cst_7 : bf16 to vector<64x1xbf16>
    %9 = tpu.concatenate %7, %8 in 1 : vector<64x17xbf16>, vector<64x1xbf16> -> vector<64x18xbf16>
    %10 = vector.extract_strided_slice %0 {offsets = [0, 3], sizes = [64, 15], strides = [1, 1]} : vector<64x18xbf16> to vector<64x15xbf16>
    %cst_8 = arith.constant 0.000000e+00 : bf16
    %11 = vector.broadcast %cst_8 : bf16 to vector<64x3xbf16>
    %12 = tpu.concatenate %10, %11 in 1 : vector<64x15xbf16>, vector<64x3xbf16> -> vector<64x18xbf16>
    %13 = vector.extract_strided_slice %1 {offsets = [0, 3], sizes = [64, 15], strides = [1, 1]} : vector<64x18xbf16> to vector<64x15xbf16>
    %cst_9 = arith.constant 0.000000e+00 : bf16
    %14 = vector.broadcast %cst_9 : bf16 to vector<64x3xbf16>
    %15 = tpu.concatenate %13, %14 in 1 : vector<64x15xbf16>, vector<64x3xbf16> -> vector<64x18xbf16>
    %16 = vector.extract_strided_slice %0 {offsets = [0, 4], sizes = [64, 14], strides = [1, 1]} : vector<64x18xbf16> to vector<64x14xbf16>
    %cst_10 = arith.constant 0.000000e+00 : bf16
    %17 = vector.broadcast %cst_10 : bf16 to vector<64x4xbf16>
    %18 = tpu.concatenate %16, %17 in 1 : vector<64x14xbf16>, vector<64x4xbf16> -> vector<64x18xbf16>
    %19 = tpu.concatenate %0, %1, %6, %2, %3, %9, %12, %15, %18 in 0 : vector<64x18xbf16>, vector<64x18xbf16>, vector<64x18xbf16>, vector<64x18xbf16>, vector<64x18xbf16>, vector<64x18xbf16>, vector<64x18xbf16>, vector<64x18xbf16>, vector<64x18xbf16> -> vector<576x18xbf16>
    %c0_11 = arith.constant 0 : index
    %c0_12 = arith.constant 0 : index
    %20 = vector.load %arg0[%c0_11, %c0_12] : memref<128x576xbf16, #tpu.memory_space<vmem>>, vector<128x576xbf16>
    %cst_13 = arith.constant dense<0.000000e+00> : vector<128x18xf32>
    %21 = tpu.matmul %20, %19, %cst_13 {dimension_numbers = #tpu.dot_dimension_numbers<[1], [0], [0], [1], [0, 0, 1, 1], [], []>} : vector<128x576xbf16>, vector<576x18xbf16>, vector<128x18xf32> -> vector<128x18xf32>
    %c0_14 = arith.constant 0 : index
    %c0_15 = arith.constant 0 : index
    %22 = vector.load %arg5[%c0_14, %c0_15] : memref<128x1xf32, #tpu.memory_space<vmem>>, vector<128x1xf32>
    %23 = vector.broadcast %22 : vector<128x1xf32> to vector<128x18xf32>
    %24 = arith.addf %21, %23 : vector<128x18xf32>
    %cst_16 = arith.constant 2.000000e-01 : f32
    %25 = vector.broadcast %cst_16 : f32 to vector<128x18xf32>
    %26 = arith.mulf %25, %24 : vector<128x18xf32>
    %27 = arith.maximumf %24, %26 : vector<128x18xf32>
    %c0_17 = arith.constant 0 : index
    %c0_18 = arith.constant 0 : index
    %28 = vector.load %arg8[%c0_17, %c0_18] : memref<1x18xf32, #tpu.memory_space<vmem>>, vector<1x18xf32>
    %29 = vector.broadcast %28 : vector<1x18xf32> to vector<128x18xf32>
    %30 = arith.mulf %27, %29 : vector<128x18xf32>
    %cst_19 = arith.constant dense<0.000000e+00> : vector<128xf32>
    %31 = vector.multi_reduction <add>, %30, %cst_19 [1] : vector<128x18xf32> to vector<128xf32>
    %32 = vector.shape_cast %31 : vector<128xf32> to vector<128x1xf32>
    %cst_20 = arith.constant 1.250000e-01 : f32
    %33 = vector.broadcast %cst_20 : f32 to vector<128x1xf32>
    %34 = arith.mulf %32, %33 : vector<128x1xf32>
    %35 = vector.broadcast %34 : vector<128x1xf32> to vector<128x18xf32>
    %36 = arith.subf %27, %35 : vector<128x18xf32>
    %37 = vector.broadcast %28 : vector<1x18xf32> to vector<128x18xf32>
    %38 = arith.mulf %36, %37 : vector<128x18xf32>
    %39 = arith.mulf %38, %38 : vector<128x18xf32>
    %cst_21 = arith.constant dense<0.000000e+00> : vector<128xf32>
    %40 = vector.multi_reduction <add>, %39, %cst_21 [1] : vector<128x18xf32> to vector<128xf32>
    %41 = vector.shape_cast %40 : vector<128xf32> to vector<128x1xf32>
    %cst_22 = arith.constant 1.250000e-01 : f32
    %42 = vector.broadcast %cst_22 : f32 to vector<128x1xf32>
    %43 = arith.mulf %41, %42 : vector<128x1xf32>
    %c0_23 = arith.constant 0 : index
    %c0_24 = arith.constant 0 : index
    %44 = vector.load %arg6[%c0_23, %c0_24] : memref<128x1xf32, #tpu.memory_space<vmem>>, vector<128x1xf32>
    %cst_25 = arith.constant 8.000000e-01 : f32
    %45 = vector.broadcast %cst_25 : f32 to vector<128x1xf32>
    %46 = arith.addf %43, %45 : vector<128x1xf32>
    %47 = math.rsqrt %46 : vector<128x1xf32>
    %48 = arith.mulf %44, %47 : vector<128x1xf32>
    %c0_26 = arith.constant 0 : index
    %c0_27 = arith.constant 0 : index
    %49 = vector.load %arg7[%c0_26, %c0_27] : memref<128x1xf32, #tpu.memory_space<vmem>>, vector<128x1xf32>
    %50 = arith.mulf %34, %48 : vector<128x1xf32>
    %51 = arith.subf %49, %50 : vector<128x1xf32>
    %52 = vector.broadcast %48 : vector<128x1xf32> to vector<128x18xf32>
    %53 = arith.mulf %27, %52 : vector<128x18xf32>
    %54 = vector.broadcast %51 : vector<128x1xf32> to vector<128x18xf32>
    %55 = arith.addf %53, %54 : vector<128x18xf32>
    %56 = arith.truncf %55 : vector<128x18xf32> to vector<128x18xbf16>
    %c0_28 = arith.constant 0 : index
    %c0_29 = arith.constant 0 : index
    %57 = vector.load %arg9[%c0_28, %c0_29] : memref<128x18xbf16, #tpu.memory_space<vmem>>, vector<128x18xbf16>
    tpu.vector_store %arg9[%c0_28, %c0_29], %56 {strides = array<i32>} : memref<128x18xbf16, #tpu.memory_space<vmem>>, vector<128x18xbf16>,
    return
  }
}

module attributes {stable_mosaic.version = 11 : i64} {
  func.func @_head_kernel(%arg0: i32, %arg1: memref<2x512xbf16, #tpu.memory_space<vmem>>, %arg2: memref<512x128xbf16, #tpu.memory_space<vmem>>, %arg3: memref<1x128xf32, #tpu.memory_space<vmem>>, %arg4: memref<2x128xf32, #tpu.memory_space<vmem>>) attributes {dimension_semantics = [#tpu.dimension_semantics<parallel>], iteration_bounds = array<i64: 1>, scalar_prefetch = 0 : i64, scratch_operands = 0 : i64, tpu.core_type = #tpu.core_type<tc>, window_params = [{transform_indices = @transform_0, window_bounds = array<i64: 2, 512>}, {pipeline_mode = #tpu.pipeline_mode<synchronous>, transform_indices = @transform_1, window_bounds = array<i64: 512, 128>}, {pipeline_mode = #tpu.pipeline_mode<synchronous>, transform_indices = @transform_2, window_bounds = array<i64: 1, 128>}, {transform_indices = @transform_3, window_bounds = array<i64: 2, 128>}]} {
    %c0 = arith.constant 0 : index
    %c0_0 = arith.constant 0 : index
    %0 = vector.load %arg1[%c0, %c0_0] : memref<2x512xbf16, #tpu.memory_space<vmem>>, vector<2x512xbf16>
    %c0_1 = arith.constant 0 : index
    %c0_2 = arith.constant 0 : index
    %1 = vector.load %arg2[%c0_1, %c0_2] : memref<512x128xbf16, #tpu.memory_space<vmem>>, vector<512x128xbf16>
    %cst = arith.constant dense<0.000000e+00> : vector<2x128xf32>
    %2 = tpu.matmul %0, %1, %cst {dimension_numbers = #tpu.dot_dimension_numbers<[1], [0], [0], [1], [0, 0, 1, 1], [], []>} : vector<2x512xbf16>, vector<512x128xbf16>, vector<2x128xf32> -> vector<2x128xf32>
    %c0_3 = arith.constant 0 : index
    %c0_4 = arith.constant 0 : index
    %3 = vector.load %arg3[%c0_3, %c0_4] : memref<1x128xf32, #tpu.memory_space<vmem>>, vector<1x128xf32>
    %4 = vector.broadcast %3 : vector<1x128xf32> to vector<2x128xf32>
    %5 = arith.addf %2, %4 : vector<2x128xf32>
    %6 = vector.extract_strided_slice %5 {offsets = [0, 0], sizes = [2, 1], strides = [1, 1]} : vector<2x128xf32> to vector<2x1xf32>
    %cst_5 = arith.constant 0.000000e+00 : f32
    %7 = vector.broadcast %cst_5 : f32 to vector<2x1xf32>
    %8 = arith.subf %7, %6 : vector<2x1xf32>
    %9 = math.exp %8 : vector<2x1xf32>
    %cst_6 = arith.constant 1.000000e+00 : f32
    %10 = vector.broadcast %cst_6 : f32 to vector<2x1xf32>
    %11 = arith.addf %10, %9 : vector<2x1xf32>
    %cst_7 = arith.constant 1.000000e+00 : f32
    %12 = vector.broadcast %cst_7 : f32 to vector<2x1xf32>
    %13 = arith.divf %12, %11 : vector<2x1xf32>
    %14 = vector.extract_strided_slice %5 {offsets = [0, 1], sizes = [2, 10], strides = [1, 1]} : vector<2x128xf32> to vector<2x10xf32>
    %cst_8 = arith.constant dense<0xFF800000> : vector<2xf32>
    %15 = vector.multi_reduction <maximumf>, %14, %cst_8 [1] : vector<2x10xf32> to vector<2xf32>
    %16 = vector.shape_cast %15 : vector<2xf32> to vector<2x1xf32>
    %17 = vector.broadcast %16 : vector<2x1xf32> to vector<2x10xf32>
    %18 = arith.subf %14, %17 : vector<2x10xf32>
    %19 = math.exp %18 : vector<2x10xf32>
    %cst_9 = arith.constant dense<0.000000e+00> : vector<2xf32>
    %20 = vector.multi_reduction <add>, %19, %cst_9 [1] : vector<2x10xf32> to vector<2xf32>
    %21 = vector.shape_cast %20 : vector<2xf32> to vector<2x1xf32>
    %22 = vector.broadcast %21 : vector<2x1xf32> to vector<2x10xf32>
    %23 = arith.divf %19, %22 : vector<2x10xf32>
    %cst_10 = arith.constant 0.000000e+00 : f32
    %24 = vector.broadcast %cst_10 : f32 to vector<2x117xf32>
    %25 = tpu.concatenate %13, %23, %24 in 1 : vector<2x1xf32>, vector<2x10xf32>, vector<2x117xf32> -> vector<2x128xf32>
    %c0_11 = arith.constant 0 : index
    %c0_12 = arith.constant 0 : index
    %26 = vector.load %arg4[%c0_11, %c0_12] : memref<2x128xf32, #tpu.memory_space<vmem>>, vector<2x128xf32>
    tpu.vector_store %arg4[%c0_11, %c0_12], %25 {strides = array<i32>} : memref<2x128xf32, #tpu.memory_space<vmem>>, vector<2x128xf32>,
    return
  }
  func.func @transform_0(%arg0: i32) -> (i32, i32) {
    %c0_i32 = arith.constant 0 : i32
    %c0_i32_0 = arith.constant 0 : i32
    return %arg0, %c0_i32 : i32, i32
  }
  func.func @transform_1(%arg0: i32) -> (i32, i32) {
    %c0_i32 = arith.constant 0 : i32
    %c0_i32_0 = arith.constant 0 : i32
    %c0_i32_1 = arith.constant 0 : i32
    return %c0_i32, %c0_i32_0 : i32, i32
  }
  func.func @transform_2(%arg0: i32) -> (i32, i32) {
    %c0_i32 = arith.constant 0 : i32
    %c0_i32_0 = arith.constant 0 : i32
    %c0_i32_1 = arith.constant 0 : i32
    return %c0_i32, %c0_i32_0 : i32, i32
  }
  func.func @transform_3(%arg0: i32) -> (i32, i32) {
    %c0_i32 = arith.constant 0 : i32
    %c0_i32_0 = arith.constant 0 : i32
    return %arg0, %c0_i32 : i32, i32
  }
}

</mosaic_0001>

<bundles_post_ra>
// kernel: discriminator_forward.5
= control target key start
LH: loop header
LB: loop body
LE: loop exit
PB: predicated region body
PF: predicated region fallthrough
CT: control target
= control target key end

     0   :  { %v38_v0 = vlaneseq  ;;  %v804_v2 = vmov 1983009808   ;;  %s805_s27 = smov 127   ;;  %vm421_vm0 = vcmask 1041408   ;;  %vm422_vm1 = vsmask.f32 1280  ;;  %s1177_s3 = inlined_call_operand.vmem [shape: bf16[3,578], index: 3, kind: input, shape index: {}]   ;;  %s1178_s1 = inlined_call_operand.vmem [shape: bf16[3,578], index: 1, kind: input, shape index: {}]   ;;  %s1179_s2 = inlined_call_operand.vmem [shape: bf16[3,578], index: 2, kind: input, shape index: {}]   ;;  %s1180_s4 = inlined_call_operand.vmem [shape: bf16[3,578], index: 4, kind: input, shape index: {}]   ;;  %s1181_s0 = inlined_call_operand.vmem [shape: bf16[16,27], index: 0, kind: input, shape index: {}]   ;;  %s1182_s5 = inlined_call_operand.vmem [shape: f32[16,1], index: 5, kind: input, shape index: {}]   ;;  %s1183_s6 = inlined_call_operand.vmem [shape: bf16[16,578], index: 6, kind: output, shape index: {}]  }
   0x1   :  { %v28_v1 = vld [vmem:[%s1177_s3] sm:$0xff]  ;;  %v36_v3 = vunpack.c.l.s4 %v804_v2  ;;  %vm887_vm2 = vmand %vm421_vm0, %vm422_vm1  ;;  %s806_s30 = smov 111   ;;  %v760_v35 = vld.sshfl [vmem:[%s1179_s2 + $0x8] sm:$0x3 pattern:$0x76325410] }
   0x2   :  { %v24_v4 = vld [vmem:[%s1178_s1] sm:$0xff]  ;;  %v39_v5 = vshrl.u32 %v38_v0, 7  ;;  %v79_v7 = vcombine.high %v28_v1, %v28_v1  ;;  %v235_v37 = vshrl.u32 %v760_v35, 16  ;;  %v238_v38 = vshll.u32 %v760_v35, 16  ;;  %s807_s12 = smov 110   ;;  %v535_v2 = vld [vmem:[%s1182_s5 + $0x8] sm:$0xff] }
   0x3   :  { %v37_v6 = vunpack.c.0.s8 %v36_v3  ;;  %v34_v8 = vcombine.high %v24_v4, %v24_v4  ;;  %v26_v10 = vld [vmem:[%s1179_s2] sm:$0xff]  ;;  %v758_v53 = vld.sshfl [vmem:[%s1178_s1 + $0x8] sm:$0x3 pattern:$0x76325410]  ;;  %v808_v0 = vmov 0  }
   0x4   :  { %v30_v17 = vld [vmem:[%s1180_s4] sm:$0xff]  ;;  %v139_v23 = vcombine.high %v26_v10, %v26_v10  ;;  %v237_v45 = vrot.slane %v235_v37, 6  ;;  %v240_v46 = vrot.slane %v238_v38, 7  ;;  %v802_v54 = vld [vmem:[%s1180_s4 + $0x8] ss:$0 sps:$4 sm:$0x33]   ;;  %600 = vmatprep.mubr.bf16.mxu0 %v808_v0  ;;  %643 = vmatprep.mubr.bf16.mxu1 %v808_v0 }
   0x5   :  { %v853_v9 = vsub.s32 %v37_v6, %v39_v5  ;;  %v300_v21 = vcombine.low %v30_v17, %v30_v17  ;;  %v945_v60 = vld.sshfl [vmem:[%s1177_s3 + $0x8] sm:$0x3 pattern:$0x76325410]  ;;  %797 = vset.pattern.permute.xlu0 %v808_v0  ;;  %796 = vset.pattern.permute.xlu1 %v808_v0  ;;  %vm68_vm3 = vcmask 1039360   ;;  %vm450_vm4 = vcmask 1044480  }
   0x6   :  { %v241_v51 = vor.u32 %v240_v46, %v237_v45  ;;  %vm451_vm5 = vsmask.f32 4352  ;;  %vm429_vm6 = vcmask 1042432   ;;  %vm458_vm8 = vcmask 1045504  }
   0x7   :  { %v859_v11 = vrot.slane %v79_v7, %v853_v9  ;;  %v862_v12 = vrot.slane %v24_v4, %v853_v9  ;;  %v865_v13 = vrot.slane %v34_v8, %v853_v9  ;;  %v146_v14 = vrot.slane %v26_v10, %v853_v9  ;;  %vm982_vm7 = vmand %vm450_vm4, %vm451_vm5 }
   0x8   :  { %v873_v15 = vrot.slane %v28_v1, %v853_v9  ;;  %v892_v30 = vrot.slane %v300_v21, %v853_v9  ;;  %v153_v31 = vrot.slane %v139_v23, %v853_v9  ;;  %v931_v56 = vrot.slane %v30_v17, %v853_v9  ;;  %v534_v1 = vld [vmem:[%s1182_s5] sm:$0xff] }
   0x9   :  { %107 = vrot.lane.b32.xlu0 %v859_v11, %s805_s27  ;;  %62 = vrot.lane.b32.xlu1 %v865_v13, %s805_s27  ;;  %v49_v16 = vcombine.high %v862_v12, %v862_v12  ;;  %v154_v18 = vcombine.high %v146_v14, %v146_v14  ;;  %v203_v26 = vshrl.u32 %v146_v14, 16  ;;  %v206_v27 = vshll.u32 %v146_v14, 16 }
   0xa   :  { %v885_v22 = vcombine.high %v873_v15, %v873_v15  ;;  %v155_v40 = vcombine.high %v153_v31, %v153_v31  ;;  %v219_v41 = vshrl.u32 %v153_v31, 16  ;;  %v222_v42 = vshll.u32 %v153_v31, 16 }
   0xb   :  { %v211_v19 = vshrl.u32 %v154_v18, 16  ;;  %v214_v20 = vshll.u32 %v154_v18, 16  ;;  %v205_v32 = vrot.slane %v203_v26, 6  ;;  %v208_v33 = vrot.slane %v206_v27, 7 }
   0xc   :  { %v227_v43 = vshrl.u32 %v155_v40, 16  ;;  %v230_v44 = vshll.u32 %v155_v40, 16  ;;  %v221_v47 = vrot.slane %v219_v41, 6  ;;  %v224_v48 = vrot.slane %v222_v42, 7 }
   0xd   :  { %103 = vrot.lane.b32.xlu0 %v873_v15, %s805_s27  ;;  %60 = vrot.lane.b32.xlu1 %v49_v16, %s805_s27  ;;  %v213_v24 = vrot.slane %v211_v19, 6  ;;  %v216_v25 = vrot.slane %v214_v20, 7  ;;  %v209_v36 = vor.u32 %v208_v33, %v205_v32  ;;  %v935_v58 = vsel %vm887_vm2, %v758_v53, %v241_v51 }
   0xe   :  { %v229_v49 = vrot.slane %v227_v43, 6  ;;  %v232_v50 = vrot.slane %v230_v44, 7  ;;  %v225_v52 = vor.u32 %v224_v48, %v221_v47  ;;  %v940_v59 = vcombine.high %v859_v11, %v859_v11 }
   0xf   :  { %v217_v29 = vor.u32 %v216_v25, %v213_v24  ;;  %v911_v39 = vsel %vm887_vm2, %v862_v12, %v209_v36  ;;  %v50_v61 = vcombine.high %v865_v13, %v865_v13  ;;  %v950_v62 = vrot.slane %v802_v54, %v853_v9 }
  0x10   :  { %v928_v55 = vsel %vm887_vm2, %v865_v13, %v225_v52  ;;  %v233_v57 = vor.u32 %v232_v50, %v229_v49  ;;  %v262_v3 = vshrl.u32 %v885_v22, 16  ;;  %v265_v4 = vshll.u32 %v885_v22, 16 }
  0x11   :  { %105 = vrot.lane.b32.xlu0 %v885_v22, %s805_s27  ;;  %165 = vrot.lane.b32.xlu1 %v154_v18, %s806_s30  ;;  %v900_v34 = vsel %vm887_vm2, %v49_v16, %v217_v29  ;;  %v254_v17 = vshrl.u32 %v873_v15, 16  ;;  %v257_v18 = vshll.u32 %v873_v15, 16  ;;  %vm479_vm9 = vcmask 1047552  }
  0x12   :  { %v954_v63 = vsel %vm887_vm2, %v50_v61, %v233_v57  ;;  %v264_v7 = vrot.slane %v262_v3, 3  ;;  %v267_v8 = vrot.slane %v265_v4, 4  ;;  %vm480_vm10 = vsmask.f32 7424 }
  0x13   :  { %v256_v25 = vrot.slane %v254_v17, 3  ;;  %v259_v26 = vrot.slane %v257_v18, 4  ;;  %vm129_vm11 = vcmask 908288   ;;  %vm1001_vm12 = vmand %vm479_vm9, %vm480_vm10  ;;  %v286_v37 = vshrl.u32 %v945_v60, 16 }
  0x14   :  { %v315_v41 = vcombine.low %v892_v30, %v892_v30  ;;  %v289_v47 = vshll.u32 %v945_v60, 16  ;;  %vm487_vm13 = vcmask 1040384   ;;  %vm189_vm14 = vcmask 900096  }
  0x15   :  { %167 = vrot.lane.b32.xlu0 %v153_v31, %s806_s30  ;;  %58 = vrot.lane.b32.xlu1 %v862_v12, %s805_s27  ;;  %v260_v36 = vor.u32 %v259_v26, %v256_v25  ;;  %v1019_v50 = vrot.slane %v286_v37, 3  ;;  %vm509_vm15 = vsmask.f32 2304  ;;  %v809_v0 = vmov 65535  }
  0x16   :  { %vm1042_vm0 = vmand %vm429_vm6, %vm509_vm15  ;;  %vm516_vm1 = vcmask 1043456   ;;  %vm73_vm2 = vcmask 531456   ;;  %vm551_vm5 = vcmask 220160   ;;  %vm194_vm9 = vcmask 392192  }
  0x19   :  { %163 = vrot.lane.b32.xlu0 %v146_v14, %s806_s30  ;;  %121 = vrot.lane.b32.xlu1 %v49_v16, %s806_s30 }
  0x1d   :  { %123 = vrot.lane.b32.xlu0 %v865_v13, %s806_s30  ;;  %119 = vrot.lane.b32.xlu1 %v862_v12, %s806_s30 }
  0x21   :  { %181 = vrot.lane.b32.xlu0 %v49_v16, %s807_s12  ;;  %183 = vrot.lane.b32.xlu1 %v865_v13, %s807_s12  ;;  %v268_v13 = vor.u32 %v267_v8, %v264_v7  ;;  %v278_v8 = vshrl.u32 %v940_v59, 16 }
  0x25   :  { %109 = vrot.lane.b32.xlu0 %v940_v59, %s805_s27  ;;  %111 = vrot.lane.b32.xlu1 %v945_v60, %s805_s27 }
  0x29   :  { %179 = vrot.lane.b32.xlu0 %v862_v12, %s807_s12  ;;  %64 = vrot.lane.b32.xlu1 %v50_v61, %s805_s27 }
  0x2d   :  { %66 = vrot.lane.b32.xlu0 %v758_v53, %s805_s27  ;;  %169 = vrot.lane.b32.xlu1 %v155_v40, %s806_s30 }
  0x31   :  { %171 = vrot.lane.b32.xlu0 %v760_v35, %s806_s30  ;;  %125 = vrot.lane.b32.xlu1 %v50_v61, %s806_s30 }
  0x35   :  { %127 = vrot.lane.b32.xlu0 %v758_v53, %s806_s30  ;;  %185 = vrot.lane.b32.xlu1 %v50_v61, %s807_s12 }
  0x39   :  { %187 = vrot.lane.b32.xlu0 %v758_v53, %s807_s12  ;;  %538 = vperm.xlu1 %796, %v534_v1   ;;  %v556_v1 = vsel %vm450_vm4, 4294967295, %v809_v0  ;;  %vm134_vm4 = vcmask 400384  }
  0x3d   :  { %543 = vperm.xlu0 %797, %v535_v2  }
  0x7b   :  { %v975_v5 = vpop.permute.xlu0 %107  ;;  %v977_v6 = vpop.permute.xlu1 %62 }
  0x7f   :  { %v104_v9 = vpop.permute.xlu0 %103  ;;  %v61_v10 = vpop.permute.xlu1 %60 }
  0x80   :  { %v70_v12 = vsel %vm68_vm3, %v61_v10, %v977_v6 }
  0x81   :  { %v249_v14 = vrot.slane %v70_v12, 5  ;;  %v273_v12 = vshll.u32 %v859_v11, 16 }
  0x83   :  { %v106_v19 = vpop.permute.xlu0 %105  ;;  %v166_v20 = vpop.permute.xlu1 %165  ;;  %v436_v21 = vsel %vm429_vm6, %v900_v34, %v249_v14 }
  0x84   :  { %v114_v22 = vsel %vm68_vm3, %v106_v19, %v975_v5  ;;  %v454_v23 = vsel %vm982_vm7, %v436_v21, %v268_v13  ;;  %v995_v27 = vsel %vm68_vm3, %v104_v9, %v106_v19  ;;  %v1031_v9 = vrot.slane %v289_v47, 4 }
  0x85   :  { %v331_v24 = vshll.u32 %v114_v22, 16  ;;  %v465_v15 = vsel %vm458_vm8, %v454_v23, %v892_v30  ;;  %v327_v34 = vshll.u32 %v995_v27, 16  ;;  %v348_v52 = vshrl.u32 %v114_v22, 16 }
  0x86   :  { %v281_v13 = vshll.u32 %v940_v59, 16  ;;  %v1049_v59 = vsel %vm458_vm8, %v556_v1, 0  ;;  %v345_v22 = vshrl.u32 %v995_v27, 16 }
  0x87   :  { %v333_v28 = vrot.slane %v331_v24, 1  ;;  %v999_v29 = vpop.permute.xlu0 %167  ;;  %v59_v31 = vpop.permute.xlu1 %58  ;;  %v329_v48 = vrot.slane %v327_v34, 1 }
  0x88   :  { %v69_v33 = vsel %vm68_vm3, %v59_v31, %v61_v10  ;;  %v174_v35 = vsel %vm129_vm11, %v166_v20, %v999_v29  ;;  %v270_v10 = vshrl.u32 %v859_v11, 16  ;;  %v275_v31 = vrot.slane %v273_v12, 4 }
  0x89   :  { %v248_v38 = vrot.slane %v69_v33, 5  ;;  %v483_v40 = vsel %vm1001_vm12, %v465_v15, %v333_v28  ;;  %v380_v44 = vshrl.u32 %v174_v35, 16  ;;  %v383_v45 = vshll.u32 %v174_v35, 16 }
  0x8a   :  { %568 = vmatprep.subr.bf16.mxu0 %v483_v40  ;;  %v350_v2 = vor.u32 %v348_v52, %v333_v28  ;;  %v272_v28 = vrot.slane %v270_v10, 3  ;;  %v1054_v33 = vrot.slane %v278_v8, 3  ;;  %v1056_v34 = vrot.slane %v281_v13, 4 }
  0x8b   :  { %v164_v42 = vpop.permute.xlu0 %163  ;;  %v122_v43 = vpop.permute.xlu1 %121  ;;  %v432_v46 = vsel %vm429_vm6, %v911_v39, %v248_v38  ;;  %v382_v57 = vrot.slane %v380_v44, 5  ;;  %v385_v60 = vrot.slane %v383_v45, 6  ;;  %v347_v35 = vor.u32 %v345_v22, %v329_v48 }
  0x8c   :  { %v453_v49 = vsel %vm982_vm7, %v432_v46, %v260_v36  ;;  %v173_v51 = vsel %vm129_vm11, %v164_v42, %v166_v20  ;;  %v284_v52 = vor.u32 %v1056_v34, %v1054_v33 }
  0x8d   :  { %v461_v30 = vsel %vm458_vm8, %v453_v49, %v315_v41  ;;  %v372_v3 = vshrl.u32 %v173_v51, 16  ;;  %v375_v4 = vshll.u32 %v173_v51, 16  ;;  %v386_v21 = vor.u32 %v385_v60, %v382_v57 }
  0x8e   :  { %v482_v54 = vsel %vm1001_vm12, %v461_v30, %v329_v48  ;;  %v276_v49 = vor.u32 %v275_v31, %v272_v28  ;;  %v325_v60 = vcombine.low %v950_v62, %v950_v62 }
  0x8f   :  { %v1023_v53 = vpop.permute.xlu0 %123  ;;  %v120_v39 = vpop.permute.xlu1 %119  ;;  %569 = vmatpush1.bf16.msra.mxu0 %v482_v54  ;;  %v374_v23 = vrot.slane %v372_v3, 5  ;;  %v377_v24 = vrot.slane %v375_v4, 6  ;;  %v316_v54 = vcombine.low %v931_v56, %v931_v56 }
  0x90   :  { %v131_v61 = vsel %vm129_vm11, %v122_v43, %v1023_v53  ;;  %v130_v17 = vsel %vm129_vm11, %v120_v39, %v122_v43  ;;  %v292_v43 = vor.u32 %v1031_v9, %v1019_v50 }
  0x91   :  { %v367_v7 = vrot.slane %v131_v61, 7  ;;  %v366_v26 = vrot.slane %v130_v17, 7  ;;  %v378_v44 = vor.u32 %v377_v24, %v374_v23 }
  0x93   :  { %v494_v14 = vsel %vm487_vm13, %v350_v2, %v367_v7  ;;  %v182_v18 = vpop.permute.xlu0 %181  ;;  %v1038_v19 = vpop.permute.xlu1 %183  ;;  %v490_v46 = vsel %vm487_vm13, %v347_v35, %v366_v26  ;;  %v1099_v35 = vld [vmem:[%s1181_s0] sm:$0xff]  }
  0x94   :  { %v191_v11 = vsel %vm189_vm14, %v182_v18, %v1038_v19  ;;  %v512_v15 = vsel %vm1042_vm0, %v494_v14, %v386_v21  ;;  %v511_v1 = vsel %vm1042_vm0, %v490_v46, %v378_v44 }
  0x95   :  { %v417_v25 = vrot.slane %v191_v11, 4 }
  0x97   :  { %v110_v36 = vpop.permute.xlu0 %109  ;;  %v112_v37 = vpop.permute.xlu1 %111  ;;  %v522_v38 = vsel %vm516_vm1, %v512_v15, %v417_v25 }
  0x98   :  { %v115_v27 = vsel %vm68_vm3, %v975_v5, %v110_v36  ;;  %v116_v40 = vsel %vm68_vm3, %v110_v36, %v112_v37  ;;  %v118_v41 = vsel %vm73_vm2, %v112_v37, 0  ;;  %v560_v42 = vand.u32 %v1049_v59, %v522_v38 }
  0x99   :  { %v335_v45 = vshll.u32 %v115_v27, 16  ;;  %v339_v47 = vshll.u32 %v116_v40, 16  ;;  %v342_v48 = vshll.u32 %v118_v41, 16  ;;  %v351_v61 = vshrl.u32 %v115_v27, 16 }
  0x9a   :  { %570 = vmatprep.subr.bf16.mxu0 %v560_v42  ;;  %v357_v4 = vshrl.u32 %v118_v41, 16  ;;  %v354_v10 = vshrl.u32 %v116_v40, 16 }
  0x9b   :  { %v1067_v51 = vrot.slane %v335_v45, 1  ;;  %v180_v5 = vpop.permute.xlu0 %179  ;;  %v65_v30 = vpop.permute.xlu1 %64  ;;  %v341_v2 = vrot.slane %v339_v47, 1  ;;  %v1080_v3 = vrot.slane %v342_v48, 1  ;;  %v810_v45 = vmov 0.0  }
  0x9c   :  { %v190_v39 = vsel %vm189_vm14, %v180_v5, %v182_v18  ;;  %v71_v57 = vsel %vm68_vm3, %v977_v6, %v65_v30 }
  0x9d   :  { %v416_v0 = vrot.slane %v190_v39, 4  ;;  %v250_v7 = vrot.slane %v71_v57, 5  ;;  %v353_v8 = vor.u32 %v351_v61, %v1067_v51  ;;  %v356_v25 = vor.u32 %v354_v10, %v341_v2 }
  0x9e   :  { %v359_v26 = vor.u32 %v357_v4, %v1080_v3 }
  0x9f   :  { %v67_v12 = vpop.permute.xlu0 %66  ;;  %v170_v13 = vpop.permute.xlu1 %169  ;;  %v519_v6 = vsel %vm516_vm1, %v511_v1, %v416_v0  ;;  %v440_v14 = vsel %vm429_vm6, %v928_v55, %v250_v7 }
  0xa0   :  { %v72_v17 = vsel %vm68_vm3, %v65_v30, %v67_v12  ;;  %v76_v18 = vsel %vm73_vm2, %v67_v12, 0  ;;  %v175_v21 = vsel %vm129_vm11, %v999_v29, %v170_v13  ;;  %v558_v15 = vand.u32 %v1049_v59, %v519_v6 }
  0xa1   :  { %v251_v11 = vrot.slane %v72_v17, 5  ;;  %v252_v22 = vrot.slane %v76_v18, 5  ;;  %v388_v23 = vshrl.u32 %v175_v21, 16  ;;  %v391_v24 = vshll.u32 %v175_v21, 16 }
  0xa2   :  { %v455_v55 = vsel %vm982_vm7, %v440_v14, %v276_v49  ;;  %571 = vmatpush1.bf16.msra.mxu0 %v558_v15  ;;  %vm811_vm3 = vmmov 0  }
  0xa3   :  { %v448_v28 = vsel %vm429_vm6, %v935_v58, %v252_v22  ;;  %v390_v31 = vrot.slane %v388_v23, 5  ;;  %v393_v33 = vrot.slane %v391_v24, 6  ;;  %v172_v34 = vpop.permute.xlu0 %171  ;;  %v126_v29 = vpop.permute.xlu1 %125  ;;  %v444_v36 = vsel %vm429_vm6, %v954_v63, %v251_v11  ;;  %780 = vmatprep.subr.bf16.mxu0 %v810_v45 }
  0xa4   :  { %v176_v37 = vsel %vm129_vm11, %v170_v13, %v172_v34  ;;  %v178_v38 = vsel %vm134_vm4, %v172_v34, 0  ;;  %v132_v58 = vsel %vm129_vm11, %v1023_v53, %v126_v29  ;;  %v456_v27 = vsel %vm982_vm7, %v444_v36, %v284_v52 }
  0xa5   :  { %v394_v40 = vor.u32 %v393_v33, %v390_v31  ;;  %v396_v41 = vshrl.u32 %v176_v37, 16  ;;  %v399_v42 = vshll.u32 %v176_v37, 16  ;;  %v403_v44 = vshrl.u32 %v178_v38, 16  ;;  %762 = vmatmul.mubr.msk.bf16.vlgmr.msra.gmra.mrb[0].mxu0 %vm551_vm5, %v1099_v35 }
  0xa6   :  { %v406_v46 = vshll.u32 %v178_v38, 16  ;;  %v368_v47 = vrot.slane %v132_v58, 7  ;;  %v473_v63 = vsel %vm458_vm8, %v456_v27, %v931_v56  ;;  %v457_v53 = vsel %vm982_vm7, %v448_v28, %v292_v43  ;;  %784 = vmatprep.mubr.msk.bf16.mxu0 %vm811_vm3, %v810_v45 }
  0xa7   :  { %v398_v48 = vrot.slane %v396_v41, 5  ;;  %v401_v49 = vrot.slane %v399_v42, 6  ;;  %v405_v5 = vrot.slane %v403_v44, 5  ;;  %v128_v30 = vpop.permute.xlu0 %127  ;;  %v186_v52 = vpop.permute.xlu1 %185  ;;  %v485_v39 = vsel %vm1001_vm12, %v473_v63, %v341_v2 }
  0xa8   :  { %v408_v57 = vrot.slane %v406_v46, 6  ;;  %v498_v61 = vsel %vm487_vm13, %v353_v8, %v368_v47  ;;  %v133_v0 = vsel %vm129_vm11, %v126_v29, %v128_v30  ;;  %v136_v50 = vsel %vm134_vm4, %v128_v30, 0  ;;  %611 = vmatprep.subr.bf16.mxu1 %v485_v39 }
  0xa9   :  { %v402_v16 = vor.u32 %v401_v49, %v398_v48  ;;  %v369_v9 = vrot.slane %v133_v0, 7  ;;  %v370_v43 = vrot.slane %v136_v50, 7  ;;  %v192_v1 = vsel %vm189_vm14, %v1038_v19, %v186_v52 }
  0xaa   :  { %v409_v4 = vor.u32 %v408_v57, %v405_v5  ;;  %v418_v7 = vrot.slane %v192_v1, 4  ;;  %v477_v2 = vsel %vm458_vm8, %v457_v53, %v325_v60  ;;  %v469_v8 = vsel %vm458_vm8, %v455_v55, %v316_v54 }
  0xab   :  { %v502_v10 = vsel %vm487_vm13, %v356_v25, %v369_v9  ;;  %v506_v12 = vsel %vm487_vm13, %v359_v26, %v370_v43  ;;  %v486_v19 = vsel %vm1001_vm12, %v477_v2, %v1080_v3  ;;  %v484_v13 = vsel %vm1001_vm12, %v469_v8, %v1067_v51  ;;  %v188_v62 = vpop.permute.xlu0 %187 }
  0xac   :  { %781 = vmatpush3.bf16.msra.mxu0 %v486_v19  ;;  %612 = vmatpush1.bf16.msra.mxu1 %v484_v13  ;;  %v193_v60 = vsel %vm189_vm14, %v186_v52, %v188_v62  ;;  %v196_v56 = vsel %vm194_vm9, %v188_v62, 0  ;;  %v513_v14 = vsel %vm1042_vm0, %v498_v61, %v394_v40  ;;  %v515_v3 = vsel %vm1042_vm0, %v506_v12, %v409_v4 }
  0xad   :  { %v419_v54 = vrot.slane %v193_v60, 4  ;;  %v420_v6 = vrot.slane %v196_v56, 4  ;;  %782 = vmatprep.subr.bf16.mxu0 %v810_v45  ;;  %v514_v32 = vsel %vm1042_vm0, %v502_v10, %v402_v16  ;;  %v525_v51 = vsel %vm516_vm1, %v513_v14, %v418_v7 }
  0xae   :  { %v562_v22 = vand.u32 %v1049_v59, %v525_v51  ;;  %vm749_vm6 = vcmask 535552  }
  0xaf   :  { %v531_v17 = vsel %vm516_vm1, %v515_v3, %v420_v6  ;;  %v528_v18 = vsel %vm516_vm1, %v514_v32, %v419_v54 }
  0xb0   :  { %v564_v21 = vand.u32 %v1049_v59, %v528_v18  ;;  %v566_v11 = vand.u32 %v1049_v59, %v531_v17 }
  0xb2   :  { %613 = vmatprep.subr.bf16.mxu1 %v564_v21  ;;  %783 = vmatpush3.bf16.msra.mxu0 %v566_v11 }
  0xb3   :  { %614 = vmatpush1.bf16.msra.mxu1 %v562_v22 }
  0xb5   :  { %785 = vmatmul.mubr.msk.bf16.vlgmr.msra.gmra.mrb[4].mxu0 %vm551_vm5, %v1099_v35 }
  0xb6   :  { %763 = vmatmul.mubr.msk.bf16.vlgmr.msra.gmra.mrb[0].mxu1 %vm551_vm5, %v1099_v35 }
  0xb8   :  { %v539_v20 = vpop.permute.xlu1 %538 }
  0xbc   :  { %v544_v24 = vpop.permute.xlu0 %543 }
 0x178   :  { %v602_v23 = vpop.f32.mrb[0].mxu0 }
 0x179   :  { %v604_v25 = vpop.f32.mrb[1].mxu0  ;;  %v603_v26 = vadd.f32 %v602_v23, %v539_v20 }
 0x17a   :  { %v606_v15 = vpop.f32.mrb[2].mxu0  ;;  %v605_v55 = vadd.f32 %v604_v25, %v539_v20 }
 0x17b   :  { %v607_v28 = vadd.f32 %v606_v15, %v544_v24  ;;  %v695_v31 = vmul.f32 0.2, %v603_v26  ;;  %v608_v33 = vpop.f32.mrb[3].mxu0 }
 0x17c   :  { %v696_v59 = vmul.f32 0.2, %v605_v55  ;;  %v609_v34 = vadd.f32 %v608_v33, %v544_v24 }
 0x17d   :  { %v700_v29 = vmul.f32 0.2, %v607_v28  ;;  %v705_v36 = vmax.f32 %v603_v26, %v695_v31 }
 0x17e   :  { %v706_v37 = vmax.f32 %v605_v55, %v696_v59  ;;  %v701_v38 = vmul.f32 0.2, %v609_v34 }
 0x17f   :  { %v710_v58 = vmax.f32 %v607_v28, %v700_v29 }
 0x180   :  { %v771_v27 = vpack.c.bf16 %v706_v37, %v705_v36  ;;  %v711_v40 = vmax.f32 %v609_v34, %v701_v38 }
 0x182   :  { %747 = vst [vmem:[%s1183_s6] sm:$0xff] %v771_v27  ;;  %v774_v35 = vpack.c.bf16 %v711_v40, %v710_v58 }
 0x184   :  { %751 = vst [vmem:[%s1183_s6 + $0x14] sm:$0xff] %v774_v35 }
 0x188   :  { %v688_v41 = vpop.f32.mrb[4].mxu0 }
 0x189   :  { %v689_v42 = vadd.f32 %v688_v41, %v539_v20  ;;  %v645_v44 = vpop.f32.mrb[0].mxu1  ;;  %v786_v45 = vpop.f32.mrb[5].mxu0 }
 0x18a   :  { %v646_v46 = vadd.f32 %v645_v44, %v539_v20  ;;  %v647_v47 = vpop.f32.mrb[1].mxu1  ;;  %v691_v63 = vpop.f32.mrb[6].mxu0 }
 0x18b   :  { %v699_v53 = vmul.f32 0.2, %v689_v42  ;;  %v648_v48 = vadd.f32 %v647_v47, %v539_v20  ;;  %v692_v49 = vadd.f32 %v691_v63, %v544_v24  ;;  %v649_v5 = vpop.f32.mrb[2].mxu1  ;;  %v787_v30 = vpop.f32.mrb[7].mxu0 }
 0x18c   :  { %v697_v52 = vmul.f32 0.2, %v646_v46  ;;  %v650_v39 = vadd.f32 %v649_v5, %v544_v24  ;;  %v651_v57 = vpop.f32.mrb[3].mxu1 }
 0x18d   :  { %v709_v61 = vmax.f32 %v689_v42, %v699_v53  ;;  %v698_v0 = vmul.f32 0.2, %v648_v48  ;;  %v704_v50 = vmul.f32 0.2, %v692_v49  ;;  %v652_v16 = vadd.f32 %v651_v57, %v544_v24 }
 0x18e   :  { %v707_v9 = vmax.f32 %v646_v46, %v697_v52  ;;  %v702_v43 = vmul.f32 0.2, %v650_v39 }
 0x18f   :  { %v773_v1 = vpack.c.bf16 %v709_v61, %v709_v61  ;;  %v708_v4 = vmax.f32 %v648_v48, %v698_v0  ;;  %v714_v7 = vmax.f32 %v692_v49, %v704_v50  ;;  %v703_v2 = vmul.f32 0.2, %v652_v16 }
 0x190   :  { %v712_v8 = vmax.f32 %v650_v39, %v702_v43 }
 0x191   :  { %750 = vst.msk [vmem:[%s1183_s6 + $0x10] sm:$0xf] %vm749_vm6, %v773_v1  ;;  %v772_v10 = vpack.c.bf16 %v708_v4, %v707_v9  ;;  %v776_v12 = vpack.c.bf16 %v714_v7, %v714_v7  ;;  %v713_v19 = vmax.f32 %v652_v16, %v703_v2 }
 0x193   :  { %748 = vst [vmem:[%s1183_s6 + $0x8] sm:$0xff] %v772_v10  ;;  %753 = vst.msk [vmem:[%s1183_s6 + $0x24] sm:$0xf] %vm749_vm6, %v776_v12  ;;  %v775_v13 = vpack.c.bf16 %v713_v19, %v712_v8 }
 0x195   :  { %752 = vst [vmem:[%s1183_s6 + $0x1c] sm:$0xff] %v775_v13 }

// kernel: discriminator_forward.6
= control target key start
LH: loop header
LB: loop body
LE: loop exit
PB: predicated region body
PF: predicated region fallthrough
CT: control target
= control target key end

     0   :  { %s536_s13 = smov 127   ;;  %s537_s21 = smov 119   ;;  %vm179_vm0 = vcmask 130048   ;;  %v539_v8 = vmov 0   ;;  %vm56_vm1 = vcmask 269312   ;;  %vm53_vm2 = vcmask 1039360   ;;  %s783_s1 = inlined_call_operand.vmem [shape: bf16[16,162], index: 1, kind: input, shape index: {}]   ;;  %s784_s3 = inlined_call_operand.vmem [shape: bf16[16,162], index: 3, kind: input, shape index: {}]   ;;  %s785_s2 = inlined_call_operand.vmem [shape: bf16[16,162], index: 2, kind: input, shape index: {}]   ;;  %s786_s4 = inlined_call_operand.vmem [shape: bf16[16,162], index: 4, kind: input, shape index: {}]   ;;  %s787_s0 = inlined_call_operand.vmem [shape: bf16[32,144], index: 0, kind: input, shape index: {}]   ;;  %s788_s5 = inlined_call_operand.vmem [shape: f32[32,1], index: 5, kind: input, shape index: {}]   ;;  %s789_s8 = inlined_call_operand.vmem [shape: f32[1,162], index: 8, kind: input, shape index: {}]   ;;  %s790_s6 = inlined_call_operand.vmem [shape: f32[32,1], index: 6, kind: input, shape index: {}]   ;;  %s791_s7 = inlined_call_operand.vmem [shape: f32[32,1], index: 7, kind: input, shape index: {}]   ;;  %s792_s9 = inlined_call_operand.vmem [shape: bf16[32,162], index: 9, kind: output, shape index: {}]  }
   0x1   :  { %v510_v0 = vld [vmem:[%s783_s1] ss:$8 sps:$4 sm:$0xff]   ;;  %v512_v1 = vld [vmem:[%s783_s1 + $0x4] ss:$8 sps:$4 sm:$0xff]   ;;  %s538_s22 = smov 118   ;;  %509 = vset.pattern.permute.xlu1 %v539_v8  ;;  %508 = vset.pattern.permute.xlu0 %v539_v8  ;;  %v139_v11 = vld [vmem:[%s788_s5 + $0x10] sm:$0xff]  ;;  %v257_v32 = vlaneseq }
   0x2   :  { %49 = vrot.lane.b32.xlu0 %v510_v0, %s536_s13  ;;  %v513_v2 = vld [vmem:[%s784_s3] ss:$8 sps:$4 sm:$0xff]   ;;  %v516_v3 = vld [vmem:[%s785_s2 + $0x4] ss:$8 sps:$4 sm:$0xff]   ;;  %186 = vmatprep.subr.bf16.mxu0 %v512_v1  ;;  %v527_v7 = vld [vmem:[%s787_s0 + $0x14] ss:$8 sps:$4 sm:$0xff]  }
   0x3   :  { %486 = vmatprep.subr.bf16.mxu1 %v512_v1  ;;  %69 = vrot.lane.b32.xlu1 %v513_v2, %s536_s13  ;;  %v515_v4 = vld [vmem:[%s784_s3 + $0x4] ss:$8 sps:$4 sm:$0xff]   ;;  %v518_v5 = vld [vmem:[%s785_s2] ss:$8 sps:$4 sm:$0xff]   ;;  %v140_v12 = vld [vmem:[%s788_s5 + $0x18] sm:$0xff]  ;;  %vm85_vm3 = vcmask 203776  }
   0x4   :  { %187 = vmatpush1.bf16.msra.mxu0 %v510_v0  ;;  %495 = vmatpush1.bf16.msra.mxu1 %v510_v0  ;;  %v524_v6 = vld [vmem:[%s787_s0 + $0x4] ss:$8 sps:$4 sm:$0xff]   ;;  %v521_v19 = vld [vmem:[%s786_s4] ss:$8 sps:$4 sm:$0xff]   ;;  %vm82_vm4 = vcmask 973824   ;;  %vm113_vm5 = vcmask 195584  }
   0x5   :  { %188 = vmatprep.subr.bf16.mxu0 %v516_v3  ;;  %487 = vmatprep.subr.bf16.mxu1 %v516_v3  ;;  %v138_v9 = vld [vmem:[%s788_s5 + $0x8] sm:$0xff]  ;;  %v137_v10 = vld [vmem:[%s788_s5] sm:$0xff]  ;;  %vm110_vm6 = vcmask 965632   ;;  %v525_v31 = vld [vmem:[%s787_s0 + $0x10] ss:$8 sps:$4 sm:$0xff]   ;;  %v258_v35 = vshrl.u32 %v257_v32, 7 }
   0x6   :  { %51 = vrot.lane.b32.xlu0 %v512_v1, %s536_s13  ;;  %476 = vmatprep.mubr.msk.bf16.mxu0 %vm179_vm0, %v524_v6  ;;  %v519_v17 = vld [vmem:[%s786_s4 + $0x4] ss:$8 sps:$4 sm:$0xff]   ;;  %v522_v30 = vld [vmem:[%s787_s0] ss:$8 sps:$4 sm:$0xff]   ;;  %vm275_vm7 = vcmask 277504   ;;  %vm448_vm8 = vcmask 1043456  }
   0x7   :  { %71 = vrot.lane.b32.xlu1 %v515_v4, %s536_s13  ;;  %477 = vmatprep.mubr.msk.bf16.mxu1 %vm179_vm0, %v527_v7  ;;  %v259_v37 = vsub.s32 0, %v258_v35  ;;  %v255_v39 = vld [vmem:[%s789_s8] sm:$0x3]  ;;  %v263_v40 = vsub.s32 1, %v258_v35  ;;  %vm449_vm9 = vcmask 277508  }
   0x8   :  { %189 = vmatpush1.bf16.msra.mxu0 %v518_v5  ;;  %496 = vmatpush1.bf16.msra.mxu1 %v518_v5  ;;  %vm757_vm10 = vmor %vm449_vm9, %vm448_vm8 }
   0x9   :  { %v647_v51 = vrot.slane %v255_v39, %v259_v37  ;;  %v649_v57 = vrot.slane %v255_v39, %v263_v40 }
   0xa   :  { %78 = vrot.lane.b32.xlu0 %v510_v0, %s537_s21 }
   0xb   :  { %80 = vrot.lane.b32.xlu1 %v512_v1, %s537_s21 }
   0xe   :  { %97 = vrot.lane.b32.xlu0 %v518_v5, %s537_s21 }
   0xf   :  { %99 = vrot.lane.b32.xlu1 %v516_v3, %s537_s21 }
  0x12   :  { %106 = vrot.lane.b32.xlu0 %v510_v0, %s538_s22 }
  0x13   :  { %108 = vrot.lane.b32.xlu1 %v512_v1, %s538_s22 }
  0x16   :  { %143 = vperm.xlu0 %508, %v137_v10  }
  0x17   :  { %148 = vperm.xlu1 %509, %v138_v9  }
  0x1a   :  { %158 = vperm.xlu0 %508, %v140_v12  }
  0x1b   :  { %153 = vperm.xlu1 %509, %v139_v11  }
  0x74   :  { %v50_v13 = vpop.permute.xlu0 %49 }
  0x75   :  { %v70_v14 = vpop.permute.xlu1 %69 }
  0x78   :  { %v52_v15 = vpop.permute.xlu0 %51 }
  0x79   :  { %471 = vmatprep.subr.msk.bf16.mxu0 %vm56_vm1, %v52_v15  ;;  %488 = vmatprep.subr.msk.bf16.mxu1 %vm56_vm1, %v52_v15  ;;  %v54_v16 = vsel %vm53_vm2, %v50_v13, %v52_v15  ;;  %v72_v18 = vpop.permute.xlu1 %71 }
  0x7a   :  { %191 = vmatpush1.bf16.msra.mxu0 %v54_v16  ;;  %497 = vmatpush1.bf16.msra.mxu1 %v54_v16  ;;  %v73_v22 = vsel %vm53_vm2, %v70_v14, %v72_v18 }
  0x7b   :  { %192 = vmatprep.subr.bf16.mxu0 %v515_v4  ;;  %489 = vmatprep.subr.bf16.mxu1 %v515_v4 }
  0x7c   :  { %v79_v21 = vpop.permute.xlu0 %78 }
  0x7d   :  { %v81_v20 = vpop.permute.xlu1 %80 }
  0x7e   :  { %193 = vmatpush1.bf16.msra.mxu0 %v513_v2  ;;  %498 = vmatpush1.bf16.msra.mxu1 %v513_v2  ;;  %v83_v25 = vsel %vm82_vm4, %v79_v21, %v81_v20 }
  0x7f   :  { %194 = vmatprep.subr.bf16.mxu0 %v519_v17  ;;  %490 = vmatprep.subr.bf16.mxu1 %v519_v17 }
  0x80   :  { %v98_v24 = vpop.permute.xlu0 %97 }
  0x81   :  { %v100_v23 = vpop.permute.xlu1 %99 }
  0x82   :  { %195 = vmatpush1.bf16.msra.mxu0 %v521_v19  ;;  %499 = vmatpush1.bf16.msra.mxu1 %v521_v19  ;;  %v101_v26 = vsel %vm82_vm4, %v98_v24, %v100_v23 }
  0x83   :  { %472 = vmatprep.subr.msk.bf16.mxu0 %vm56_vm1, %v72_v18  ;;  %491 = vmatprep.subr.msk.bf16.mxu1 %vm56_vm1, %v72_v18 }
  0x84   :  { %v107_v28 = vpop.permute.xlu0 %106 }
  0x85   :  { %v109_v27 = vpop.permute.xlu1 %108 }
  0x86   :  { %197 = vmatpush1.bf16.msra.mxu0 %v73_v22  ;;  %500 = vmatpush1.bf16.msra.mxu1 %v73_v22  ;;  %v111_v29 = vsel %vm110_vm6, %v107_v28, %v109_v27 }
  0x87   :  { %473 = vmatprep.subr.msk.bf16.mxu0 %vm85_vm3, %v81_v20  ;;  %492 = vmatprep.subr.msk.bf16.mxu1 %vm85_vm3, %v81_v20 }
  0x8a   :  { %199 = vmatpush1.bf16.msra.mxu0 %v83_v25  ;;  %501 = vmatpush1.bf16.msra.mxu1 %v83_v25 }
  0x8b   :  { %474 = vmatprep.subr.msk.bf16.mxu0 %vm85_vm3, %v100_v23  ;;  %493 = vmatprep.subr.msk.bf16.mxu1 %vm85_vm3, %v100_v23 }
  0x8e   :  { %201 = vmatpush1.bf16.msra.mxu0 %v101_v26  ;;  %502 = vmatpush1.bf16.msra.mxu1 %v101_v26 }
  0x8f   :  { %475 = vmatprep.subr.msk.bf16.mxu0 %vm113_vm5, %v109_v27  ;;  %494 = vmatprep.subr.msk.bf16.mxu1 %vm113_vm5, %v109_v27 }
  0x92   :  { %203 = vmatpush1.bf16.msra.mxu0 %v111_v29  ;;  %503 = vmatpush1.bf16.msra.mxu1 %v111_v29 }
  0x95   :  { %219 = vmatmul.mubr.bf16.vlgmr.msra.gmra.mrb[0].mxu0 %v522_v30  ;;  %229 = vmatmul.mubr.bf16.vlgmr.msra.gmra.mrb[0].mxu1 %v525_v31  ;;  %v144_v34 = vpop.permute.xlu0 %143 }
  0x96   :  { %v149_v33 = vpop.permute.xlu1 %148 }
  0x99   :  { %v159_v38 = vpop.permute.xlu0 %158 }
  0x9a   :  { %v154_v36 = vpop.permute.xlu1 %153 }
 0x168   :  { %v220_v41 = vpop.f32.mrb[0].mxu0  ;;  %v230_v42 = vpop.f32.mrb[0].mxu1 }
 0x169   :  { %v221_v43 = vadd.f32 %v220_v41, %v144_v34  ;;  %v231_v44 = vadd.f32 %v230_v42, %v154_v36  ;;  %v222_v45 = vpop.f32.mrb[1].mxu0  ;;  %v232_v46 = vpop.f32.mrb[1].mxu1 }
 0x16a   :  { %v223_v47 = vadd.f32 %v222_v45, %v144_v34  ;;  %v233_v48 = vadd.f32 %v232_v46, %v154_v36  ;;  %v224_v49 = vpop.f32.mrb[2].mxu0  ;;  %v234_v50 = vpop.f32.mrb[2].mxu1 }
 0x16b   :  { %v239_v52 = vmul.f32 0.2, %v221_v43  ;;  %v225_v53 = vadd.f32 %v224_v49, %v149_v33  ;;  %v235_v54 = vadd.f32 %v234_v50, %v159_v38  ;;  %v226_v55 = vpop.f32.mrb[3].mxu0  ;;  %v236_v56 = vpop.f32.mrb[3].mxu1  ;;  %v243_v63 = vmul.f32 0.2, %v231_v44 }
 0x16c   :  { %v240_v58 = vmul.f32 0.2, %v223_v47  ;;  %v244_v59 = vmul.f32 0.2, %v233_v48  ;;  %v227_v60 = vadd.f32 %v226_v55, %v149_v33  ;;  %v237_v61 = vadd.f32 %v236_v56, %v159_v38 }
 0x16d   :  { %v651_v62 = vmax.f32 %v221_v43, %v239_v52  ;;  %v241_v0 = vmul.f32 0.2, %v225_v53  ;;  %v245_v1 = vmul.f32 0.2, %v235_v54  ;;  %v665_v10 = vmax.f32 %v231_v44, %v243_v63 }
 0x16e   :  { %v653_v2 = vmax.f32 %v223_v47, %v240_v58  ;;  %v655_v3 = vmax.f32 %v233_v48, %v244_v59  ;;  %v242_v4 = vmul.f32 0.2, %v227_v60  ;;  %v246_v5 = vmul.f32 0.2, %v237_v61 }
 0x16f   :  { %v657_v6 = vmax.f32 %v225_v53, %v241_v0  ;;  %v667_v11 = vmax.f32 %v235_v54, %v245_v1  ;;  %v267_v12 = vmul.f32 %v647_v51, %v651_v62  ;;  %v271_v23 = vmul.f32 %v647_v51, %v665_v10 }
 0x170   :  { %v659_v7 = vmax.f32 %v227_v60, %v242_v4  ;;  %v661_v8 = vmax.f32 %v237_v61, %v246_v5  ;;  %v268_v9 = vmul.f32 %v649_v57, %v653_v2  ;;  %v272_v16 = vmul.f32 %v649_v57, %v655_v3 }
 0x171   :  { %v269_v18 = vmul.f32 %v647_v51, %v657_v6  ;;  %v273_v22 = vmul.f32 %v647_v51, %v667_v11 }
 0x172   :  { %v276_v13 = vsel %vm275_vm7, %v268_v9, 0.0  ;;  %v270_v14 = vmul.f32 %v649_v57, %v659_v7  ;;  %v274_v15 = vmul.f32 %v649_v57, %v661_v8  ;;  %v284_v24 = vsel %vm275_vm7, %v272_v16, 0.0 }
 0x173   :  { %v277_v17 = vadd.f32 %v276_v13, %v267_v12  ;;  %v285_v26 = vadd.f32 %v284_v24, %v271_v23  ;;  %v340_v23 = vld [vmem:[%s790_s6] sm:$0xff] }
 0x174   :  { %v280_v19 = vsel %vm275_vm7, %v270_v14, 0.0  ;;  %v288_v20 = vsel %vm275_vm7, %v274_v15, 0.0 }
 0x175   :  { %278 = vadd.xlane.f32.xlu1 %v277_v17  ;;  %v281_v21 = vadd.f32 %v280_v19, %v269_v18  ;;  %v289_v25 = vadd.f32 %v288_v20, %v273_v22 }
 0x177   :  { %282 = vadd.xlane.f32.xlu0 %v281_v21 }
 0x179   :  { %290 = vadd.xlane.f32.xlu1 %v289_v25  ;;  %v341_v25 = vld [vmem:[%s790_s6 + $0x8] sm:$0xff] }
 0x17b   :  { %286 = vadd.xlane.f32.xlu0 %v285_v26 }
 0x202   :  { %v279_v27 = vpop.xlane.xlu1 %278 }
 0x203   :  { %v687_v28 = vmul.f32 0.0078125, %v279_v27 }
 0x204   :  { %v283_v29 = vpop.xlane.xlu0 %282 }
 0x205   :  { %v296_v30 = vsub.f32 %v651_v62, %v687_v28  ;;  %v297_v31 = vsub.f32 %v653_v2, %v687_v28  ;;  %v693_v32 = vmul.f32 0.0078125, %v283_v29  ;;  %v342_v29 = vld [vmem:[%s790_s6 + $0x10] sm:$0xff] }
 0x206   :  { %v291_v33 = vpop.xlane.xlu1 %290 }
 0x207   :  { %v298_v34 = vsub.f32 %v657_v6, %v693_v32  ;;  %v299_v35 = vsub.f32 %v659_v7, %v693_v32  ;;  %v699_v36 = vmul.f32 0.0078125, %v291_v33  ;;  %v304_v37 = vmul.f32 %v296_v30, %v647_v51 }
 0x208   :  { %v287_v38 = vpop.xlane.xlu0 %286  ;;  %v305_v39 = vmul.f32 %v297_v31, %v649_v57  ;;  %v343_v31 = vld [vmem:[%s790_s6 + $0x18] sm:$0xff] }
 0x209   :  { %v302_v40 = vsub.f32 %v667_v11, %v699_v36  ;;  %v303_v41 = vsub.f32 %v661_v8, %v699_v36  ;;  %v707_v42 = vmul.f32 0.0078125, %v287_v38  ;;  %v312_v43 = vmul.f32 %v304_v37, %v304_v37 }
 0x20a   :  { %v313_v44 = vmul.f32 %v305_v39, %v305_v39  ;;  %v306_v45 = vmul.f32 %v298_v34, %v647_v51  ;;  %v307_v46 = vmul.f32 %v299_v35, %v649_v57  ;;  %v357_v39 = vld [vmem:[%s791_s7 + $0x8] sm:$0xff] }
 0x20b   :  { %v300_v47 = vsub.f32 %v665_v10, %v707_v42  ;;  %v301_v48 = vsub.f32 %v655_v3, %v707_v42  ;;  %v310_v49 = vmul.f32 %v302_v40, %v647_v51  ;;  %v311_v50 = vmul.f32 %v303_v41, %v649_v57 }
 0x20c   :  { %v320_v52 = vsel %vm275_vm7, %v313_v44, 0.0  ;;  %v314_v53 = vmul.f32 %v306_v45, %v306_v45  ;;  %v315_v54 = vmul.f32 %v307_v46, %v307_v46 }
 0x20d   :  { %v321_v55 = vadd.f32 %v320_v52, %v312_v43  ;;  %v308_v56 = vmul.f32 %v300_v47, %v647_v51  ;;  %v309_v58 = vmul.f32 %v301_v48, %v649_v57  ;;  %v319_v60 = vmul.f32 %v311_v50, %v311_v50  ;;  %v356_v43 = vld [vmem:[%s791_s7] sm:$0xff] }
 0x20e   :  { %v324_v59 = vsel %vm275_vm7, %v315_v54, 0.0  ;;  %v318_v1 = vmul.f32 %v310_v49, %v310_v49 }
 0x20f   :  { %322 = vadd.xlane.f32.xlu0 %v321_v55  ;;  %v325_v61 = vadd.f32 %v324_v59, %v314_v53  ;;  %v316_v63 = vmul.f32 %v308_v56, %v308_v56  ;;  %v317_v0 = vmul.f32 %v309_v58, %v309_v58  ;;  %v332_v4 = vsel %vm275_vm7, %v319_v60, 0.0 }
 0x210   :  { %v333_v12 = vadd.f32 %v332_v4, %v318_v1 }
 0x211   :  { %326 = vadd.xlane.f32.xlu1 %v325_v61  ;;  %v328_v5 = vsel %vm275_vm7, %v317_v0, 0.0 }
 0x212   :  { %v329_v9 = vadd.f32 %v328_v5, %v316_v63 }
 0x214   :  { %330 = vadd.xlane.f32.xlu0 %v329_v9 }
 0x215   :  { %334 = vadd.xlane.f32.xlu1 %v333_v12 }
 0x29c   :  { %v323_v51 = vpop.xlane.xlu0 %322 }
 0x29d   :  { %v336_v13 = vmul.f32 0.0078125, %v323_v51 }
 0x29e   :  { %v327_v57 = vpop.xlane.xlu1 %326 }
 0x29f   :  { %v344_v14 = vadd.f32 0.8, %v336_v13  ;;  %v337_v15 = vmul.f32 0.0078125, %v327_v57 }
 0x2a1   :  { %528 = vrsqrt.f32 %v344_v14  ;;  %v345_v16 = vadd.f32 0.8, %v337_v15  ;;  %v331_v17 = vpop.xlane.xlu0 %330 }
 0x2a2   :  { %v338_v18 = vmul.f32 0.0078125, %v331_v17  ;;  %v335_v19 = vpop.xlane.xlu1 %334 }
 0x2a3   :  { %530 = vrsqrt.f32 %v345_v16  ;;  %v339_v20 = vmul.f32 0.0078125, %v335_v19 }
 0x2a4   :  { %v346_v21 = vadd.f32 0.8, %v338_v18 }
 0x2a5   :  { %v347_v22 = vadd.f32 0.8, %v339_v20 }
 0x2a6   :  { %532 = vrsqrt.f32 %v346_v21 }
 0x2a7   :  { %534 = vrsqrt.f32 %v347_v22 }
 0x2ab   :  { %v529_v24 = vpop.eup %528 }
 0x2ac   :  { %v352_v26 = vmul.f32 %v529_v24, %v340_v23 }
 0x2ad   :  { %v531_v27 = vpop.eup %530 }
 0x2ae   :  { %370 = vperm.xlu0 %508, %v352_v26   ;;  %v353_v30 = vmul.f32 %v531_v27, %v341_v25  ;;  %v360_v40 = vmul.f32 %v352_v26, %v687_v28  ;;  %v358_v28 = vld [vmem:[%s791_s7 + $0x10] sm:$0xff] }
 0x2b0   :  { %v533_v33 = vpop.eup %532  ;;  %v361_v38 = vmul.f32 %v353_v30, %v693_v32  ;;  %v359_v32 = vld [vmem:[%s791_s7 + $0x18] sm:$0xff]  ;;  %v364_v45 = vsub.f32 %v356_v43, %v360_v40 }
 0x2b1   :  { %v535_v34 = vpop.eup %534  ;;  %v354_v35 = vmul.f32 %v533_v33, %v342_v29 }
 0x2b2   :  { %v355_v37 = vmul.f32 %v535_v34, %v343_v31  ;;  %v365_v41 = vsub.f32 %v357_v39, %v361_v38 }
 0x2b3   :  { %380 = vperm.xlu1 %509, %v354_v35   ;;  %v362_v46 = vmul.f32 %v354_v35, %v707_v42 }
 0x2b4   :  { %385 = vperm.xlu0 %508, %v355_v37   ;;  %v363_v44 = vmul.f32 %v355_v37, %v699_v36 }
 0x2b5   :  { %v366_v48 = vsub.f32 %v358_v28, %v362_v46 }
 0x2b6   :  { %v367_v47 = vsub.f32 %v359_v32, %v363_v44 }
 0x2b7   :  { %375 = vperm.xlu1 %509, %v353_v30  }
 0x2b8   :  { %403 = vperm.xlu0 %508, %v365_v41  }
 0x2bb   :  { %398 = vperm.xlu1 %509, %v364_v45  }
 0x2bc   :  { %413 = vperm.xlu0 %508, %v367_v47  }
 0x2bf   :  { %408 = vperm.xlu1 %509, %v366_v48  }
 0x32d   :  { %v371_v49 = vpop.permute.xlu0 %370 }
 0x32e   :  { %v388_v55 = vmul.f32 %v371_v49, %v651_v62  ;;  %v389_v56 = vmul.f32 %v371_v49, %v653_v2 }
 0x332   :  { %v381_v36 = vpop.permute.xlu1 %380 }
 0x333   :  { %v386_v50 = vpop.permute.xlu0 %385  ;;  %v392_v62 = vmul.f32 %v381_v36, %v665_v10  ;;  %v393_v2 = vmul.f32 %v381_v36, %v655_v3 }
 0x334   :  { %v394_v60 = vmul.f32 %v386_v50, %v667_v11  ;;  %v395_v61 = vmul.f32 %v386_v50, %v661_v8 }
 0x336   :  { %v376_v52 = vpop.permute.xlu1 %375 }
 0x337   :  { %v404_v53 = vpop.permute.xlu0 %403  ;;  %v390_v54 = vmul.f32 %v376_v52, %v657_v6  ;;  %v391_v42 = vmul.f32 %v376_v52, %v659_v7 }
 0x339   :  { %v418_v58 = vadd.f32 %v404_v53, %v390_v54  ;;  %v419_v59 = vadd.f32 %v404_v53, %v391_v42 }
 0x33a   :  { %v399_v0 = vpop.permute.xlu1 %398 }
 0x33b   :  { %v483_v1 = vpack.c.bf16 %v419_v59, %v418_v58  ;;  %v414_v4 = vpop.permute.xlu0 %413  ;;  %v416_v6 = vadd.f32 %v399_v0, %v388_v55  ;;  %v417_v5 = vadd.f32 %v399_v0, %v389_v56 }
 0x33c   :  { %v422_v7 = vadd.f32 %v414_v4, %v394_v60  ;;  %v423_v9 = vadd.f32 %v414_v4, %v395_v61 }
 0x33d   :  { %452 = vst.msk [vmem:[%s792_s9 + $0x8] sm:$0xff] %vm757_vm10, %v483_v1  ;;  %v482_v8 = vpack.c.bf16 %v417_v5, %v416_v6 }
 0x33e   :  { %v485_v11 = vpack.c.bf16 %v423_v9, %v422_v7  ;;  %v409_v12 = vpop.permute.xlu1 %408 }
 0x33f   :  { %451 = vst.msk [vmem:[%s792_s9] sm:$0xff] %vm757_vm10, %v482_v8  ;;  %v420_v51 = vadd.f32 %v409_v12, %v392_v62  ;;  %v421_v13 = vadd.f32 %v409_v12, %v393_v2 }
 0x340   :  { %454 = vst.msk [vmem:[%s792_s9 + $0x18] sm:$0xff] %vm757_vm10, %v485_v11 }
 0x341   :  { %v484_v3 = vpack.c.bf16 %v421_v13, %v420_v51 }
 0x343   :  { %453 = vst.msk [vmem:[%s792_s9 + $0x10] sm:$0xff] %vm757_vm10, %v484_v3 }

// kernel: discriminator_forward.7
= control target key start
LH: loop header
LB: loop body
LE: loop exit
PB: predicated region body
PF: predicated region fallthrough
CT: control target
= control target key end

     0   :  { %s910_s13 = smov 127   ;;  %s911_s21 = smov 123   ;;  %v913_v10 = vmov 0   ;;  %vm63_vm0 = vcmask 400384   ;;  %vm95_vm1 = vcmask 367616   ;;  %vm126_vm2 = vcmask 359424   ;;  %s1269_s3 = inlined_call_operand.vmem [shape: bf16[32,50], index: 3, kind: input, shape index: {}]   ;;  %s1270_s1 = inlined_call_operand.vmem [shape: bf16[32,50], index: 1, kind: input, shape index: {}]   ;;  %s1271_s2 = inlined_call_operand.vmem [shape: bf16[32,50], index: 2, kind: input, shape index: {}]   ;;  %s1272_s4 = inlined_call_operand.vmem [shape: bf16[32,50], index: 4, kind: input, shape index: {}]   ;;  %s1273_s0 = inlined_call_operand.vmem [shape: bf16[64,288], index: 0, kind: input, shape index: {}]   ;;  %s1274_s5 = inlined_call_operand.vmem [shape: f32[64,1], index: 5, kind: input, shape index: {}]   ;;  %s1275_s8 = inlined_call_operand.vmem [shape: f32[1,50], index: 8, kind: input, shape index: {}]   ;;  %s1276_s6 = inlined_call_operand.vmem [shape: f32[64,1], index: 6, kind: input, shape index: {}]   ;;  %s1277_s7 = inlined_call_operand.vmem [shape: f32[64,1], index: 7, kind: input, shape index: {}]   ;;  %s1278_s9 = inlined_call_operand.vmem [shape: bf16[64,50], index: 9, kind: output, shape index: {}]  }
   0x1   :  { %v967_v0 = vld [vmem:[%s1269_s3] sm:$0xff]   ;;  %v972_v1 = vld [vmem:[%s1269_s3 + $0x8] sm:$0xff]   ;;  %s912_s28 = smov 122   ;;  %869 = vset.pattern.permute.xlu1 %v913_v10  ;;  %868 = vset.pattern.permute.xlu0 %v913_v10  ;;  %v170_v13 = vld [vmem:[%s1274_s5 + $0x18] sm:$0xff]  ;;  %vm275_vm3 = vcmask 261120   ;;  %vm449_vm4 = vcmask 408576  }
   0x2   :  { %81 = vrot.lane.b32.xlu0 %v967_v0, %s910_s13  ;;  %v872_v2 = vld [vmem:[%s1270_s1] sm:$0xff]   ;;  %v873_v3 = vld [vmem:[%s1270_s1 + $0x8] sm:$0xff]   ;;  %v169_v14 = vld [vmem:[%s1274_s5 + $0x10] sm:$0xff]  ;;  %vm722_vm5 = vcmask 404480  }
   0x3   :  { %59 = vrot.lane.b32.xlu1 %v872_v2, %s910_s13  ;;  %v876_v4 = vld [vmem:[%s1272_s4] sm:$0xff]   ;;  %v877_v5 = vld [vmem:[%s1272_s4 + $0x8] sm:$0xff]   ;;  %v174_v17 = vld [vmem:[%s1274_s5 + $0x38] sm:$0xff] }
   0x4   :  { %776 = vmatprep.subr.bf16.mxu0 %v876_v4  ;;  %834 = vmatprep.subr.bf16.mxu1 %v876_v4  ;;  %v874_v6 = vld [vmem:[%s1271_s2] sm:$0xff]   ;;  %v875_v8 = vld [vmem:[%s1271_s2 + $0x8] sm:$0xff]   ;;  %v173_v18 = vld [vmem:[%s1274_s5 + $0x30] sm:$0xff] }
   0x5   :  { %777 = vmatpush3.bf16.msra.mxu0 %v872_v2  ;;  %842 = vmatpush3.bf16.msra.mxu1 %v872_v2  ;;  %v880_v7 = vld [vmem:[%s1273_s0 + $0x4] ss:$12 sps:$4 sm:$0xff]   ;;  %v883_v9 = vld [vmem:[%s1273_s0 + $0x4c] ss:$12 sps:$4 sm:$0xff]   ;;  %v881_v31 = vld [vmem:[%s1273_s0 + $0x48] ss:$12 sps:$4 sm:$0xff]  }
   0x6   :  { %83 = vrot.lane.b32.xlu0 %v972_v1, %s910_s13  ;;  %778 = vmatprep.subr.bf16.mxu0 %v877_v5  ;;  %v167_v11 = vld [vmem:[%s1274_s5] sm:$0xff]  ;;  %v168_v12 = vld [vmem:[%s1274_s5 + $0x8] sm:$0xff]  ;;  %v892_v41 = vld [vmem:[%s1273_s0 + $0x30] ss:$12 sps:$4 sm:$0xff]  }
   0x7   :  { %91 = vrot.lane.b32.xlu1 %v872_v2, %s911_s21  ;;  %835 = vmatprep.subr.bf16.mxu1 %v877_v5  ;;  %v172_v15 = vld [vmem:[%s1274_s5 + $0x28] sm:$0xff]  ;;  %v171_v16 = vld [vmem:[%s1274_s5 + $0x20] sm:$0xff]  ;;  %v893_v42 = vld [vmem:[%s1273_s0 + $0x50] ss:$12 sps:$4 sm:$0xff]  }
   0x8   :  { %320 = vmatprep.mubr.bf16.mxu0 %v880_v7  ;;  %344 = vmatprep.mubr.bf16.mxu1 %v883_v9  ;;  %v878_v30 = vld [vmem:[%s1273_s0] ss:$12 sps:$4 sm:$0xff]   ;;  %v884_v32 = vld [vmem:[%s1273_s0 + $0x1c] ss:$12 sps:$4 sm:$0xff]   ;;  %v887_v37 = vld [vmem:[%s1273_s0 + $0x18] ss:$12 sps:$4 sm:$0xff]  }
   0x9   :  { %779 = vmatpush3.bf16.msra.mxu0 %v873_v3  ;;  %843 = vmatpush3.bf16.msra.mxu1 %v873_v3  ;;  %v886_v34 = vld [vmem:[%s1273_s0 + $0x8] ss:$12 sps:$4 sm:$0xff]   ;;  %v888_v38 = vld [vmem:[%s1273_s0 + $0x20] ss:$12 sps:$4 sm:$0xff]   ;;  %v891_v40 = vld [vmem:[%s1273_s0 + $0x38] ss:$12 sps:$4 sm:$0xff]  }
   0xa   :  { %61 = vrot.lane.b32.xlu0 %v873_v3, %s910_s13  ;;  %v889_v39 = vld [vmem:[%s1273_s0 + $0x34] ss:$12 sps:$4 sm:$0xff]  }
   0xb   :  { %93 = vrot.lane.b32.xlu1 %v873_v3, %s911_s21 }
   0xe   :  { %112 = vrot.lane.b32.xlu0 %v874_v6, %s911_s21 }
   0xf   :  { %114 = vrot.lane.b32.xlu1 %v875_v8, %s911_s21 }
  0x12   :  { %122 = vrot.lane.b32.xlu0 %v872_v2, %s912_s28 }
  0x13   :  { %124 = vrot.lane.b32.xlu1 %v873_v3, %s912_s28 }
  0x16   :  { %177 = vperm.xlu0 %868, %v167_v11  }
  0x17   :  { %182 = vperm.xlu1 %869, %v168_v12  }
  0x1a   :  { %192 = vperm.xlu0 %868, %v170_v13  }
  0x1b   :  { %187 = vperm.xlu1 %869, %v169_v14   ;;  %v1083_v14 = vld [vmem:[%s1275_s8] ss:$0 sm:$0xff] }
  0x1e   :  { %202 = vperm.xlu0 %868, %v172_v15  }
  0x1f   :  { %197 = vperm.xlu1 %869, %v171_v16  }
  0x22   :  { %212 = vperm.xlu0 %868, %v174_v17  }
  0x23   :  { %207 = vperm.xlu1 %869, %v173_v18  }
  0x74   :  { %v82_v19 = vpop.permute.xlu0 %81 }
  0x75   :  { %850 = vmatprep.subr.msk.bf16.mxu0 %vm63_vm0, %v82_v19  ;;  %851 = vmatprep.subr.msk.bf16.mxu1 %vm63_vm0, %v82_v19  ;;  %v60_v20 = vpop.permute.xlu1 %59 }
  0x76   :  { %781 = vmatpush3.bf16.msra.mxu0 %v874_v6  ;;  %844 = vmatpush3.bf16.msra.mxu1 %v874_v6  ;;  %v66_v24 = vsel %vm63_vm0, %v60_v20, 0 }
  0x78   :  { %v84_v21 = vpop.permute.xlu0 %83 }
  0x79   :  { %852 = vmatprep.subr.msk.bf16.mxu0 %vm63_vm0, %v84_v21  ;;  %853 = vmatprep.subr.msk.bf16.mxu1 %vm63_vm0, %v84_v21  ;;  %v92_v22 = vpop.permute.xlu1 %91 }
  0x7a   :  { %783 = vmatpush3.bf16.msra.mxu0 %v875_v8  ;;  %845 = vmatpush3.bf16.msra.mxu1 %v875_v8 }
  0x7b   :  { %854 = vmatprep.subr.msk.bf16.mxu0 %vm95_vm1, %v92_v22  ;;  %855 = vmatprep.subr.msk.bf16.mxu1 %vm95_vm1, %v92_v22 }
  0x7c   :  { %v62_v23 = vpop.permute.xlu0 %61 }
  0x7d   :  { %v94_v25 = vpop.permute.xlu1 %93  ;;  %v69_v26 = vsel %vm63_vm0, %v62_v23, 0 }
  0x7e   :  { %785 = vmatpush3.bf16.msra.mxu0 %v66_v24  ;;  %846 = vmatpush3.bf16.msra.mxu1 %v66_v24 }
  0x7f   :  { %856 = vmatprep.subr.msk.bf16.mxu0 %vm95_vm1, %v94_v25  ;;  %857 = vmatprep.subr.msk.bf16.mxu1 %vm95_vm1, %v94_v25 }
  0x80   :  { %v113_v27 = vpop.permute.xlu0 %112 }
  0x81   :  { %v115_v28 = vpop.permute.xlu1 %114 }
  0x82   :  { %787 = vmatpush3.bf16.msra.mxu0 %v69_v26  ;;  %847 = vmatpush3.bf16.msra.mxu1 %v69_v26 }
  0x83   :  { %858 = vmatprep.subr.msk.bf16.mxu0 %vm95_vm1, %v113_v27  ;;  %859 = vmatprep.subr.msk.bf16.mxu1 %vm95_vm1, %v113_v27 }
  0x84   :  { %v123_v29 = vpop.permute.xlu0 %122 }
  0x85   :  { %v128_v33 = vsel %vm126_vm2, %v123_v29, 0  ;;  %v125_v35 = vpop.permute.xlu1 %124 }
  0x86   :  { %789 = vmatpush3.bf16.msra.mxu0 %v967_v0  ;;  %848 = vmatpush3.bf16.msra.mxu1 %v967_v0  ;;  %v131_v36 = vsel %vm126_vm2, %v125_v35, 0 }
  0x87   :  { %860 = vmatprep.subr.msk.bf16.mxu0 %vm95_vm1, %v115_v28  ;;  %861 = vmatprep.subr.msk.bf16.mxu1 %vm95_vm1, %v115_v28 }
  0x8a   :  { %791 = vmatpush3.bf16.msra.mxu0 %v972_v1  ;;  %849 = vmatpush3.bf16.msra.mxu1 %v972_v1 }
  0x8b   :  { %862 = vmatprep.subr.msk.bf16.mxu1 %vm126_vm2, %v123_v29 }
  0x8d   :  { %321 = vmatmul.mubr.bf16.vlgmr.msra.gmra.mrb[0].mxu0 %v878_v30  ;;  %345 = vmatmul.mubr.bf16.vlgmr.msra.gmra.mrb[0].mxu1 %v881_v31 }
  0x8e   :  { %823 = vmatpush3.bf16.msra.mxu1 %v128_v33  ;;  %328 = vmatprep.mubr.bf16.mxu0 %v884_v32 }
  0x8f   :  { %863 = vmatprep.subr.msk.bf16.mxu1 %vm126_vm2, %v125_v35  ;;  %826 = vmatprep.mubr.msk.bf16.mxu1 %vm275_vm3, %v886_v34 }
  0x92   :  { %825 = vmatpush3.bf16.msra.mxu1 %v131_v36 }
  0x95   :  { %329 = vmatmul.mubr.bf16.gmra.mrb[4].mxu0 %v887_v37  ;;  %827 = vmatmul.mubr.msk.bf16.vlgmr.msra.gmra.mrb[4].mxu1 %vm275_vm3, %v888_v38  ;;  %v178_v43 = vpop.permute.xlu0 %177 }
  0x96   :  { %336 = vmatprep.mubr.bf16.mxu0 %v889_v39  ;;  %830 = vmatprep.mubr.msk.bf16.mxu1 %vm275_vm3, %v891_v40  ;;  %v183_v44 = vpop.permute.xlu1 %182 }
  0x99   :  { %v193_v45 = vpop.permute.xlu0 %192 }
  0x9a   :  { %v188_v46 = vpop.permute.xlu1 %187 }
  0x9d   :  { %337 = vmatmul.mubr.bf16.gmra.mrb[8].mxu0 %v892_v41  ;;  %831 = vmatmul.mubr.msk.bf16.gmra.mrb[8].mxu1 %vm275_vm3, %v893_v42  ;;  %v203_v60 = vpop.permute.xlu0 %202 }
  0x9e   :  { %v198_v59 = vpop.permute.xlu1 %197 }
  0xa1   :  { %v213_v15 = vpop.permute.xlu0 %212 }
  0xa2   :  { %v208_v9 = vpop.permute.xlu1 %207 }
 0x160   :  { %v792_v47 = vpop.f32.mrb[0].mxu0  ;;  %v810_v48 = vpop.f32.mrb[0].mxu1 }
 0x161   :  { %v793_v49 = vpop.f32.mrb[1].mxu0  ;;  %v811_v50 = vpop.f32.mrb[1].mxu1 }
 0x162   :  { %v794_v51 = vadd.f32 %v793_v49, %v792_v47  ;;  %v795_v52 = vpop.f32.mrb[2].mxu0  ;;  %v812_v53 = vadd.f32 %v811_v50, %v810_v48  ;;  %v813_v54 = vpop.f32.mrb[2].mxu1 }
 0x163   :  { %v796_v55 = vpop.f32.mrb[3].mxu0  ;;  %v814_v56 = vpop.f32.mrb[3].mxu1 }
 0x164   :  { %v797_v57 = vadd.f32 %v796_v55, %v795_v52  ;;  %v815_v58 = vadd.f32 %v814_v56, %v813_v54  ;;  %v323_v63 = vadd.f32 %v794_v51, %v178_v43  ;;  %v347_v20 = vadd.f32 %v812_v53, %v208_v9 }
 0x166   :  { %v326_v6 = vadd.f32 %v797_v57, %v183_v44  ;;  %v350_v27 = vadd.f32 %v815_v58, %v213_v15 }
 0x168   :  { %v798_v61 = vpop.f32.mrb[4].mxu0  ;;  %v828_v62 = vpop.f32.mrb[4].mxu1 }
 0x169   :  { %v799_v0 = vpop.f32.mrb[5].mxu0  ;;  %v387_v1 = vpop.f32.mrb[5].mxu1 }
 0x16a   :  { %v800_v2 = vadd.f32 %v799_v0, %v798_v61  ;;  %v388_v3 = vadd.f32 %v387_v1, %v323_v63  ;;  %v801_v4 = vpop.f32.mrb[6].mxu0  ;;  %v829_v5 = vpop.f32.mrb[6].mxu1 }
 0x16b   :  { %v802_v7 = vpop.f32.mrb[7].mxu0  ;;  %v390_v8 = vpop.f32.mrb[7].mxu1 }
 0x16c   :  { %v331_v10 = vadd.f32 %v800_v2, %v188_v46  ;;  %v418_v11 = vmul.f32 0.2, %v388_v3  ;;  %v803_v12 = vadd.f32 %v802_v7, %v801_v4  ;;  %v391_v13 = vadd.f32 %v390_v8, %v326_v6 }
 0x16e   :  { %v396_v16 = vadd.f32 %v828_v62, %v331_v10  ;;  %v1085_v17 = vmax.f32 %v388_v3, %v418_v11  ;;  %v334_v18 = vadd.f32 %v803_v12, %v193_v45  ;;  %v419_v19 = vmul.f32 0.2, %v391_v13 }
 0x170   :  { %v420_v21 = vmul.f32 0.2, %v396_v16  ;;  %v399_v22 = vadd.f32 %v829_v5, %v334_v18  ;;  %v1087_v23 = vmax.f32 %v391_v13, %v419_v19  ;;  %v804_v24 = vpop.f32.mrb[8].mxu0  ;;  %v832_v25 = vpop.f32.mrb[8].mxu1  ;;  %v441_v26 = vmul.f32 %v1083_v14, %v1085_v17 }
 0x171   :  { %v412_v28 = vadd.f32 %v832_v25, %v347_v20  ;;  %v805_v29 = vpop.f32.mrb[9].mxu0  ;;  %v403_v30 = vpop.f32.mrb[9].mxu1 }
 0x172   :  { %v1091_v31 = vmax.f32 %v396_v16, %v420_v21  ;;  %v421_v32 = vmul.f32 0.2, %v399_v22  ;;  %v806_v33 = vadd.f32 %v805_v29, %v804_v24  ;;  %v807_v34 = vpop.f32.mrb[10].mxu0  ;;  %v833_v35 = vpop.f32.mrb[10].mxu1  ;;  %v450_v36 = vsel %vm449_vm4, %v441_v26, 0.0 }
 0x173   :  { %v415_v37 = vadd.f32 %v833_v35, %v350_v27  ;;  %v808_v38 = vpop.f32.mrb[11].mxu0  ;;  %451 = vadd.xlane.f32.xlu1 %v450_v36  ;;  %v406_v39 = vpop.f32.mrb[11].mxu1  ;;  %v442_v40 = vmul.f32 %v1083_v14, %v1087_v23  ;;  %v424_v46 = vmul.f32 0.2, %v412_v28 }
 0x174   :  { %v1096_v41 = vmax.f32 %v399_v22, %v421_v32  ;;  %v339_v42 = vadd.f32 %v806_v33, %v198_v59  ;;  %v809_v43 = vadd.f32 %v808_v38, %v807_v34  ;;  %v443_v45 = vmul.f32 %v1083_v14, %v1091_v31 }
 0x175   :  { %v453_v44 = vsel %vm449_vm4, %v442_v40, 0.0  ;;  %v425_v51 = vmul.f32 0.2, %v415_v37  ;;  %v1105_v55 = vmax.f32 %v412_v28, %v424_v46 }
 0x176   :  { %v404_v47 = vadd.f32 %v403_v30, %v339_v42  ;;  %v342_v48 = vadd.f32 %v809_v43, %v203_v60  ;;  %454 = vadd.xlane.f32.xlu0 %v453_v44  ;;  %v444_v49 = vmul.f32 %v1083_v14, %v1096_v41  ;;  %v456_v54 = vsel %vm449_vm4, %v443_v45, 0.0 }
 0x177   :  { %v1109_v58 = vmax.f32 %v415_v37, %v425_v51  ;;  %v447_v63 = vmul.f32 %v1083_v14, %v1105_v55 }
 0x178   :  { %v422_v50 = vmul.f32 0.2, %v404_v47  ;;  %v407_v52 = vadd.f32 %v406_v39, %v342_v48  ;;  %v459_v53 = vsel %vm449_vm4, %v444_v49, 0.0 }
 0x179   :  { %460 = vadd.xlane.f32.xlu1 %v459_v53  ;;  %v448_v1 = vmul.f32 %v1083_v14, %v1109_v58  ;;  %v468_v2 = vsel %vm449_vm4, %v447_v63, 0.0 }
 0x17a   :  { %v1107_v56 = vmax.f32 %v404_v47, %v422_v50  ;;  %v423_v57 = vmul.f32 0.2, %v407_v52  ;;  %457 = vadd.xlane.f32.xlu0 %v456_v54 }
 0x17b   :  { %v471_v3 = vsel %vm449_vm4, %v448_v1, 0.0 }
 0x17c   :  { %v1111_v59 = vmax.f32 %v407_v52, %v423_v57  ;;  %v445_v60 = vmul.f32 %v1083_v14, %v1107_v56 }
 0x17e   :  { %v462_v61 = vsel %vm449_vm4, %v445_v60, 0.0  ;;  %v446_v62 = vmul.f32 %v1083_v14, %v1111_v59 }
 0x17f   :  { %463 = vadd.xlane.f32.xlu0 %v462_v61 }
 0x180   :  { %v465_v0 = vsel %vm449_vm4, %v446_v62, 0.0 }
 0x181   :  { %466 = vadd.xlane.f32.xlu1 %v465_v0 }
 0x183   :  { %469 = vadd.xlane.f32.xlu0 %v468_v2 }
 0x185   :  { %472 = vadd.xlane.f32.xlu1 %v471_v3 }
 0x200   :  { %v452_v4 = vpop.xlane.xlu1 %451 }
 0x201   :  { %v1125_v5 = vmul.f32 0.03125, %v452_v4 }
 0x203   :  { %v482_v6 = vsub.f32 %v1085_v17, %v1125_v5  ;;  %v455_v7 = vpop.xlane.xlu0 %454 }
 0x204   :  { %v1129_v8 = vmul.f32 0.03125, %v455_v7 }
 0x205   :  { %v490_v9 = vmul.f32 %v1083_v14, %v482_v6 }
 0x206   :  { %v483_v10 = vsub.f32 %v1087_v23, %v1129_v8  ;;  %v461_v11 = vpop.xlane.xlu1 %460 }
 0x207   :  { %v458_v12 = vpop.xlane.xlu0 %457  ;;  %v1134_v13 = vmul.f32 0.03125, %v461_v11  ;;  %v498_v15 = vmul.f32 %v490_v9, %v490_v9  ;;  %v538_v11 = vld [vmem:[%s1276_s6] sm:$0xff] }
 0x208   :  { %v1136_v16 = vmul.f32 0.03125, %v458_v12  ;;  %v491_v18 = vmul.f32 %v1083_v14, %v483_v10 }
 0x209   :  { %v485_v19 = vsub.f32 %v1096_v41, %v1134_v13  ;;  %v506_v20 = vsel %vm449_vm4, %v498_v15, 0.0 }
 0x20a   :  { %v484_v21 = vsub.f32 %v1091_v31, %v1136_v16  ;;  %507 = vadd.xlane.f32.xlu0 %v506_v20  ;;  %v499_v22 = vmul.f32 %v491_v18, %v491_v18 }
 0x20b   :  { %v493_v24 = vmul.f32 %v1083_v14, %v485_v19 }
 0x20c   :  { %v464_v25 = vpop.xlane.xlu0 %463  ;;  %v509_v26 = vsel %vm449_vm4, %v499_v22, 0.0  ;;  %v492_v27 = vmul.f32 %v1083_v14, %v484_v21  ;;  %v539_v21 = vld [vmem:[%s1276_s6 + $0x8] sm:$0xff] }
 0x20d   :  { %v1147_v28 = vmul.f32 0.03125, %v464_v25  ;;  %510 = vadd.xlane.f32.xlu1 %v509_v26  ;;  %v501_v29 = vmul.f32 %v493_v24, %v493_v24 }
 0x20e   :  { %v467_v30 = vpop.xlane.xlu1 %466  ;;  %v500_v32 = vmul.f32 %v492_v27, %v492_v27 }
 0x20f   :  { %v486_v33 = vsub.f32 %v1107_v56, %v1147_v28  ;;  %v1151_v34 = vmul.f32 0.03125, %v467_v30  ;;  %v515_v35 = vsel %vm449_vm4, %v501_v29, 0.0 }
 0x210   :  { %v470_v36 = vpop.xlane.xlu0 %469  ;;  %v512_v37 = vsel %vm449_vm4, %v500_v32, 0.0 }
 0x211   :  { %v487_v38 = vsub.f32 %v1111_v59, %v1151_v34  ;;  %v1157_v39 = vmul.f32 0.03125, %v470_v36  ;;  %513 = vadd.xlane.f32.xlu0 %v512_v37  ;;  %516 = vadd.xlane.f32.xlu1 %v515_v35  ;;  %v494_v40 = vmul.f32 %v1083_v14, %v486_v33  ;;  %v540_v33 = vld [vmem:[%s1276_s6 + $0x10] sm:$0xff]  ;;  %v541_v37 = vld [vmem:[%s1276_s6 + $0x18] sm:$0xff] }
 0x212   :  { %v473_v42 = vpop.xlane.xlu1 %472 }
 0x213   :  { %v488_v43 = vsub.f32 %v1105_v55, %v1157_v39  ;;  %v1162_v44 = vmul.f32 0.03125, %v473_v42  ;;  %v502_v45 = vmul.f32 %v494_v40, %v494_v40  ;;  %v495_v46 = vmul.f32 %v1083_v14, %v487_v38 }
 0x215   :  { %v489_v47 = vsub.f32 %v1109_v58, %v1162_v44  ;;  %v518_v48 = vsel %vm449_vm4, %v502_v45, 0.0  ;;  %v503_v49 = vmul.f32 %v495_v46, %v495_v46  ;;  %v496_v50 = vmul.f32 %v1083_v14, %v488_v43  ;;  %v570_v46 = vld [vmem:[%s1277_s7] sm:$0xff] }
 0x216   :  { %519 = vadd.xlane.f32.xlu0 %v518_v48  ;;  %v571_v48 = vld [vmem:[%s1277_s7 + $0x8] sm:$0xff] }
 0x217   :  { %v521_v51 = vsel %vm449_vm4, %v503_v49, 0.0  ;;  %v504_v52 = vmul.f32 %v496_v50, %v496_v50  ;;  %v497_v53 = vmul.f32 %v1083_v14, %v489_v47 }
 0x218   :  { %522 = vadd.xlane.f32.xlu1 %v521_v51 }
 0x219   :  { %v524_v54 = vsel %vm449_vm4, %v504_v52, 0.0  ;;  %v505_v57 = vmul.f32 %v497_v53, %v497_v53 }
 0x21a   :  { %525 = vadd.xlane.f32.xlu0 %v524_v54 }
 0x21b   :  { %v527_v60 = vsel %vm449_vm4, %v505_v57, 0.0 }
 0x21c   :  { %528 = vadd.xlane.f32.xlu1 %v527_v60  ;;  %v572_v60 = vld [vmem:[%s1277_s7 + $0x10] sm:$0xff] }
 0x297   :  { %v508_v61 = vpop.xlane.xlu0 %507 }
 0x298   :  { %v530_v62 = vmul.f32 0.03125, %v508_v61  ;;  %v542_v61 = vld [vmem:[%s1276_s6 + $0x20] sm:$0xff] }
 0x29a   :  { %v546_v63 = vadd.f32 0.8, %v530_v62  ;;  %v511_v0 = vpop.xlane.xlu1 %510 }
 0x29b   :  { %v531_v1 = vmul.f32 0.03125, %v511_v0 }
 0x29c   :  { %894 = vrsqrt.f32 %v546_v63 }
 0x29d   :  { %v547_v2 = vadd.f32 0.8, %v531_v1  ;;  %v573_v1 = vld [vmem:[%s1277_s7 + $0x18] sm:$0xff] }
 0x29e   :  { %v514_v3 = vpop.xlane.xlu0 %513  ;;  %v517_v4 = vpop.xlane.xlu1 %516 }
 0x29f   :  { %896 = vrsqrt.f32 %v547_v2  ;;  %v532_v6 = vmul.f32 0.03125, %v514_v3  ;;  %v533_v14 = vmul.f32 0.03125, %v517_v4 }
 0x2a1   :  { %v548_v7 = vadd.f32 0.8, %v532_v6  ;;  %v549_v9 = vadd.f32 0.8, %v533_v14 }
 0x2a3   :  { %898 = vrsqrt.f32 %v548_v7  ;;  %v520_v10 = vpop.xlane.xlu0 %519 }
 0x2a4   :  { %900 = vrsqrt.f32 %v549_v9  ;;  %v534_v12 = vmul.f32 0.03125, %v520_v10  ;;  %v575_v9 = vld [vmem:[%s1277_s7 + $0x28] sm:$0xff] }
 0x2a5   :  { %v523_v15 = vpop.xlane.xlu1 %522 }
 0x2a6   :  { %v895_v18 = vpop.eup %894  ;;  %v535_v22 = vmul.f32 0.03125, %v523_v15  ;;  %v550_v26 = vadd.f32 0.8, %v534_v12  ;;  %v576_v12 = vld [vmem:[%s1277_s7 + $0x30] sm:$0xff] }
 0x2a7   :  { %v526_v19 = vpop.xlane.xlu0 %525  ;;  %v562_v20 = vmul.f32 %v895_v18, %v538_v11 }
 0x2a8   :  { %v536_v24 = vmul.f32 0.03125, %v526_v19  ;;  %v551_v35 = vadd.f32 0.8, %v535_v22 }
 0x2a9   :  { %v897_v25 = vpop.eup %896  ;;  %596 = vperm.xlu0 %868, %v562_v20   ;;  %v529_v27 = vpop.xlane.xlu1 %528  ;;  %v578_v43 = vmul.f32 %v562_v20, %v1125_v5  ;;  %v544_v5 = vld [vmem:[%s1276_s6 + $0x30] sm:$0xff] }
 0x2aa   :  { %v552_v29 = vadd.f32 0.8, %v536_v24  ;;  %v537_v30 = vmul.f32 0.03125, %v529_v27  ;;  %v563_v32 = vmul.f32 %v897_v25, %v539_v21 }
 0x2ab   :  { %v586_v49 = vsub.f32 %v570_v46, %v578_v43 }
 0x2ac   :  { %902 = vrsqrt.f32 %v552_v29  ;;  %v553_v36 = vadd.f32 0.8, %v537_v30  ;;  %601 = vperm.xlu1 %869, %v563_v32   ;;  %v579_v47 = vmul.f32 %v563_v32, %v1129_v8  ;;  %v545_v8 = vld [vmem:[%s1276_s6 + $0x38] sm:$0xff] }
 0x2ad   :  { %v899_v38 = vpop.eup %898  ;;  %904 = vrsqrt.f32 %v550_v26 }
 0x2ae   :  { %v901_v40 = vpop.eup %900  ;;  %906 = vrsqrt.f32 %v553_v36  ;;  %v564_v42 = vmul.f32 %v899_v38, %v540_v33  ;;  %v587_v50 = vsub.f32 %v571_v48, %v579_v47 }
 0x2af   :  { %v565_v45 = vmul.f32 %v901_v40, %v541_v37  ;;  %908 = vrsqrt.f32 %v551_v35 }
 0x2b0   :  { %606 = vperm.xlu1 %869, %v564_v42   ;;  %v580_v54 = vmul.f32 %v564_v42, %v1136_v16  ;;  %v543_v16 = vld [vmem:[%s1276_s6 + $0x28] sm:$0xff] }
 0x2b1   :  { %611 = vperm.xlu0 %868, %v565_v45   ;;  %v581_v63 = vmul.f32 %v565_v45, %v1134_v13  ;;  %v574_v13 = vld [vmem:[%s1277_s7 + $0x20] sm:$0xff] }
 0x2b2   :  { %v588_v2 = vsub.f32 %v572_v60, %v580_v54 }
 0x2b3   :  { %v589_v4 = vsub.f32 %v573_v1, %v581_v63 }
 0x2b4   :  { %644 = vperm.xlu1 %869, %v586_v49  }
 0x2b5   :  { %649 = vperm.xlu0 %868, %v587_v50  }
 0x2b6   :  { %v903_v51 = vpop.eup %902 }
 0x2b7   :  { %v905_v52 = vpop.eup %904  ;;  %v568_v53 = vmul.f32 %v903_v51, %v544_v5 }
 0x2b8   :  { %v907_v57 = vpop.eup %906  ;;  %v566_v3 = vmul.f32 %v905_v52, %v542_v61 }
 0x2b9   :  { %626 = vperm.xlu1 %869, %v568_v53   ;;  %v569_v62 = vmul.f32 %v907_v57, %v545_v8  ;;  %v909_v0 = vpop.eup %908  ;;  %v584_v11 = vmul.f32 %v568_v53, %v1157_v39 }
 0x2ba   :  { %v567_v6 = vmul.f32 %v909_v0, %v543_v16  ;;  %v582_v14 = vmul.f32 %v566_v3, %v1147_v28 }
 0x2bb   :  { %631 = vperm.xlu0 %868, %v569_v62   ;;  %v585_v15 = vmul.f32 %v569_v62, %v1162_v44  ;;  %v592_v18 = vsub.f32 %v576_v12, %v584_v11 }
 0x2bc   :  { %v583_v7 = vmul.f32 %v567_v6, %v1151_v34  ;;  %v590_v10 = vsub.f32 %v574_v13, %v582_v14  ;;  %v577_v34 = vld [vmem:[%s1277_s7 + $0x38] sm:$0xff] }
 0x2bd   :  { %654 = vperm.xlu1 %869, %v588_v2   ;;  %v593_v19 = vsub.f32 %v577_v34, %v585_v15 }
 0x2be   :  { %v591_v28 = vsub.f32 %v575_v9, %v583_v7 }
 0x2bf   :  { %659 = vperm.xlu0 %868, %v589_v4  }
 0x2c1   :  { %616 = vperm.xlu1 %869, %v566_v3  }
 0x2c3   :  { %621 = vperm.xlu0 %868, %v567_v6  }
 0x2c5   :  { %664 = vperm.xlu1 %869, %v590_v10  }
 0x2c7   :  { %669 = vperm.xlu0 %868, %v591_v28  }
 0x2c9   :  { %674 = vperm.xlu1 %869, %v592_v18  }
 0x2cb   :  { %679 = vperm.xlu0 %868, %v593_v19  }
 0x328   :  { %v597_v21 = vpop.permute.xlu0 %596 }
 0x329   :  { %v634_v24 = vmul.f32 %v597_v21, %v1085_v17 }
 0x32b   :  { %v602_v20 = vpop.permute.xlu1 %601 }
 0x32c   :  { %v635_v25 = vmul.f32 %v602_v20, %v1087_v23 }
 0x32f   :  { %v607_v39 = vpop.permute.xlu1 %606 }
 0x330   :  { %v612_v22 = vpop.permute.xlu0 %611  ;;  %v636_v23 = vmul.f32 %v607_v39, %v1091_v31 }
 0x331   :  { %v637_v36 = vmul.f32 %v612_v22, %v1096_v41 }
 0x333   :  { %v645_v26 = vpop.permute.xlu1 %644 }
 0x334   :  { %v650_v27 = vpop.permute.xlu0 %649  ;;  %v682_v44 = vadd.f32 %v645_v26, %v634_v24 }
 0x335   :  { %v683_v29 = vadd.f32 %v650_v27, %v635_v25 }
 0x336   :  { %v768_v30 = vpack.c.bf16 %v682_v44, %v682_v44 }
 0x337   :  { %v769_v32 = vpack.c.bf16 %v683_v29, %v683_v29 }
 0x338   :  { %723 = vst.msk [vmem:[%s1278_s9] sm:$0xf] %vm722_vm5, %v768_v30  ;;  %v627_v33 = vpop.permute.xlu1 %626 }
 0x339   :  { %724 = vst.msk [vmem:[%s1278_s9 + $0x4] sm:$0xf] %vm722_vm5, %v769_v32  ;;  %v640_v50 = vmul.f32 %v627_v33, %v1105_v55 }
 0x33a   :  { %v632_v17 = vpop.permute.xlu0 %631 }
 0x33b   :  { %v641_v52 = vmul.f32 %v632_v17, %v1109_v58 }
 0x33c   :  { %v655_v35 = vpop.permute.xlu1 %654 }
 0x33d   :  { %v684_v37 = vadd.f32 %v655_v35, %v636_v23 }
 0x33e   :  { %v660_v38 = vpop.permute.xlu0 %659 }
 0x33f   :  { %v770_v40 = vpack.c.bf16 %v684_v37, %v684_v37  ;;  %v685_v42 = vadd.f32 %v660_v38, %v637_v36 }
 0x340   :  { %v617_v43 = vpop.permute.xlu1 %616 }
 0x341   :  { %725 = vst.msk [vmem:[%s1278_s9 + $0x8] sm:$0xf] %vm722_vm5, %v770_v40  ;;  %v771_v45 = vpack.c.bf16 %v685_v42, %v685_v42  ;;  %v638_v31 = vmul.f32 %v617_v43, %v1107_v56 }
 0x342   :  { %v622_v46 = vpop.permute.xlu0 %621 }
 0x343   :  { %726 = vst.msk [vmem:[%s1278_s9 + $0xc] sm:$0xf] %vm722_vm5, %v771_v45  ;;  %v639_v47 = vmul.f32 %v622_v46, %v1111_v59 }
 0x344   :  { %v665_v41 = vpop.permute.xlu1 %664 }
 0x345   :  { %v686_v48 = vadd.f32 %v665_v41, %v638_v31 }
 0x346   :  { %v670_v49 = vpop.permute.xlu0 %669 }
 0x347   :  { %v772_v5 = vpack.c.bf16 %v686_v48, %v686_v48  ;;  %v687_v51 = vadd.f32 %v670_v49, %v639_v47 }
 0x348   :  { %v675_v8 = vpop.permute.xlu1 %674 }
 0x349   :  { %727 = vst.msk [vmem:[%s1278_s9 + $0x10] sm:$0xf] %vm722_vm5, %v772_v5  ;;  %v773_v53 = vpack.c.bf16 %v687_v51, %v687_v51  ;;  %v688_v54 = vadd.f32 %v675_v8, %v640_v50 }
 0x34a   :  { %v680_v56 = vpop.permute.xlu0 %679 }
 0x34b   :  { %728 = vst.msk [vmem:[%s1278_s9 + $0x14] sm:$0xf] %vm722_vm5, %v773_v53  ;;  %v774_v59 = vpack.c.bf16 %v688_v54, %v688_v54  ;;  %v689_v55 = vadd.f32 %v680_v56, %v641_v52 }
 0x34d   :  { %729 = vst.msk [vmem:[%s1278_s9 + $0x18] sm:$0xf] %vm722_vm5, %v774_v59  ;;  %v775_v58 = vpack.c.bf16 %v689_v55, %v689_v55 }
 0x34f   :  { %730 = vst.msk [vmem:[%s1278_s9 + $0x1c] sm:$0xf] %vm722_vm5, %v775_v58 }

// kernel: discriminator_forward.8
= control target key start
LH: loop header
LB: loop body
LE: loop exit
PB: predicated region body
PF: predicated region fallthrough
CT: control target
= control target key end

     0   :  { %s1945_s13 = smov 127   ;;  %s1946_s14 = smov 125   ;;  %v1948_v14 = vmov 0   ;;  %vm93_vm0 = vcmask 138240   ;;  %vm155_vm1 = vcmask 121856   ;;  %vm216_vm2 = vcmask 113664   ;;  %s2732_s1 = inlined_call_operand.vmem [shape: bf16[64,18], index: 1, kind: input, shape index: {}]   ;;  %s2733_s3 = inlined_call_operand.vmem [shape: bf16[64,18], index: 3, kind: input, shape index: {}]   ;;  %s2734_s2 = inlined_call_operand.vmem [shape: bf16[64,18], index: 2, kind: input, shape index: {}]   ;;  %s2735_s4 = inlined_call_operand.vmem [shape: bf16[64,18], index: 4, kind: input, shape index: {}]   ;;  %s2736_s0 = inlined_call_operand.vmem [shape: bf16[128,576], index: 0, kind: input, shape index: {}]   ;;  %s2737_s5 = inlined_call_operand.vmem [shape: f32[128,1], index: 5, kind: input, shape index: {}]   ;;  %s2738_s8 = inlined_call_operand.vmem [shape: f32[1,18], index: 8, kind: input, shape index: {}]   ;;  %s2739_s6 = inlined_call_operand.vmem [shape: f32[128,1], index: 6, kind: input, shape index: {}]   ;;  %s2740_s7 = inlined_call_operand.vmem [shape: f32[128,1], index: 7, kind: input, shape index: {}]   ;;  %s2741_s9 = inlined_call_operand.vmem [shape: bf16[128,18], index: 9, kind: output, shape index: {}]  }
   0x1   :  { %v2002_v0 = vld [vmem:[%s2732_s1] sm:$0xff]   ;;  %v2007_v1 = vld [vmem:[%s2732_s1 + $0x8] sm:$0xff]   ;;  %v2018_v2 = vld [vmem:[%s2732_s1 + $0x10] sm:$0xff]   ;;  %s1947_s19 = smov 124   ;;  %1839 = vset.pattern.permute.xlu0 %v1948_v14  ;;  %1840 = vset.pattern.permute.xlu1 %v1948_v14  ;;  %vm609_vm3 = vcmask 523264   ;;  %vm980_vm4 = vcmask 146432  }
   0x2   :  { %85 = vrot.lane.b32.xlu0 %v2002_v0, %s1945_s13  ;;  %87 = vrot.lane.b32.xlu1 %v2007_v1, %s1945_s13  ;;  %v2027_v3 = vld [vmem:[%s2732_s1 + $0x18] sm:$0xff]   ;;  %v2036_v4 = vld [vmem:[%s2733_s3] sm:$0xff]   ;;  %vm1525_vm5 = vcmask 142336  }
   0x3   :  { %v2043_v5 = vld [vmem:[%s2734_s2] sm:$0xff]   ;;  %v2048_v6 = vld [vmem:[%s2733_s3 + $0x8] sm:$0xff]   ;;  %v2065_v9 = vld [vmem:[%s2733_s3 + $0x10] sm:$0xff]  }
   0x4   :  { %v1859_v7 = vld [vmem:[%s2736_s0 + $0x4] ss:$20 sps:$4 sm:$0xff]   ;;  %v2060_v8 = vld [vmem:[%s2734_s2 + $0x8] sm:$0xff]   ;;  %v2077_v11 = vld [vmem:[%s2734_s2 + $0x10] sm:$0xff]  }
   0x5   :  { %666 = vmatprep.mubr.bf16.mxu0 %v1859_v7  ;;  %v1862_v10 = vld [vmem:[%s2736_s0 + $0xc] ss:$20 sps:$4 sm:$0xff]   ;;  %v2084_v12 = vld [vmem:[%s2733_s3 + $0x18] sm:$0xff]   ;;  %v315_v17 = vld [vmem:[%s2737_s5 + $0x10] sm:$0xff] }
   0x6   :  { %147 = vrot.lane.b32.xlu0 %v2002_v0, %s1946_s14  ;;  %149 = vrot.lane.b32.xlu1 %v2007_v1, %s1946_s14  ;;  %v2089_v13 = vld [vmem:[%s2734_s2 + $0x18] sm:$0xff]   ;;  %v313_v15 = vld [vmem:[%s2737_s5] sm:$0xff] }
   0x7   :  { %763 = vmatprep.mubr.bf16.mxu1 %v1862_v10  ;;  %v314_v16 = vld [vmem:[%s2737_s5 + $0x8] sm:$0xff]  ;;  %v316_v18 = vld [vmem:[%s2737_s5 + $0x18] sm:$0xff]  ;;  %v317_v19 = vld [vmem:[%s2737_s5 + $0x20] sm:$0xff] }
   0x8   :  { %v318_v20 = vld [vmem:[%s2737_s5 + $0x28] sm:$0xff]  ;;  %v319_v21 = vld [vmem:[%s2737_s5 + $0x30] sm:$0xff]  ;;  %v320_v22 = vld [vmem:[%s2737_s5 + $0x38] sm:$0xff] }
   0x9   :  { %v321_v23 = vld [vmem:[%s2737_s5 + $0x40] sm:$0xff]  ;;  %v322_v24 = vld [vmem:[%s2737_s5 + $0x48] sm:$0xff]  ;;  %v323_v26 = vld [vmem:[%s2737_s5 + $0x50] sm:$0xff] }
   0xa   :  { %89 = vrot.lane.b32.xlu0 %v2018_v2, %s1945_s13  ;;  %151 = vrot.lane.b32.xlu1 %v2018_v2, %s1946_s14  ;;  %v324_v28 = vld [vmem:[%s2737_s5 + $0x58] sm:$0xff]  ;;  %v1853_v29 = vld [vmem:[%s2735_s4] sm:$0xff]  }
   0xb   :  { %v325_v31 = vld [vmem:[%s2737_s5 + $0x60] sm:$0xff]  ;;  %v326_v33 = vld [vmem:[%s2737_s5 + $0x68] sm:$0xff]  ;;  %v327_v36 = vld [vmem:[%s2737_s5 + $0x70] sm:$0xff] }
   0xc   :  { %v1854_v34 = vld [vmem:[%s2735_s4 + $0x8] sm:$0xff]   ;;  %v328_v38 = vld [vmem:[%s2737_s5 + $0x78] sm:$0xff]  ;;  %v1855_v39 = vld [vmem:[%s2735_s4 + $0x10] sm:$0xff]  }
   0xd   :  { %v1856_v42 = vld [vmem:[%s2735_s4 + $0x18] sm:$0xff]   ;;  %v1857_v54 = vld [vmem:[%s2736_s0] ss:$20 sps:$4 sm:$0xff]   ;;  %v1871_v7 = vld [vmem:[%s2736_s0 + $0x50] ss:$20 sps:$4 sm:$0xff]  }
   0xe   :  { %91 = vrot.lane.b32.xlu0 %v2027_v3, %s1945_s13  ;;  %153 = vrot.lane.b32.xlu1 %v2027_v3, %s1946_s14  ;;  %v1863_v56 = vld [vmem:[%s2736_s0 + $0x2c] ss:$20 sps:$4 sm:$0xff]   ;;  %v1860_v59 = vld [vmem:[%s2736_s0 + $0x8] ss:$20 sps:$4 sm:$0xff]  }
   0xf   :  { %v1866_v61 = vld [vmem:[%s2736_s0 + $0x34] ss:$20 sps:$4 sm:$0xff]   ;;  %v1878_v10 = vld [vmem:[%s2736_s0 + $0x84] ss:$20 sps:$4 sm:$0xff]   ;;  %v1884_v14 = vld [vmem:[%s2736_s0 + $0xac] ss:$20 sps:$4 sm:$0xff]  }
  0x10   :  { %v1865_v63 = vld [vmem:[%s2736_s0 + $0x28] ss:$20 sps:$4 sm:$0xff]  }
  0x12   :  { %127 = vrot.lane.b32.xlu0 %v2036_v4, %s1945_s13  ;;  %188 = vrot.lane.b32.xlu1 %v2043_v5, %s1946_s14 }
  0x16   :  { %129 = vrot.lane.b32.xlu0 %v2048_v6, %s1945_s13  ;;  %190 = vrot.lane.b32.xlu1 %v2060_v8, %s1946_s14 }
  0x1a   :  { %131 = vrot.lane.b32.xlu0 %v2065_v9, %s1945_s13  ;;  %192 = vrot.lane.b32.xlu1 %v2077_v11, %s1946_s14 }
  0x1e   :  { %133 = vrot.lane.b32.xlu0 %v2084_v12, %s1945_s13  ;;  %194 = vrot.lane.b32.xlu1 %v2089_v13, %s1946_s14 }
  0x22   :  { %208 = vrot.lane.b32.xlu0 %v2002_v0, %s1947_s19  ;;  %210 = vrot.lane.b32.xlu1 %v2007_v1, %s1947_s19 }
  0x26   :  { %212 = vrot.lane.b32.xlu0 %v2018_v2, %s1947_s19  ;;  %214 = vrot.lane.b32.xlu1 %v2027_v3, %s1947_s19 }
  0x2a   :  { %331 = vperm.xlu0 %1839, %v313_v15   ;;  %336 = vperm.xlu1 %1840, %v314_v16   ;;  %v1883_v15 = vld [vmem:[%s2736_s0 + $0xa0] ss:$20 sps:$4 sm:$0xff]  }
  0x2b   :  { %v1887_v16 = vld [vmem:[%s2736_s0 + $0xcc] ss:$20 sps:$4 sm:$0xff]  }
  0x2e   :  { %341 = vperm.xlu1 %1840, %v315_v17   ;;  %346 = vperm.xlu0 %1839, %v316_v18   ;;  %v1886_v17 = vld [vmem:[%s2736_s0 + $0xa8] ss:$20 sps:$4 sm:$0xff]  }
  0x2f   :  { %v1890_v18 = vld [vmem:[%s2736_s0 + $0xd4] ss:$20 sps:$4 sm:$0xff]  }
  0x32   :  { %351 = vperm.xlu1 %1840, %v317_v19   ;;  %356 = vperm.xlu0 %1839, %v318_v20   ;;  %v1889_v19 = vld [vmem:[%s2736_s0 + $0xc8] ss:$20 sps:$4 sm:$0xff]  }
  0x33   :  { %v1893_v20 = vld [vmem:[%s2736_s0 + $0xf4] ss:$20 sps:$4 sm:$0xff]  }
  0x36   :  { %361 = vperm.xlu1 %1840, %v319_v21   ;;  %366 = vperm.xlu0 %1839, %v320_v22   ;;  %v1892_v21 = vld [vmem:[%s2736_s0 + $0xd0] ss:$20 sps:$4 sm:$0xff]  }
  0x37   :  { %v1896_v22 = vld [vmem:[%s2736_s0 + $0xfc] ss:$20 sps:$4 sm:$0xff]  }
  0x3a   :  { %371 = vperm.xlu1 %1840, %v321_v23   ;;  %376 = vperm.xlu0 %1839, %v322_v24   ;;  %v1895_v23 = vld [vmem:[%s2736_s0 + $0xf0] ss:$20 sps:$4 sm:$0xff]  }
  0x3b   :  { %v1899_v24 = vld [vmem:[%s2736_s0 + $0x11c] ss:$20 sps:$4 sm:$0xff]  }
  0x3e   :  { %381 = vperm.xlu1 %1840, %v323_v26   ;;  %386 = vperm.xlu0 %1839, %v324_v28   ;;  %v1902_v26 = vld [vmem:[%s2736_s0 + $0x124] ss:$20 sps:$4 sm:$0xff]  }
  0x3f   :  { %v1905_v28 = vld [vmem:[%s2736_s0 + $0x10] ss:$20 sps:$4 sm:$0xff]  }
  0x42   :  { %391 = vperm.xlu1 %1840, %v325_v31   ;;  %396 = vperm.xlu0 %1839, %v326_v33   ;;  %v1906_v31 = vld [vmem:[%s2736_s0 + $0x38] ss:$20 sps:$4 sm:$0xff]  }
  0x43   :  { %v1908_v33 = vld [vmem:[%s2736_s0 + $0xd8] ss:$20 sps:$4 sm:$0xff]  }
  0x46   :  { %401 = vperm.xlu1 %1840, %v327_v36   ;;  %406 = vperm.xlu0 %1839, %v328_v38   ;;  %v1912_v36 = vld [vmem:[%s2736_s0 + $0x128] ss:$20 sps:$4 sm:$0xff]  }
  0x74   :  { %v86_v25 = vpop.permute.xlu0 %85  ;;  %v88_v27 = vpop.permute.xlu1 %87 }
  0x75   :  { %1815 = vmatprep.subr.msk.bf16.mxu0 %vm93_vm0, %v86_v25  ;;  %v1898_v25 = vld [vmem:[%s2736_s0 + $0xf8] ss:$20 sps:$4 sm:$0xff]  }
  0x76   :  { %1644 = vmatpush3.bf16.msra.mxu0 %v2002_v0 }
  0x77   :  { %1816 = vmatprep.subr.msk.bf16.mxu0 %vm93_vm0, %v88_v27  ;;  %v1901_v27 = vld [vmem:[%s2736_s0 + $0x118] ss:$20 sps:$4 sm:$0xff]  }
  0x78   :  { %v148_v30 = vpop.permute.xlu0 %147  ;;  %v150_v32 = vpop.permute.xlu1 %149 }
  0x79   :  { %1819 = vmatprep.subr.msk.bf16.mxu1 %vm155_vm1, %v148_v30  ;;  %v1907_v30 = vld [vmem:[%s2736_s0 + $0xb0] ss:$20 sps:$4 sm:$0xff]  }
  0x7a   :  { %1646 = vmatpush3.bf16.msra.mxu0 %v2007_v1  ;;  %1708 = vmatpush3.bf16.msra.mxu1 %v1853_v29  ;;  %v1869_v1 = vld [vmem:[%s2736_s0 + $0x54] ss:$20 sps:$4 sm:$0xff]  }
  0x7b   :  { %1820 = vmatprep.subr.msk.bf16.mxu1 %vm155_vm1, %v150_v32  ;;  %v1904_v29 = vld [vmem:[%s2736_s0 + $0x120] ss:$20 sps:$4 sm:$0xff]  }
  0x7c   :  { %v90_v35 = vpop.permute.xlu0 %89  ;;  %v152_v37 = vpop.permute.xlu1 %151  ;;  %v1909_v32 = vld [vmem:[%s2736_s0 + $0x60] ss:$20 sps:$4 sm:$0xff]  }
  0x7d   :  { %1817 = vmatprep.subr.msk.bf16.mxu0 %vm93_vm0, %v90_v35  ;;  %v1910_v35 = vld [vmem:[%s2736_s0 + $0x88] ss:$20 sps:$4 sm:$0xff]  }
  0x7e   :  { %1648 = vmatpush3.bf16.msra.mxu0 %v2018_v2  ;;  %1710 = vmatpush3.bf16.msra.mxu1 %v1854_v34  ;;  %v1911_v34 = vld [vmem:[%s2736_s0 + $0x100] ss:$20 sps:$4 sm:$0xff]  }
  0x7f   :  { %1821 = vmatprep.subr.msk.bf16.mxu1 %vm155_vm1, %v152_v37 }
  0x80   :  { %v92_v40 = vpop.permute.xlu0 %91  ;;  %v154_v41 = vpop.permute.xlu1 %153 }
  0x81   :  { %1818 = vmatprep.subr.msk.bf16.mxu0 %vm93_vm0, %v92_v40 }
  0x82   :  { %1650 = vmatpush3.bf16.msra.mxu0 %v2027_v3  ;;  %1712 = vmatpush3.bf16.msra.mxu1 %v1855_v39  ;;  %v1868_v3 = vld [vmem:[%s2736_s0 + $0x30] ss:$20 sps:$4 sm:$0xff]  }
  0x83   :  { %1651 = vmatprep.subr.bf16.mxu0 %v2036_v4  ;;  %1822 = vmatprep.subr.msk.bf16.mxu1 %vm155_vm1, %v154_v41 }
  0x84   :  { %v128_v43 = vpop.permute.xlu0 %127  ;;  %v189_v44 = vpop.permute.xlu1 %188 }
  0x85   :  { %v136_v45 = vsel %vm93_vm0, %v128_v43, 0 }
  0x86   :  { %1652 = vmatpush3.bf16.msra.mxu0 %v2043_v5  ;;  %1714 = vmatpush3.bf16.msra.mxu1 %v1856_v42  ;;  %v1872_v5 = vld [vmem:[%s2736_s0 + $0x5c] ss:$20 sps:$4 sm:$0xff]  }
  0x87   :  { %1653 = vmatprep.subr.bf16.mxu0 %v2048_v6  ;;  %1823 = vmatprep.subr.msk.bf16.mxu1 %vm155_vm1, %v189_v44 }
  0x88   :  { %v130_v46 = vpop.permute.xlu0 %129  ;;  %v191_v47 = vpop.permute.xlu1 %190 }
  0x89   :  { %v139_v48 = vsel %vm93_vm0, %v130_v46, 0 }
  0x8a   :  { %1654 = vmatpush3.bf16.msra.mxu0 %v2060_v8  ;;  %1716 = vmatpush3.bf16.msra.mxu1 %v136_v45  ;;  %v1875_v8 = vld [vmem:[%s2736_s0 + $0x7c] ss:$20 sps:$4 sm:$0xff]  }
  0x8b   :  { %1655 = vmatprep.subr.bf16.mxu0 %v2065_v9  ;;  %1824 = vmatprep.subr.msk.bf16.mxu1 %vm155_vm1, %v191_v47  ;;  %v1874_v9 = vld [vmem:[%s2736_s0 + $0x58] ss:$20 sps:$4 sm:$0xff]  }
  0x8c   :  { %v132_v49 = vpop.permute.xlu0 %131  ;;  %v193_v50 = vpop.permute.xlu1 %192 }
  0x8d   :  { %v142_v51 = vsel %vm93_vm0, %v132_v49, 0 }
  0x8e   :  { %1656 = vmatpush3.bf16.msra.mxu0 %v2077_v11  ;;  %1718 = vmatpush3.bf16.msra.mxu1 %v139_v48  ;;  %v1877_v11 = vld [vmem:[%s2736_s0 + $0x78] ss:$20 sps:$4 sm:$0xff]  }
  0x8f   :  { %1657 = vmatprep.subr.bf16.mxu0 %v2084_v12  ;;  %1825 = vmatprep.subr.msk.bf16.mxu1 %vm155_vm1, %v193_v50  ;;  %v1881_v12 = vld [vmem:[%s2736_s0 + $0xa4] ss:$20 sps:$4 sm:$0xff]  }
  0x90   :  { %v134_v52 = vpop.permute.xlu0 %133  ;;  %v195_v53 = vpop.permute.xlu1 %194 }
  0x91   :  { %v145_v55 = vsel %vm93_vm0, %v134_v52, 0 }
  0x92   :  { %1658 = vmatpush3.bf16.msra.mxu0 %v2089_v13  ;;  %1720 = vmatpush3.bf16.msra.mxu1 %v142_v51  ;;  %v1880_v13 = vld [vmem:[%s2736_s0 + $0x80] ss:$20 sps:$4 sm:$0xff]  }
  0x93   :  { %1826 = vmatprep.subr.msk.bf16.mxu1 %vm155_vm1, %v195_v53 }
  0x94   :  { %v209_v57 = vpop.permute.xlu0 %208  ;;  %v211_v60 = vpop.permute.xlu1 %210 }
  0x95   :  { %667 = vmatmul.mubr.bf16.vlgmr.msra.gmra.mrb[0].mxu0 %v1857_v54  ;;  %1827 = vmatprep.subr.msk.bf16.mxu0 %vm216_vm2, %v209_v57  ;;  %v218_v58 = vsel %vm216_vm2, %v209_v57, 0  ;;  %v221_v62 = vsel %vm216_vm2, %v211_v60, 0 }
  0x96   :  { %1722 = vmatpush3.bf16.msra.mxu1 %v145_v55  ;;  %1784 = vmatpush3.bf16.msra.mxu0 %v218_v58 }
  0x97   :  { %1828 = vmatprep.subr.msk.bf16.mxu1 %vm216_vm2, %v209_v57  ;;  %674 = vmatprep.mubr.bf16.mxu0 %v1863_v56 }
  0x98   :  { %1829 = vmatprep.subr.msk.bf16.mxu0 %vm216_vm2, %v211_v60  ;;  %v213_v0 = vpop.permute.xlu0 %212  ;;  %v215_v4 = vpop.permute.xlu1 %214 }
  0x99   :  { %764 = vmatmul.mubr.bf16.vlgmr.msra.gmra.mrb[0].mxu1 %v1860_v59  ;;  %v224_v2 = vsel %vm216_vm2, %v213_v0, 0  ;;  %v227_v6 = vsel %vm216_vm2, %v215_v4, 0 }
  0x9a   :  { %1811 = vmatpush3.bf16.msra.mxu1 %v218_v58  ;;  %771 = vmatprep.mubr.bf16.mxu1 %v1866_v61 }
  0x9b   :  { %1830 = vmatprep.subr.msk.bf16.mxu1 %vm216_vm2, %v211_v60  ;;  %1786 = vmatpush3.bf16.msra.mxu0 %v221_v62 }
  0x9c   :  { %1831 = vmatprep.subr.msk.bf16.mxu0 %vm216_vm2, %v213_v0 }
  0x9d   :  { %675 = vmatmul.mubr.bf16.gmra.mrb[4].mxu0 %v1865_v63 }
  0x9e   :  { %682 = vmatprep.mubr.bf16.mxu0 %v1869_v1  ;;  %1812 = vmatpush3.bf16.msra.mxu1 %v221_v62 }
  0x9f   :  { %1832 = vmatprep.subr.msk.bf16.mxu1 %vm216_vm2, %v213_v0  ;;  %1788 = vmatpush3.bf16.msra.mxu0 %v224_v2 }
  0xa0   :  { %1833 = vmatprep.subr.msk.bf16.mxu0 %vm216_vm2, %v215_v4 }
  0xa1   :  { %772 = vmatmul.mubr.bf16.gmra.mrb[4].mxu1 %v1868_v3 }
  0xa2   :  { %779 = vmatprep.mubr.bf16.mxu1 %v1872_v5  ;;  %1813 = vmatpush3.bf16.msra.mxu1 %v224_v2 }
  0xa3   :  { %1834 = vmatprep.subr.msk.bf16.mxu1 %vm216_vm2, %v215_v4  ;;  %1790 = vmatpush3.bf16.msra.mxu0 %v227_v6 }
  0xa5   :  { %683 = vmatmul.mubr.bf16.gmra.mrb[8].mxu0 %v1871_v7 }
  0xa6   :  { %690 = vmatprep.mubr.bf16.mxu0 %v1875_v8  ;;  %1814 = vmatpush3.bf16.msra.mxu1 %v227_v6 }
  0xa9   :  { %780 = vmatmul.mubr.bf16.gmra.mrb[8].mxu1 %v1874_v9  ;;  %v332_v41 = vpop.permute.xlu0 %331  ;;  %v337_v45 = vpop.permute.xlu1 %336 }
  0xaa   :  { %787 = vmatprep.mubr.bf16.mxu1 %v1878_v10 }
  0xad   :  { %691 = vmatmul.mubr.bf16.gmra.mrb[12].mxu0 %v1877_v11  ;;  %v342_v59 = vpop.permute.xlu1 %341  ;;  %v347_v63 = vpop.permute.xlu0 %346 }
  0xae   :  { %698 = vmatprep.mubr.bf16.mxu0 %v1881_v12 }
  0xb1   :  { %788 = vmatmul.mubr.bf16.gmra.mrb[12].mxu1 %v1880_v13  ;;  %v352_v13 = vpop.permute.xlu1 %351 }
  0xb2   :  { %795 = vmatprep.mubr.bf16.mxu1 %v1884_v14 }
  0xb5   :  { %699 = vmatmul.mubr.bf16.gmra.mrb[16].mxu0 %v1883_v15 }
  0xb6   :  { %706 = vmatprep.mubr.bf16.mxu0 %v1887_v16 }
  0xb9   :  { %796 = vmatmul.mubr.bf16.gmra.mrb[16].mxu1 %v1886_v17  ;;  %v357_v17 = vpop.permute.xlu0 %356 }
  0xba   :  { %803 = vmatprep.mubr.bf16.mxu1 %v1890_v18 }
  0xbd   :  { %707 = vmatmul.mubr.bf16.gmra.mrb[20].mxu0 %v1889_v19 }
  0xbe   :  { %714 = vmatprep.mubr.bf16.mxu0 %v1893_v20 }
  0xc1   :  { %804 = vmatmul.mubr.bf16.gmra.mrb[20].mxu1 %v1892_v21 }
  0xc2   :  { %811 = vmatprep.mubr.bf16.mxu1 %v1896_v22 }
  0xc5   :  { %715 = vmatmul.mubr.bf16.gmra.mrb[24].mxu0 %v1895_v23 }
  0xc6   :  { %722 = vmatprep.mubr.bf16.mxu0 %v1899_v24 }
  0xc9   :  { %812 = vmatmul.mubr.bf16.gmra.mrb[24].mxu1 %v1898_v25 }
  0xca   :  { %819 = vmatprep.mubr.bf16.mxu1 %v1902_v26 }
  0xcd   :  { %723 = vmatmul.mubr.bf16.gmra.mrb[28].mxu0 %v1901_v27 }
  0xce   :  { %1791 = vmatprep.mubr.msk.bf16.mxu0 %vm609_vm3, %v1905_v28 }
  0xd1   :  { %820 = vmatmul.mubr.bf16.gmra.mrb[28].mxu1 %v1904_v29 }
  0xd2   :  { %1799 = vmatprep.mubr.msk.bf16.mxu1 %vm609_vm3, %v1907_v30 }
  0xd5   :  { %1792 = vmatmul.mubr.msk.bf16.vlgmr.msra.gmra.mrb[32].mxu0 %vm609_vm3, %v1906_v31  ;;  %v362_v31 = vpop.permute.xlu1 %361 }
  0xd6   :  { %1795 = vmatprep.mubr.msk.bf16.mxu0 %vm609_vm3, %v1909_v32 }
  0xd9   :  { %1800 = vmatmul.mubr.msk.bf16.vlgmr.msra.gmra.mrb[32].mxu1 %vm609_vm3, %v1908_v33 }
  0xda   :  { %1803 = vmatprep.mubr.msk.bf16.mxu1 %vm609_vm3, %v1911_v34 }
  0xdd   :  { %1796 = vmatmul.mubr.msk.bf16.gmra.mrb[36].mxu0 %vm609_vm3, %v1910_v35  ;;  %v367_v35 = vpop.permute.xlu0 %366 }
  0xe1   :  { %1804 = vmatmul.mubr.msk.bf16.gmra.mrb[36].mxu1 %vm609_vm3, %v1912_v36 }
 0x168   :  { %v1659_v37 = vpop.f32.mrb[0].mxu0 }
 0x169   :  { %v1660_v38 = vpop.f32.mrb[1].mxu0 }
 0x16a   :  { %v1661_v39 = vadd.f32 %v1660_v38, %v1659_v37  ;;  %v1662_v40 = vpop.f32.mrb[2].mxu0 }
 0x16b   :  { %v1663_v42 = vpop.f32.mrb[3].mxu0 }
 0x16c   :  { %v1664_v43 = vadd.f32 %v1663_v42, %v1662_v40  ;;  %v1723_v44 = vpop.f32.mrb[0].mxu1  ;;  %v669_v47 = vadd.f32 %v1661_v39, %v332_v41 }
 0x16d   :  { %v1724_v46 = vpop.f32.mrb[1].mxu1 }
 0x16e   :  { %v1725_v48 = vadd.f32 %v1724_v46, %v1723_v44  ;;  %v1726_v49 = vpop.f32.mrb[2].mxu1  ;;  %v672_v51 = vadd.f32 %v1664_v43, %v337_v45 }
 0x16f   :  { %v1727_v50 = vpop.f32.mrb[3].mxu1 }
 0x170   :  { %v1728_v52 = vadd.f32 %v1727_v50, %v1726_v49  ;;  %v1665_v53 = vpop.f32.mrb[4].mxu0  ;;  %v2323_v54 = vadd.f32 %v1725_v48, %v669_v47  ;;  %v372_v50 = vpop.permute.xlu1 %371 }
 0x171   :  { %v1666_v55 = vpop.f32.mrb[5].mxu0 }
 0x172   :  { %v1667_v56 = vadd.f32 %v1666_v55, %v1665_v53  ;;  %v1668_v57 = vpop.f32.mrb[6].mxu0  ;;  %v2325_v58 = vadd.f32 %v1728_v52, %v672_v51  ;;  %v377_v53 = vpop.permute.xlu0 %376 }
 0x173   :  { %v1669_v60 = vpop.f32.mrb[7].mxu0 }
 0x174   :  { %v1670_v61 = vadd.f32 %v1669_v60, %v1668_v57  ;;  %v1729_v62 = vpop.f32.mrb[4].mxu1  ;;  %v677_v1 = vadd.f32 %v1667_v56, %v342_v59 }
 0x175   :  { %v1730_v0 = vpop.f32.mrb[5].mxu1 }
 0x176   :  { %v1731_v2 = vadd.f32 %v1730_v0, %v1729_v62  ;;  %v1732_v3 = vpop.f32.mrb[6].mxu1  ;;  %v680_v5 = vadd.f32 %v1670_v61, %v347_v63 }
 0x177   :  { %v1733_v4 = vpop.f32.mrb[7].mxu1 }
 0x178   :  { %v1734_v6 = vadd.f32 %v1733_v4, %v1732_v3  ;;  %v1671_v7 = vpop.f32.mrb[8].mxu0  ;;  %v2327_v8 = vadd.f32 %v1731_v2, %v677_v1 }
 0x179   :  { %v1672_v9 = vpop.f32.mrb[9].mxu0 }
 0x17a   :  { %v1673_v10 = vadd.f32 %v1672_v9, %v1671_v7  ;;  %v1674_v11 = vpop.f32.mrb[10].mxu0  ;;  %v2329_v12 = vadd.f32 %v1734_v6, %v680_v5  ;;  %v382_v6 = vpop.permute.xlu1 %381 }
 0x17b   :  { %v1675_v14 = vpop.f32.mrb[11].mxu0 }
 0x17c   :  { %v1676_v15 = vadd.f32 %v1675_v14, %v1674_v11  ;;  %v1735_v16 = vpop.f32.mrb[8].mxu1  ;;  %v685_v19 = vadd.f32 %v1673_v10, %v352_v13  ;;  %v387_v10 = vpop.permute.xlu0 %386 }
 0x17d   :  { %v1736_v18 = vpop.f32.mrb[9].mxu1 }
 0x17e   :  { %v1737_v20 = vadd.f32 %v1736_v18, %v1735_v16  ;;  %v1738_v21 = vpop.f32.mrb[10].mxu1  ;;  %v688_v23 = vadd.f32 %v1676_v15, %v357_v17 }
 0x17f   :  { %v1739_v22 = vpop.f32.mrb[11].mxu1 }
 0x180   :  { %v1740_v24 = vadd.f32 %v1739_v22, %v1738_v21  ;;  %v1677_v25 = vpop.f32.mrb[12].mxu0  ;;  %v2331_v26 = vadd.f32 %v1737_v20, %v685_v19 }
 0x181   :  { %v1678_v27 = vpop.f32.mrb[13].mxu0 }
 0x182   :  { %v1679_v28 = vadd.f32 %v1678_v27, %v1677_v25  ;;  %v1680_v29 = vpop.f32.mrb[14].mxu0  ;;  %v2333_v30 = vadd.f32 %v1740_v24, %v688_v23 }
 0x183   :  { %v1681_v32 = vpop.f32.mrb[15].mxu0 }
 0x184   :  { %v1682_v33 = vadd.f32 %v1681_v32, %v1680_v29  ;;  %v1741_v34 = vpop.f32.mrb[12].mxu1  ;;  %v693_v37 = vadd.f32 %v1679_v28, %v362_v31  ;;  %v392_v29 = vpop.permute.xlu1 %391 }
 0x185   :  { %v1742_v36 = vpop.f32.mrb[13].mxu1 }
 0x186   :  { %v1743_v38 = vadd.f32 %v1742_v36, %v1741_v34  ;;  %v1744_v39 = vpop.f32.mrb[14].mxu1  ;;  %v696_v41 = vadd.f32 %v1682_v33, %v367_v35  ;;  %v397_v35 = vpop.permute.xlu0 %396 }
 0x187   :  { %v1745_v40 = vpop.f32.mrb[15].mxu1 }
 0x188   :  { %v1746_v42 = vadd.f32 %v1745_v40, %v1744_v39  ;;  %v1683_v43 = vpop.f32.mrb[16].mxu0  ;;  %v2335_v44 = vadd.f32 %v1743_v38, %v693_v37 }
 0x189   :  { %v1684_v45 = vpop.f32.mrb[17].mxu0 }
 0x18a   :  { %v1685_v46 = vadd.f32 %v1684_v45, %v1683_v43  ;;  %v1686_v47 = vpop.f32.mrb[18].mxu0  ;;  %v2337_v48 = vadd.f32 %v1746_v42, %v696_v41 }
 0x18b   :  { %v1687_v49 = vpop.f32.mrb[19].mxu0 }
 0x18c   :  { %v1688_v51 = vadd.f32 %v1687_v49, %v1686_v47  ;;  %v1747_v52 = vpop.f32.mrb[16].mxu1  ;;  %v701_v56 = vadd.f32 %v1685_v46, %v372_v50  ;;  %v402_v50 = vpop.permute.xlu1 %401 }
 0x18d   :  { %v1748_v55 = vpop.f32.mrb[17].mxu1 }
 0x18e   :  { %v1749_v57 = vadd.f32 %v1748_v55, %v1747_v52  ;;  %v1750_v59 = vpop.f32.mrb[18].mxu1  ;;  %v704_v61 = vadd.f32 %v1688_v51, %v377_v53 }
 0x18f   :  { %v1751_v60 = vpop.f32.mrb[19].mxu1 }
 0x190   :  { %v1752_v62 = vadd.f32 %v1751_v60, %v1750_v59  ;;  %v1689_v63 = vpop.f32.mrb[20].mxu0  ;;  %v2339_v0 = vadd.f32 %v1749_v57, %v701_v56  ;;  %v407_v56 = vpop.permute.xlu0 %406 }
 0x191   :  { %v1690_v1 = vpop.f32.mrb[21].mxu0 }
 0x192   :  { %v1691_v2 = vadd.f32 %v1690_v1, %v1689_v63  ;;  %v1692_v3 = vpop.f32.mrb[22].mxu0  ;;  %v2341_v4 = vadd.f32 %v1752_v62, %v704_v61 }
 0x193   :  { %v1693_v5 = vpop.f32.mrb[23].mxu0 }
 0x194   :  { %v1694_v7 = vadd.f32 %v1693_v5, %v1692_v3  ;;  %v1753_v9 = vpop.f32.mrb[20].mxu1  ;;  %v709_v13 = vadd.f32 %v1691_v2, %v382_v6 }
 0x195   :  { %v1754_v11 = vpop.f32.mrb[21].mxu1 }
 0x196   :  { %v1755_v14 = vadd.f32 %v1754_v11, %v1753_v9  ;;  %v1756_v15 = vpop.f32.mrb[22].mxu1  ;;  %v712_v17 = vadd.f32 %v1694_v7, %v387_v10 }
 0x197   :  { %v1757_v16 = vpop.f32.mrb[23].mxu1 }
 0x198   :  { %v1758_v18 = vadd.f32 %v1757_v16, %v1756_v15  ;;  %v1695_v19 = vpop.f32.mrb[24].mxu0  ;;  %v806_v20 = vadd.f32 %v1755_v14, %v709_v13  ;;  %v2354_v14 = vld [vmem:[%s2738_s8] ss:$0 sm:$0xff] }
 0x199   :  { %v1696_v21 = vpop.f32.mrb[25].mxu0 }
 0x19a   :  { %v1697_v22 = vadd.f32 %v1696_v21, %v1695_v19  ;;  %v1698_v23 = vpop.f32.mrb[26].mxu0  ;;  %v809_v24 = vadd.f32 %v1758_v18, %v712_v17 }
 0x19b   :  { %v1699_v25 = vpop.f32.mrb[27].mxu0 }
 0x19c   :  { %v1700_v27 = vadd.f32 %v1699_v25, %v1698_v23  ;;  %v1759_v28 = vpop.f32.mrb[24].mxu1  ;;  %v717_v32 = vadd.f32 %v1697_v22, %v392_v29 }
 0x19d   :  { %v1760_v31 = vpop.f32.mrb[25].mxu1 }
 0x19e   :  { %v1761_v33 = vadd.f32 %v1760_v31, %v1759_v28  ;;  %v1762_v34 = vpop.f32.mrb[26].mxu1  ;;  %v720_v37 = vadd.f32 %v1700_v27, %v397_v35 }
 0x19f   :  { %v1763_v36 = vpop.f32.mrb[27].mxu1 }
 0x1a0   :  { %v1764_v38 = vadd.f32 %v1763_v36, %v1762_v34  ;;  %v1701_v39 = vpop.f32.mrb[28].mxu0  ;;  %v2343_v40 = vadd.f32 %v1761_v33, %v717_v32 }
 0x1a1   :  { %v1702_v41 = vpop.f32.mrb[29].mxu0 }
 0x1a2   :  { %v1703_v42 = vadd.f32 %v1702_v41, %v1701_v39  ;;  %v1704_v43 = vpop.f32.mrb[30].mxu0  ;;  %v2345_v45 = vadd.f32 %v1764_v38, %v720_v37 }
 0x1a3   :  { %v1705_v46 = vpop.f32.mrb[31].mxu0 }
 0x1a4   :  { %v1706_v47 = vadd.f32 %v1705_v46, %v1704_v43  ;;  %v1765_v49 = vpop.f32.mrb[28].mxu1  ;;  %v725_v52 = vadd.f32 %v1703_v42, %v402_v50 }
 0x1a5   :  { %v1766_v51 = vpop.f32.mrb[29].mxu1 }
 0x1a6   :  { %v1767_v53 = vadd.f32 %v1766_v51, %v1765_v49  ;;  %v1768_v55 = vpop.f32.mrb[30].mxu1  ;;  %v728_v59 = vadd.f32 %v1706_v47, %v407_v56 }
 0x1a7   :  { %v1769_v57 = vpop.f32.mrb[31].mxu1 }
 0x1a8   :  { %v1770_v60 = vadd.f32 %v1769_v57, %v1768_v55  ;;  %v1793_v61 = vpop.f32.mrb[32].mxu0  ;;  %v822_v62 = vadd.f32 %v1767_v53, %v725_v52 }
 0x1a9   :  { %v871_v63 = vadd.f32 %v1793_v61, %v2327_v8  ;;  %v862_v1 = vpop.f32.mrb[33].mxu0 }
 0x1aa   :  { %v863_v2 = vadd.f32 %v862_v1, %v2323_v54  ;;  %v1794_v3 = vpop.f32.mrb[34].mxu0  ;;  %v825_v5 = vadd.f32 %v1770_v60, %v728_v59 }
 0x1ab   :  { %v927_v6 = vmul.f32 0.2, %v871_v63  ;;  %v874_v7 = vadd.f32 %v1794_v3, %v2329_v12  ;;  %v865_v9 = vpop.f32.mrb[35].mxu0 }
 0x1ac   :  { %v925_v10 = vmul.f32 0.2, %v863_v2  ;;  %v866_v11 = vadd.f32 %v865_v9, %v2325_v58  ;;  %v1801_v13 = vpop.f32.mrb[32].mxu1 }
 0x1ad   :  { %v2356_v15 = vmax.f32 %v871_v63, %v927_v6  ;;  %v928_v8 = vmul.f32 0.2, %v874_v7  ;;  %v903_v16 = vadd.f32 %v1801_v13, %v806_v20  ;;  %v894_v54 = vpop.f32.mrb[33].mxu1 }
 0x1ae   :  { %v2358_v17 = vmax.f32 %v863_v2, %v925_v10  ;;  %v895_v18 = vadd.f32 %v894_v54, %v2339_v0  ;;  %v1802_v12 = vpop.f32.mrb[34].mxu1  ;;  %v926_v19 = vmul.f32 0.2, %v866_v11 }
 0x1af   :  { %v935_v21 = vmul.f32 0.2, %v903_v16  ;;  %v906_v58 = vadd.f32 %v1802_v12, %v809_v24  ;;  %v897_v22 = vpop.f32.mrb[35].mxu1  ;;  %v966_v23 = vmul.f32 %v2354_v14, %v2356_v15  ;;  %v2363_v25 = vmax.f32 %v874_v7, %v928_v8 }
 0x1b0   :  { %v933_v27 = vmul.f32 0.2, %v895_v18  ;;  %v898_v28 = vadd.f32 %v897_v22, %v2341_v4  ;;  %v1797_v20 = vpop.f32.mrb[36].mxu0  ;;  %v964_v29 = vmul.f32 %v2354_v14, %v2358_v17  ;;  %v2384_v46 = vmax.f32 %v866_v11, %v926_v19 }
 0x1b1   :  { %v2368_v31 = vmax.f32 %v903_v16, %v935_v21  ;;  %v936_v0 = vmul.f32 0.2, %v906_v58  ;;  %v887_v32 = vadd.f32 %v1797_v20, %v2335_v44  ;;  %v878_v33 = vpop.f32.mrb[37].mxu0  ;;  %v987_v24 = vsel %vm980_vm4, %v966_v23, 0.0 }
 0x1b2   :  { %v934_v34 = vmul.f32 0.2, %v898_v28  ;;  %v879_v35 = vadd.f32 %v878_v33, %v2331_v26  ;;  %v1798_v36 = vpop.f32.mrb[38].mxu0  ;;  %988 = vadd.xlane.f32.xlu0 %v987_v24  ;;  %v981_v37 = vsel %vm980_vm4, %v964_v29, 0.0  ;;  %v2374_v4 = vmax.f32 %v895_v18, %v933_v27 }
 0x1b3   :  { %v890_v38 = vadd.f32 %v1798_v36, %v2337_v48  ;;  %v881_v39 = vpop.f32.mrb[39].mxu0  ;;  %982 = vadd.xlane.f32.xlu1 %v981_v37  ;;  %v974_v41 = vmul.f32 %v2354_v14, %v2368_v31  ;;  %v2379_v44 = vmax.f32 %v906_v58, %v936_v0  ;;  %v967_v26 = vmul.f32 %v2354_v14, %v2363_v25 }
 0x1b4   :  { %v882_v42 = vadd.f32 %v881_v39, %v2333_v30  ;;  %v1805_v43 = vpop.f32.mrb[36].mxu1  ;;  %v931_v47 = vmul.f32 0.2, %v887_v32  ;;  %v2387_v51 = vmax.f32 %v898_v28, %v934_v34  ;;  %v972_v59 = vmul.f32 %v2354_v14, %v2374_v4 }
 0x1b5   :  { %v919_v49 = vadd.f32 %v1805_v43, %v822_v62  ;;  %v910_v50 = vpop.f32.mrb[37].mxu1  ;;  %v1011_v48 = vsel %vm980_vm4, %v974_v41, 0.0  ;;  %v932_v52 = vmul.f32 0.2, %v890_v38  ;;  %v990_v30 = vsel %vm980_vm4, %v967_v26, 0.0 }
 0x1b6   :  { %v911_v53 = vadd.f32 %v910_v50, %v2343_v40  ;;  %v1806_v55 = vpop.f32.mrb[38].mxu1  ;;  %1012 = vadd.xlane.f32.xlu0 %v1011_v48  ;;  %v975_v61 = vmul.f32 %v2354_v14, %v2379_v44  ;;  %v2396_v62 = vmax.f32 %v887_v32, %v931_v47  ;;  %v929_v63 = vmul.f32 0.2, %v879_v35 }
 0x1b7   :  { %v922_v56 = vadd.f32 %v1806_v55, %v825_v5  ;;  %v913_v57 = vpop.f32.mrb[39].mxu1  ;;  %991 = vadd.xlane.f32.xlu1 %v990_v30  ;;  %v1005_v40 = vsel %vm980_vm4, %v972_v59, 0.0  ;;  %v965_v1 = vmul.f32 %v2354_v14, %v2384_v46  ;;  %v2401_v2 = vmax.f32 %v890_v38, %v932_v52 }
 0x1b8   :  { %v914_v60 = vadd.f32 %v913_v57, %v2345_v45  ;;  %v930_v3 = vmul.f32 0.2, %v882_v42  ;;  %v1014_v5 = vsel %vm980_vm4, %v975_v61, 0.0  ;;  %v973_v45 = vmul.f32 %v2354_v14, %v2387_v51 }
 0x1b9   :  { %v2406_v6 = vmax.f32 %v879_v35, %v929_v63  ;;  %v937_v7 = vmul.f32 0.2, %v911_v53  ;;  %v984_v9 = vsel %vm980_vm4, %v965_v1, 0.0  ;;  %v970_v10 = vmul.f32 %v2354_v14, %v2396_v62 }
 0x1ba   :  { %1006 = vadd.xlane.f32.xlu0 %v1005_v40  ;;  %v2411_v11 = vmax.f32 %v882_v42, %v930_v3  ;;  %v938_v13 = vmul.f32 0.2, %v914_v60  ;;  %v1008_v8 = vsel %vm980_vm4, %v973_v45, 0.0  ;;  %v971_v16 = vmul.f32 %v2354_v14, %v2401_v2 }
 0x1bb   :  { %1015 = vadd.xlane.f32.xlu1 %v1014_v5  ;;  %v939_v54 = vmul.f32 0.2, %v919_v49  ;;  %v2416_v18 = vmax.f32 %v911_v53, %v937_v7  ;;  %v999_v12 = vsel %vm980_vm4, %v970_v10, 0.0  ;;  %v968_v19 = vmul.f32 %v2354_v14, %v2406_v6 }
 0x1bc   :  { %v940_v21 = vmul.f32 0.2, %v922_v56  ;;  %v2421_v58 = vmax.f32 %v914_v60, %v938_v13  ;;  %v1002_v22 = vsel %vm980_vm4, %v971_v16, 0.0  ;;  %v969_v23 = vmul.f32 %v2354_v14, %v2411_v11 }
 0x1bd   :  { %v2426_v27 = vmax.f32 %v919_v49, %v939_v54  ;;  %v993_v28 = vsel %vm980_vm4, %v968_v19, 0.0  ;;  %v976_v20 = vmul.f32 %v2354_v14, %v2416_v18 }
 0x1be   :  { %985 = vadd.xlane.f32.xlu0 %v984_v9  ;;  %v2431_v29 = vmax.f32 %v922_v56, %v940_v21  ;;  %v996_v0 = vsel %vm980_vm4, %v969_v23, 0.0  ;;  %v977_v32 = vmul.f32 %v2354_v14, %v2421_v58 }
 0x1bf   :  { %1009 = vadd.xlane.f32.xlu1 %v1008_v8  ;;  %v1017_v33 = vsel %vm980_vm4, %v976_v20, 0.0  ;;  %v978_v24 = vmul.f32 %v2354_v14, %v2426_v27 }
 0x1c0   :  { %v1020_v34 = vsel %vm980_vm4, %v977_v32, 0.0  ;;  %v979_v35 = vmul.f32 %v2354_v14, %v2431_v29 }
 0x1c1   :  { %v1023_v36 = vsel %vm980_vm4, %v978_v24, 0.0 }
 0x1c2   :  { %1000 = vadd.xlane.f32.xlu0 %v999_v12  ;;  %v1026_v37 = vsel %vm980_vm4, %v979_v35, 0.0 }
 0x1c3   :  { %1003 = vadd.xlane.f32.xlu1 %v1002_v22 }
 0x1c6   :  { %994 = vadd.xlane.f32.xlu0 %v993_v28 }
 0x1c7   :  { %997 = vadd.xlane.f32.xlu1 %v996_v0 }
 0x1ca   :  { %1018 = vadd.xlane.f32.xlu0 %v1017_v33 }
 0x1cb   :  { %1021 = vadd.xlane.f32.xlu1 %v1020_v34 }
 0x1ce   :  { %1024 = vadd.xlane.f32.xlu0 %v1023_v36 }
 0x1cf   :  { %1027 = vadd.xlane.f32.xlu1 %v1026_v37 }
 0x23f   :  { %v989_v38 = vpop.xlane.xlu0 %988 }
 0x240   :  { %v2444_v39 = vmul.f32 0.125, %v989_v38  ;;  %v983_v41 = vpop.xlane.xlu1 %982 }
 0x241   :  { %v2446_v42 = vmul.f32 0.125, %v983_v41 }
 0x242   :  { %v1047_v43 = vsub.f32 %v2356_v15, %v2444_v39 }
 0x243   :  { %v1013_v26 = vpop.xlane.xlu0 %1012  ;;  %v1045_v47 = vsub.f32 %v2358_v17, %v2446_v42 }
 0x244   :  { %v2452_v49 = vmul.f32 0.125, %v1013_v26  ;;  %v992_v50 = vpop.xlane.xlu1 %991  ;;  %v1063_v48 = vmul.f32 %v2354_v14, %v1047_v43 }
 0x245   :  { %v2455_v52 = vmul.f32 0.125, %v992_v50  ;;  %v1061_v63 = vmul.f32 %v2354_v14, %v1045_v47 }
 0x246   :  { %v1055_v53 = vsub.f32 %v2368_v31, %v2452_v49  ;;  %v1079_v55 = vmul.f32 %v1063_v48, %v1063_v48 }
 0x247   :  { %v1048_v30 = vsub.f32 %v2363_v25, %v2455_v52  ;;  %v1007_v56 = vpop.xlane.xlu0 %1006  ;;  %v1077_v16 = vmul.f32 %v1061_v63, %v1061_v63 }
 0x248   :  { %v2461_v57 = vmul.f32 0.125, %v1007_v56  ;;  %v1016_v59 = vpop.xlane.xlu1 %1015  ;;  %v1099_v60 = vsel %vm980_vm4, %v1079_v55, 0.0  ;;  %v1071_v61 = vmul.f32 %v2354_v14, %v1055_v53 }
 0x249   :  { %v2466_v40 = vmul.f32 0.125, %v1016_v59  ;;  %1100 = vadd.xlane.f32.xlu0 %v1099_v60  ;;  %v1064_v1 = vmul.f32 %v2354_v14, %v1048_v30  ;;  %v1093_v33 = vsel %vm980_vm4, %v1077_v16, 0.0 }
 0x24a   :  { %v1053_v3 = vsub.f32 %v2374_v4, %v2461_v57  ;;  %v1087_v5 = vmul.f32 %v1071_v61, %v1071_v61 }
 0x24b   :  { %v1056_v45 = vsub.f32 %v2379_v44, %v2466_v40  ;;  %v986_v7 = vpop.xlane.xlu0 %985  ;;  %v1080_v9 = vmul.f32 %v1064_v1, %v1064_v1 }
 0x24c   :  { %v2473_v10 = vmul.f32 0.125, %v986_v7  ;;  %v1010_v13 = vpop.xlane.xlu1 %1009  ;;  %v1123_v8 = vsel %vm980_vm4, %v1087_v5, 0.0  ;;  %v1069_v54 = vmul.f32 %v2354_v14, %v1053_v3 }
 0x24d   :  { %v2477_v12 = vmul.f32 0.125, %v1010_v13  ;;  %1124 = vadd.xlane.f32.xlu0 %v1123_v8  ;;  %v1102_v19 = vsel %vm980_vm4, %v1080_v9, 0.0  ;;  %v1072_v21 = vmul.f32 %v2354_v14, %v1056_v45 }
 0x24e   :  { %v1046_v22 = vsub.f32 %v2384_v46, %v2473_v10  ;;  %1103 = vadd.xlane.f32.xlu1 %v1102_v19  ;;  %v1085_v24 = vmul.f32 %v1069_v54, %v1069_v54 }
 0x24f   :  { %v1054_v23 = vsub.f32 %v2387_v51, %v2477_v12  ;;  %v1001_v28 = vpop.xlane.xlu0 %1000  ;;  %v1088_v20 = vmul.f32 %v1072_v21, %v1072_v21 }
 0x250   :  { %v2485_v0 = vmul.f32 0.125, %v1001_v28  ;;  %v1004_v32 = vpop.xlane.xlu1 %1003  ;;  %v1062_v34 = vmul.f32 %v2354_v14, %v1046_v22  ;;  %v1117_v48 = vsel %vm980_vm4, %v1085_v24, 0.0 }
 0x251   :  { %v2489_v35 = vmul.f32 0.125, %v1004_v32  ;;  %1094 = vadd.xlane.f32.xlu0 %v1093_v33  ;;  %v1126_v36 = vsel %vm980_vm4, %v1088_v20, 0.0  ;;  %v1070_v37 = vmul.f32 %v2354_v14, %v1054_v23 }
 0x252   :  { %v1051_v38 = vsub.f32 %v2396_v62, %v2485_v0  ;;  %1127 = vadd.xlane.f32.xlu1 %v1126_v36  ;;  %v1078_v41 = vmul.f32 %v1062_v34, %v1062_v34 }
 0x253   :  { %v1052_v43 = vsub.f32 %v2401_v2, %v2489_v35  ;;  %v995_v26 = vpop.xlane.xlu0 %994  ;;  %v1086_v30 = vmul.f32 %v1070_v37, %v1070_v37 }
 0x254   :  { %v2497_v47 = vmul.f32 0.125, %v995_v26  ;;  %v998_v50 = vpop.xlane.xlu1 %997  ;;  %v1096_v53 = vsel %vm980_vm4, %v1078_v41, 0.0  ;;  %v1067_v55 = vmul.f32 %v2354_v14, %v1051_v38 }
 0x255   :  { %1118 = vadd.xlane.f32.xlu0 %v1117_v48  ;;  %v1068_v56 = vmul.f32 %v2354_v14, %v1052_v43  ;;  %v2509_v45 = vmul.f32 0.125, %v998_v50  ;;  %v1120_v7 = vsel %vm980_vm4, %v1086_v30, 0.0 }
 0x256   :  { %v1049_v59 = vsub.f32 %v2406_v6, %v2497_v47  ;;  %1097 = vadd.xlane.f32.xlu1 %v1096_v53  ;;  %v1083_v60 = vmul.f32 %v1067_v55, %v1067_v55 }
 0x257   :  { %v1019_v61 = vpop.xlane.xlu0 %1018  ;;  %v1084_v9 = vmul.f32 %v1068_v56, %v1068_v56  ;;  %v1050_v23 = vsub.f32 %v2411_v11, %v2509_v45 }
 0x258   :  { %v2505_v63 = vmul.f32 0.125, %v1019_v61  ;;  %v1022_v1 = vpop.xlane.xlu1 %1021  ;;  %v1111_v3 = vsel %vm980_vm4, %v1083_v60, 0.0  ;;  %v1065_v5 = vmul.f32 %v2354_v14, %v1049_v59 }
 0x259   :  { %1112 = vadd.xlane.f32.xlu0 %v1111_v3  ;;  %v2520_v28 = vmul.f32 0.125, %v1022_v1  ;;  %v1114_v32 = vsel %vm980_vm4, %v1084_v9, 0.0  ;;  %v1066_v43 = vmul.f32 %v2354_v14, %v1050_v23 }
 0x25a   :  { %v1057_v13 = vsub.f32 %v2416_v18, %v2505_v63  ;;  %1121 = vadd.xlane.f32.xlu1 %v1120_v7  ;;  %v1081_v8 = vmul.f32 %v1065_v5, %v1065_v5 }
 0x25b   :  { %v1025_v16 = vpop.xlane.xlu0 %1024  ;;  %v1058_v38 = vsub.f32 %v2421_v58, %v2520_v28  ;;  %v1082_v55 = vmul.f32 %v1066_v43, %v1066_v43 }
 0x25c   :  { %v2514_v54 = vmul.f32 0.125, %v1025_v16  ;;  %v1028_v19 = vpop.xlane.xlu1 %1027  ;;  %v1105_v21 = vsel %vm980_vm4, %v1081_v8, 0.0  ;;  %v1073_v22 = vmul.f32 %v2354_v14, %v1057_v13 }
 0x25d   :  { %v2522_v20 = vmul.f32 0.125, %v1028_v19  ;;  %1106 = vadd.xlane.f32.xlu0 %v1105_v21  ;;  %v1074_v30 = vmul.f32 %v2354_v14, %v1058_v38  ;;  %v1108_v56 = vsel %vm980_vm4, %v1082_v55, 0.0 }
 0x25e   :  { %v1059_v33 = vsub.f32 %v2426_v27, %v2514_v54  ;;  %1115 = vadd.xlane.f32.xlu1 %v1114_v32  ;;  %v1089_v24 = vmul.f32 %v1073_v22, %v1073_v22 }
 0x25f   :  { %v1060_v34 = vsub.f32 %v2431_v29, %v2522_v20  ;;  %v1090_v59 = vmul.f32 %v1074_v30, %v1074_v30 }
 0x260   :  { %v1129_v36 = vsel %vm980_vm4, %v1089_v24, 0.0  ;;  %v1075_v37 = vmul.f32 %v2354_v14, %v1059_v33 }
 0x261   :  { %1130 = vadd.xlane.f32.xlu0 %v1129_v36  ;;  %v1076_v41 = vmul.f32 %v2354_v14, %v1060_v34  ;;  %v1132_v60 = vsel %vm980_vm4, %v1090_v59, 0.0  ;;  %v1159_v34 = vld [vmem:[%s2739_s6 + $0x10] sm:$0xff] }
 0x262   :  { %v1091_v26 = vmul.f32 %v1075_v37, %v1075_v37 }
 0x263   :  { %v1092_v50 = vmul.f32 %v1076_v41, %v1076_v41 }
 0x264   :  { %v1135_v48 = vsel %vm980_vm4, %v1091_v26, 0.0 }
 0x265   :  { %1136 = vadd.xlane.f32.xlu0 %v1135_v48  ;;  %v1138_v53 = vsel %vm980_vm4, %v1092_v50, 0.0 }
 0x266   :  { %1139 = vadd.xlane.f32.xlu1 %v1138_v53  ;;  %v1167_v53 = vld [vmem:[%s2739_s6 + $0x50] sm:$0xff] }
 0x26a   :  { %1109 = vadd.xlane.f32.xlu1 %v1108_v56 }
 0x26e   :  { %1133 = vadd.xlane.f32.xlu1 %v1132_v60 }
 0x2d6   :  { %v1101_v61 = vpop.xlane.xlu0 %1100 }
 0x2d7   :  { %v1143_v1 = vmul.f32 0.125, %v1101_v61  ;;  %v1157_v61 = vld [vmem:[%s2739_s6] sm:$0xff] }
 0x2d9   :  { %v1175_v3 = vadd.f32 0.8, %v1143_v1 }
 0x2da   :  { %v1125_v5 = vpop.xlane.xlu0 %1124 }
 0x2db   :  { %1913 = vrsqrt.f32 %v1175_v3  ;;  %v1151_v7 = vmul.f32 0.125, %v1125_v5  ;;  %v1104_v9 = vpop.xlane.xlu1 %1103 }
 0x2dc   :  { %v1144_v8 = vmul.f32 0.125, %v1104_v9  ;;  %v1160_v9 = vld [vmem:[%s2739_s6 + $0x18] sm:$0xff] }
 0x2dd   :  { %v1183_v13 = vadd.f32 0.8, %v1151_v7  ;;  %v1165_v7 = vld [vmem:[%s2739_s6 + $0x40] sm:$0xff] }
 0x2de   :  { %v1095_v16 = vpop.xlane.xlu0 %1094  ;;  %v1176_v22 = vadd.f32 0.8, %v1144_v8 }
 0x2df   :  { %1915 = vrsqrt.f32 %v1183_v13  ;;  %v1141_v14 = vmul.f32 0.125, %v1095_v16  ;;  %v1128_v19 = vpop.xlane.xlu1 %1127 }
 0x2e0   :  { %v1152_v21 = vmul.f32 0.125, %v1128_v19 }
 0x2e1   :  { %v1173_v23 = vadd.f32 0.8, %v1141_v14 }
 0x2e2   :  { %v1119_v32 = vpop.xlane.xlu0 %1118  ;;  %v1184_v36 = vadd.f32 0.8, %v1152_v21 }
 0x2e3   :  { %1917 = vrsqrt.f32 %v1173_v23  ;;  %v1149_v33 = vmul.f32 0.125, %v1119_v32  ;;  %v1098_v24 = vpop.xlane.xlu1 %1097  ;;  %v1168_v23 = vld [vmem:[%s2739_s6 + $0x58] sm:$0xff]  ;;  %v1158_v32 = vld [vmem:[%s2739_s6 + $0x8] sm:$0xff] }
 0x2e4   :  { %v1142_v37 = vmul.f32 0.125, %v1098_v24  ;;  %1919 = vrsqrt.f32 %v1176_v22 }
 0x2e5   :  { %v1914_v38 = vpop.eup %1913  ;;  %v1181_v41 = vadd.f32 0.8, %v1149_v33 }
 0x2e6   :  { %v1174_v43 = vadd.f32 0.8, %v1142_v37  ;;  %v1113_v26 = vpop.xlane.xlu0 %1112  ;;  %v1207_v50 = vmul.f32 %v1914_v38, %v1159_v34 }
 0x2e7   :  { %1921 = vrsqrt.f32 %v1181_v41  ;;  %v1122_v48 = vpop.xlane.xlu1 %1121  ;;  %v1147_v33 = vmul.f32 0.125, %v1113_v26 }
 0x2e8   :  { %1923 = vrsqrt.f32 %v1184_v36  ;;  %v1150_v55 = vmul.f32 0.125, %v1122_v48  ;;  %1281 = vperm.xlu1 %1840, %v1207_v50   ;;  %v1239_v38 = vmul.f32 %v1207_v50, %v2444_v39  ;;  %v1166_v48 = vld [vmem:[%s2739_s6 + $0x48] sm:$0xff]  ;;  %v1231_v50 = vld [vmem:[%s2740_s7 + $0x50] sm:$0xff] }
 0x2e9   :  { %v1916_v30 = vpop.eup %1915  ;;  %1925 = vrsqrt.f32 %v1174_v43  ;;  %v1223_v43 = vld [vmem:[%s2740_s7 + $0x10] sm:$0xff] }
 0x2ea   :  { %v1182_v56 = vadd.f32 0.8, %v1150_v55  ;;  %v1107_v59 = vpop.xlane.xlu0 %1106  ;;  %v1215_v60 = vmul.f32 %v1916_v30, %v1167_v53  ;;  %v1179_v55 = vadd.f32 0.8, %v1147_v33  ;;  %v1255_v30 = vsub.f32 %v1223_v43, %v1239_v38 }
 0x2eb   :  { %v1116_v14 = vpop.xlane.xlu1 %1115 }
 0x2ec   :  { %1321 = vperm.xlu1 %1840, %v1215_v60   ;;  %1927 = vrsqrt.f32 %v1182_v56  ;;  %v1148_v53 = vmul.f32 0.125, %v1116_v14 }
 0x2ed   :  { %v1918_v1 = vpop.eup %1917  ;;  %1929 = vrsqrt.f32 %v1179_v55 }
 0x2ee   :  { %v1205_v3 = vmul.f32 %v1918_v1, %v1157_v61  ;;  %v1920_v5 = vpop.eup %1919  ;;  %v1131_v13 = vpop.xlane.xlu0 %1130  ;;  %v1247_v61 = vmul.f32 %v1215_v60, %v2452_v49  ;;  %v1224_v1 = vld [vmem:[%s2740_s7 + $0x18] sm:$0xff] }
 0x2ef   :  { %v1208_v21 = vmul.f32 %v1920_v5, %v1160_v9  ;;  %v1145_v5 = vmul.f32 0.125, %v1107_v59  ;;  %v1232_v59 = vld [vmem:[%s2740_s7 + $0x58] sm:$0xff] }
 0x2f0   :  { %1271 = vperm.xlu0 %1839, %v1205_v3   ;;  %v1263_v14 = vsub.f32 %v1231_v50, %v1247_v61 }
 0x2f1   :  { %v1922_v8 = vpop.eup %1921  ;;  %v1240_v39 = vmul.f32 %v1208_v21, %v2455_v52  ;;  %v1237_v52 = vmul.f32 %v1205_v3, %v2446_v42 }
 0x2f2   :  { %v1924_v16 = vpop.eup %1923  ;;  %v1213_v19 = vmul.f32 %v1922_v8, %v1165_v7  ;;  %v1137_v24 = vpop.xlane.xlu0 %1136  ;;  %v1180_v7 = vadd.f32 0.8, %v1148_v53 }
 0x2f3   :  { %v1926_v22 = vpop.eup %1925  ;;  %v1140_v34 = vpop.xlane.xlu1 %1139  ;;  %v1216_v36 = vmul.f32 %v1924_v16, %v1168_v23  ;;  %v1155_v26 = vmul.f32 0.125, %v1137_v24  ;;  %v1256_v49 = vsub.f32 %v1224_v1, %v1240_v39  ;;  %v1153_v23 = vmul.f32 0.125, %v1131_v13  ;;  %v1222_v13 = vld [vmem:[%s2740_s7 + $0x8] sm:$0xff] }
 0x2f4   :  { %1311 = vperm.xlu1 %1840, %v1213_v19   ;;  %1286 = vperm.xlu0 %1839, %v1208_v21   ;;  %v1206_v37 = vmul.f32 %v1926_v22, %v1158_v32  ;;  %v1156_v16 = vmul.f32 0.125, %v1140_v34  ;;  %v1221_v21 = vld [vmem:[%s2740_s7] sm:$0xff]  ;;  %v1177_v22 = vadd.f32 0.8, %v1145_v5  ;;  %1931 = vrsqrt.f32 %v1180_v7 }
 0x2f5   :  { %v1187_v8 = vadd.f32 0.8, %v1155_v26  ;;  %v1248_v60 = vmul.f32 %v1216_v36, %v2466_v40  ;;  %v1253_v42 = vsub.f32 %v1221_v21, %v1237_v52  ;;  %v1245_v40 = vmul.f32 %v1213_v19, %v2461_v57  ;;  %v1163_v19 = vld [vmem:[%s2739_s6 + $0x30] sm:$0xff]  ;;  %v1162_v21 = vld [vmem:[%s2739_s6 + $0x28] sm:$0xff] }
 0x2f6   :  { %v1928_v41 = vpop.eup %1927  ;;  %v1188_v32 = vadd.f32 0.8, %v1156_v16  ;;  %v1238_v34 = vmul.f32 %v1206_v37, %v2473_v10  ;;  %v1185_v38 = vadd.f32 0.8, %v1153_v23 }
 0x2f7   :  { %v1214_v56 = vmul.f32 %v1928_v41, %v1166_v48  ;;  %v1110_v9 = vpop.xlane.xlu1 %1109  ;;  %1933 = vrsqrt.f32 %v1187_v8  ;;  %v1264_v3 = vsub.f32 %v1232_v59, %v1248_v60  ;;  %v1930_v10 = vpop.eup %1929  ;;  %v1172_v8 = vld [vmem:[%s2739_s6 + $0x78] sm:$0xff]  ;;  %v1169_v60 = vld [vmem:[%s2739_s6 + $0x60] sm:$0xff] }
 0x2f8   :  { %1326 = vperm.xlu0 %1839, %v1216_v36   ;;  %1276 = vperm.xlu1 %1840, %v1206_v37   ;;  %v1146_v33 = vmul.f32 0.125, %v1110_v9  ;;  %v1229_v36 = vld [vmem:[%s2740_s7 + $0x40] sm:$0xff]  ;;  %1935 = vrsqrt.f32 %v1177_v22  ;;  %v1254_v53 = vsub.f32 %v1222_v13, %v1238_v34  ;;  %v1230_v37 = vld [vmem:[%s2740_s7 + $0x48] sm:$0xff] }
 0x2f9   :  { %1937 = vrsqrt.f32 %v1188_v32  ;;  %v1261_v48 = vsub.f32 %v1229_v36, %v1245_v40  ;;  %v1246_v57 = vmul.f32 %v1214_v56, %v2477_v12  ;;  %v1171_v12 = vld [vmem:[%s2739_s6 + $0x70] sm:$0xff]  ;;  %v1161_v9 = vld [vmem:[%s2739_s6 + $0x20] sm:$0xff]  ;;  %v1228_v36 = vld [vmem:[%s2740_s7 + $0x38] sm:$0xff] }
 0x2fa   :  { %v1178_v41 = vadd.f32 0.8, %v1146_v33  ;;  %1939 = vrsqrt.f32 %v1185_v38  ;;  %v1227_v33 = vld [vmem:[%s2740_s7 + $0x30] sm:$0xff] }
 0x2fb   :  { %v1134_v24 = vpop.xlane.xlu1 %1133  ;;  %v1262_v61 = vsub.f32 %v1230_v37, %v1246_v57 }
 0x2fc   :  { %1377 = vperm.xlu1 %1840, %v1255_v30   ;;  %1316 = vperm.xlu0 %1839, %v1214_v56   ;;  %v1154_v43 = vmul.f32 0.125, %v1134_v24  ;;  %1941 = vrsqrt.f32 %v1178_v41  ;;  %v1211_v30 = vmul.f32 %v1930_v10, %v1163_v19  ;;  %v1164_v56 = vld [vmem:[%s2739_s6 + $0x38] sm:$0xff]  ;;  %v1170_v24 = vld [vmem:[%s2739_s6 + $0x68] sm:$0xff] }
 0x2fe   :  { %v1186_v55 = vadd.f32 0.8, %v1154_v43  ;;  %v1932_v26 = vpop.eup %1931  ;;  %v1243_v23 = vmul.f32 %v1211_v30, %v2485_v0  ;;  %v1225_v0 = vld [vmem:[%s2740_s7 + $0x20] sm:$0xff] }
 0x2ff   :  { %v1212_v5 = vmul.f32 %v1932_v26, %v1164_v56 }
 0x300   :  { %1417 = vperm.xlu1 %1840, %v1263_v14   ;;  %1382 = vperm.xlu0 %1839, %v1256_v49   ;;  %1943 = vrsqrt.f32 %v1186_v55 }
 0x301   :  { %v1934_v39 = vpop.eup %1933  ;;  %v1244_v34 = vmul.f32 %v1212_v5, %v2489_v35  ;;  %v1233_v35 = vld [vmem:[%s2740_s7 + $0x60] sm:$0xff] }
 0x302   :  { %v1936_v50 = vpop.eup %1935  ;;  %v1219_v1 = vmul.f32 %v1934_v39, %v1171_v12 }
 0x303   :  { %v1938_v7 = vpop.eup %1937  ;;  %v1209_v14 = vmul.f32 %v1936_v50, %v1161_v9  ;;  %v1260_v38 = vsub.f32 %v1228_v36, %v1244_v34 }
 0x304   :  { %1367 = vperm.xlu1 %1840, %v1253_v42   ;;  %1422 = vperm.xlu0 %1839, %v1264_v3   ;;  %v1940_v16 = vpop.eup %1939  ;;  %v1220_v49 = vmul.f32 %v1938_v7, %v1172_v8  ;;  %v1259_v42 = vsub.f32 %v1227_v33, %v1243_v23 }
 0x305   :  { %v1217_v59 = vmul.f32 %v1940_v16, %v1169_v60  ;;  %v1241_v40 = vmul.f32 %v1209_v14, %v2497_v47  ;;  %v1226_v47 = vld [vmem:[%s2740_s7 + $0x28] sm:$0xff] }
 0x306   :  { %v1942_v52 = vpop.eup %1941  ;;  %v1252_v19 = vmul.f32 %v1220_v49, %v2522_v20 }
 0x307   :  { %v1210_v22 = vmul.f32 %v1942_v52, %v1162_v21  ;;  %v1257_v13 = vsub.f32 %v1225_v0, %v1241_v40  ;;  %v1249_v41 = vmul.f32 %v1217_v59, %v2505_v63  ;;  %v1235_v63 = vld [vmem:[%s2740_s7 + $0x70] sm:$0xff] }
 0x308   :  { %1407 = vperm.xlu1 %1840, %v1261_v48   ;;  %1372 = vperm.xlu0 %1839, %v1254_v53   ;;  %v1251_v48 = vmul.f32 %v1219_v1, %v2514_v54  ;;  %v1236_v54 = vld [vmem:[%s2740_s7 + $0x78] sm:$0xff] }
 0x309   :  { %v1242_v43 = vmul.f32 %v1210_v22, %v2509_v45  ;;  %v1265_v53 = vsub.f32 %v1233_v35, %v1249_v41  ;;  %v1234_v45 = vld [vmem:[%s2740_s7 + $0x68] sm:$0xff] }
 0x30a   :  { %v1944_v32 = vpop.eup %1943  ;;  %v1267_v37 = vsub.f32 %v1235_v63, %v1251_v48 }
 0x30b   :  { %v1218_v3 = vmul.f32 %v1944_v32, %v1170_v24  ;;  %v1258_v57 = vsub.f32 %v1226_v47, %v1242_v43 }
 0x30c   :  { %1301 = vperm.xlu1 %1840, %v1211_v30   ;;  %1412 = vperm.xlu0 %1839, %v1262_v61  }
 0x30d   :  { %v1250_v10 = vmul.f32 %v1218_v3, %v2520_v28  ;;  %v1268_v28 = vsub.f32 %v1236_v54, %v1252_v19 }
 0x30f   :  { %v1266_v55 = vsub.f32 %v1234_v45, %v1250_v10 }
 0x310   :  { %1341 = vperm.xlu1 %1840, %v1219_v1   ;;  %1306 = vperm.xlu0 %1839, %v1212_v5  }
 0x314   :  { %1291 = vperm.xlu1 %1840, %v1209_v14   ;;  %1346 = vperm.xlu0 %1839, %v1220_v49  }
 0x318   :  { %1331 = vperm.xlu1 %1840, %v1217_v59   ;;  %1296 = vperm.xlu0 %1839, %v1210_v22  }
 0x31c   :  { %1397 = vperm.xlu1 %1840, %v1259_v42   ;;  %1336 = vperm.xlu0 %1839, %v1218_v3  }
 0x320   :  { %1387 = vperm.xlu1 %1840, %v1257_v13   ;;  %1402 = vperm.xlu0 %1839, %v1260_v38  }
 0x324   :  { %1427 = vperm.xlu1 %1840, %v1265_v53   ;;  %1392 = vperm.xlu0 %1839, %v1258_v57  }
 0x328   :  { %1437 = vperm.xlu1 %1840, %v1267_v37   ;;  %1432 = vperm.xlu0 %1839, %v1266_v55  }
 0x32c   :  { %1442 = vperm.xlu0 %1839, %v1268_v28  }
 0x367   :  { %v1282_v26 = vpop.permute.xlu1 %1281 }
 0x368   :  { %v1351_v1 = vmul.f32 %v1282_v26, %v2356_v15 }
 0x36b   :  { %v1322_v30 = vpop.permute.xlu1 %1321 }
 0x36c   :  { %v1359_v9 = vmul.f32 %v1322_v30, %v2368_v31 }
 0x36f   :  { %v1272_v61 = vpop.permute.xlu0 %1271 }
 0x370   :  { %v1349_v15 = vmul.f32 %v1272_v61, %v2358_v17 }
 0x373   :  { %v1287_v39 = vpop.permute.xlu0 %1286  ;;  %v1312_v12 = vpop.permute.xlu1 %1311 }
 0x374   :  { %v1352_v8 = vmul.f32 %v1287_v39, %v2363_v25  ;;  %v1357_v17 = vmul.f32 %v1312_v12, %v2374_v4 }
 0x377   :  { %v1327_v56 = vpop.permute.xlu0 %1326  ;;  %v1277_v50 = vpop.permute.xlu1 %1276 }
 0x378   :  { %v1360_v21 = vmul.f32 %v1327_v56, %v2379_v44  ;;  %v1350_v44 = vmul.f32 %v1277_v50, %v2384_v46 }
 0x37b   :  { %v1317_v20 = vpop.permute.xlu0 %1316  ;;  %v1378_v5 = vpop.permute.xlu1 %1377 }
 0x37c   :  { %v1447_v7 = vadd.f32 %v1378_v5, %v1351_v1  ;;  %v1358_v4 = vmul.f32 %v1317_v20, %v2387_v51 }
 0x37e   :  { %v1629_v16 = vpack.c.bf16 %v1447_v7, %v1447_v7 }
 0x37f   :  { %v1383_v14 = vpop.permute.xlu0 %1382  ;;  %v1418_v49 = vpop.permute.xlu1 %1417 }
 0x380   :  { %1528 = vst.msk [vmem:[%s2741_s9 + $0x8] sm:$0xf] %vm1525_vm5, %v1629_v16  ;;  %v1448_v52 = vadd.f32 %v1383_v14, %v1352_v8  ;;  %v1455_v60 = vadd.f32 %v1418_v49, %v1359_v9 }
 0x382   :  { %v1630_v59 = vpack.c.bf16 %v1448_v52, %v1448_v52  ;;  %v1637_v22 = vpack.c.bf16 %v1455_v60, %v1455_v60 }
 0x383   :  { %v1423_v23 = vpop.permute.xlu0 %1422  ;;  %v1368_v31 = vpop.permute.xlu1 %1367 }
 0x384   :  { %1529 = vst.msk [vmem:[%s2741_s9 + $0xc] sm:$0xf] %vm1525_vm5, %v1630_v59  ;;  %1536 = vst.msk [vmem:[%s2741_s9 + $0x28] sm:$0xf] %vm1525_vm5, %v1637_v22  ;;  %v1456_v25 = vadd.f32 %v1423_v23, %v1360_v21  ;;  %v1445_v32 = vadd.f32 %v1368_v31, %v1349_v15 }
 0x386   :  { %v1638_v33 = vpack.c.bf16 %v1456_v25, %v1456_v25  ;;  %v1627_v24 = vpack.c.bf16 %v1445_v32, %v1445_v32 }
 0x387   :  { %v1373_v42 = vpop.permute.xlu0 %1372  ;;  %v1408_v3 = vpop.permute.xlu1 %1407 }
 0x388   :  { %1537 = vst.msk [vmem:[%s2741_s9 + $0x2c] sm:$0xf] %vm1525_vm5, %v1638_v33  ;;  %1526 = vst.msk [vmem:[%s2741_s9] sm:$0xf] %vm1525_vm5, %v1627_v24  ;;  %v1446_v40 = vadd.f32 %v1373_v42, %v1350_v44  ;;  %v1453_v34 = vadd.f32 %v1408_v3, %v1357_v17 }
 0x38a   :  { %v1628_v0 = vpack.c.bf16 %v1446_v40, %v1446_v40  ;;  %v1635_v46 = vpack.c.bf16 %v1453_v34, %v1453_v34 }
 0x38b   :  { %v1413_v36 = vpop.permute.xlu0 %1412  ;;  %v1302_v13 = vpop.permute.xlu1 %1301 }
 0x38c   :  { %1527 = vst.msk [vmem:[%s2741_s9 + $0x4] sm:$0xf] %vm1525_vm5, %v1628_v0  ;;  %1534 = vst.msk [vmem:[%s2741_s9 + $0x20] sm:$0xf] %vm1525_vm5, %v1635_v46  ;;  %v1454_v38 = vadd.f32 %v1413_v36, %v1358_v4  ;;  %v1355_v57 = vmul.f32 %v1302_v13, %v2396_v62 }
 0x38e   :  { %v1636_v41 = vpack.c.bf16 %v1454_v38, %v1454_v38 }
 0x38f   :  { %v1307_v43 = vpop.permute.xlu0 %1306  ;;  %v1342_v35 = vpop.permute.xlu1 %1341 }
 0x390   :  { %1535 = vst.msk [vmem:[%s2741_s9 + $0x24] sm:$0xf] %vm1525_vm5, %v1636_v41  ;;  %v1356_v19 = vmul.f32 %v1307_v43, %v2401_v2 }
 0x393   :  { %v1347_v51 = vpop.permute.xlu0 %1346  ;;  %v1292_v47 = vpop.permute.xlu1 %1291 }
 0x394   :  { %v1353_v37 = vmul.f32 %v1292_v47, %v2406_v6 }
 0x397   :  { %v1297_v48 = vpop.permute.xlu0 %1296  ;;  %v1332_v53 = vpop.permute.xlu1 %1331 }
 0x398   :  { %v1354_v61 = vmul.f32 %v1297_v48, %v2411_v11  ;;  %v1361_v62 = vmul.f32 %v1332_v53, %v2416_v18  ;;  %v1363_v11 = vmul.f32 %v1342_v35, %v2426_v27  ;;  %v1364_v27 = vmul.f32 %v1347_v51, %v2431_v29 }
 0x39b   :  { %v1337_v10 = vpop.permute.xlu0 %1336  ;;  %v1398_v63 = vpop.permute.xlu1 %1397 }
 0x39c   :  { %v1451_v45 = vadd.f32 %v1398_v63, %v1355_v57  ;;  %v1362_v18 = vmul.f32 %v1337_v10, %v2421_v58 }
 0x39e   :  { %v1633_v55 = vpack.c.bf16 %v1451_v45, %v1451_v45 }
 0x39f   :  { %v1403_v54 = vpop.permute.xlu0 %1402  ;;  %v1388_v28 = vpop.permute.xlu1 %1387 }
 0x3a0   :  { %1532 = vst.msk [vmem:[%s2741_s9 + $0x18] sm:$0xf] %vm1525_vm5, %v1633_v55  ;;  %v1452_v26 = vadd.f32 %v1403_v54, %v1356_v19  ;;  %v1449_v30 = vadd.f32 %v1388_v28, %v1353_v37 }
 0x3a2   :  { %v1634_v39 = vpack.c.bf16 %v1452_v26, %v1452_v26  ;;  %v1631_v12 = vpack.c.bf16 %v1449_v30, %v1449_v30 }
 0x3a3   :  { %v1393_v56 = vpop.permute.xlu0 %1392  ;;  %v1428_v2 = vpop.permute.xlu1 %1427 }
 0x3a4   :  { %1533 = vst.msk [vmem:[%s2741_s9 + $0x1c] sm:$0xf] %vm1525_vm5, %v1634_v39  ;;  %1530 = vst.msk [vmem:[%s2741_s9 + $0x10] sm:$0xf] %vm1525_vm5, %v1631_v12  ;;  %v1450_v6 = vadd.f32 %v1393_v56, %v1354_v61  ;;  %v1457_v50 = vadd.f32 %v1428_v2, %v1361_v62 }
 0x3a6   :  { %v1632_v1 = vpack.c.bf16 %v1450_v6, %v1450_v6  ;;  %v1639_v20 = vpack.c.bf16 %v1457_v50, %v1457_v50 }
 0x3a7   :  { %v1433_v5 = vpop.permute.xlu0 %1432  ;;  %v1438_v7 = vpop.permute.xlu1 %1437 }
 0x3a8   :  { %1531 = vst.msk [vmem:[%s2741_s9 + $0x14] sm:$0xf] %vm1525_vm5, %v1632_v1  ;;  %1538 = vst.msk [vmem:[%s2741_s9 + $0x30] sm:$0xf] %vm1525_vm5, %v1639_v20  ;;  %v1458_v9 = vadd.f32 %v1433_v5, %v1362_v18  ;;  %v1459_v8 = vadd.f32 %v1438_v7, %v1363_v11 }
 0x3aa   :  { %v1640_v16 = vpack.c.bf16 %v1458_v9, %v1458_v9  ;;  %v1641_v58 = vpack.c.bf16 %v1459_v8, %v1459_v8 }
 0x3ab   :  { %v1443_v14 = vpop.permute.xlu0 %1442 }
 0x3ac   :  { %1539 = vst.msk [vmem:[%s2741_s9 + $0x34] sm:$0xf] %vm1525_vm5, %v1640_v16  ;;  %1540 = vst.msk [vmem:[%s2741_s9 + $0x38] sm:$0xf] %vm1525_vm5, %v1641_v58  ;;  %v1460_v49 = vadd.f32 %v1443_v14, %v1364_v27 }
 0x3ae   :  { %v1642_v52 = vpack.c.bf16 %v1460_v49, %v1460_v49 }
 0x3b0   :  { %1541 = vst.msk [vmem:[%s2741_s9 + $0x3c] sm:$0xf] %vm1525_vm5, %v1642_v52 }

// kernel: discriminator_forward.9
= control target key start
LH: loop header
LB: loop body
LE: loop exit
PB: predicated region body
PF: predicated region fallthrough
CT: control target
= control target key end

     0   :  { %v540_v22 = vmov 1966171168   ;;  %v99_v24 = vlaneseq  ;;  %vm394_vm0 = vcmask 82952   ;;  %vm405_vm1 = vcmask 74752   ;;  %s667_s1 = inlined_call_operand.vmem [shape: bf16[512,128], index: 1, kind: input, shape index: {}]   ;;  %s668_s0 = inlined_call_operand.vmem [shape: bf16[2,512], index: 0, kind: input, shape index: {}]   ;;  %s669_s2 = inlined_call_operand.vmem [shape: f32[1,128], index: 2, kind: input, shape index: {}]   ;;  %s670_s3 = inlined_call_operand.vmem [shape: f32[2,128], index: 3, kind: output, shape index: {}]  }
   0x1   :  { %v500_v0 = vld [vmem:[%s667_s1 + $0x40] sm:$0xff]   ;;  %v504_v4 = vld [vmem:[%s667_s1 + $0x48] sm:$0xff]   ;;  %v508_v8 = vld [vmem:[%s667_s1 + $0x50] sm:$0xff]   ;;  %v97_v23 = vunpack.c.l.s4 %v540_v22  ;;  %vm411_vm2 = vcmask 7168   ;;  %vm413_vm3 = vcmask 89088  }
   0x2   :  { %v501_v1 = vld [vmem:[%s667_s1 + $0xc0] sm:$0xff]   ;;  %454 = vmatprep.subr.bf16.mxu0 %v500_v0  ;;  %v505_v5 = vld [vmem:[%s667_s1 + $0xc8] sm:$0xff]   ;;  %v509_v9 = vld [vmem:[%s667_s1 + $0xd0] sm:$0xff]   ;;  %v100_v30 = vshrl.u32 %v99_v24, 7 }
   0x3   :  { %v502_v2 = vld [vmem:[%s667_s1] sm:$0xff]   ;;  %476 = vmatprep.subr.bf16.mxu1 %v501_v1  ;;  %v506_v6 = vld [vmem:[%s667_s1 + $0x8] sm:$0xff]   ;;  %v510_v10 = vld [vmem:[%s667_s1 + $0x10] sm:$0xff]   ;;  %v98_v29 = vunpack.c.0.s8 %v97_v23 }
   0x4   :  { %v503_v3 = vld [vmem:[%s667_s1 + $0x80] sm:$0xff]   ;;  %455 = vmatpush3.bf16.msra.mxu0 %v502_v2  ;;  %v507_v7 = vld [vmem:[%s667_s1 + $0x88] sm:$0xff]   ;;  %v511_v11 = vld [vmem:[%s667_s1 + $0x90] sm:$0xff]  }
   0x5   :  { %477 = vmatpush3.bf16.msra.mxu1 %v503_v3  ;;  %456 = vmatprep.subr.bf16.mxu0 %v504_v4  ;;  %v512_v12 = vld [vmem:[%s667_s1 + $0x58] sm:$0xff]   ;;  %v516_v16 = vld [vmem:[%s667_s1 + $0x60] sm:$0xff]   ;;  %v520_v20 = vld [vmem:[%s667_s1 + $0x68] sm:$0xff]   ;;  %v101_v35 = vsub.s32 %v98_v29, %v100_v30 }
   0x6   :  { %478 = vmatprep.subr.bf16.mxu1 %v505_v5  ;;  %v513_v13 = vld [vmem:[%s667_s1 + $0xd8] sm:$0xff]   ;;  %v517_v17 = vld [vmem:[%s667_s1 + $0xe0] sm:$0xff]   ;;  %v521_v21 = vld [vmem:[%s667_s1 + $0xe8] sm:$0xff]  }
   0x7   :  { %v514_v14 = vld [vmem:[%s667_s1 + $0x18] sm:$0xff]   ;;  %v518_v18 = vld [vmem:[%s667_s1 + $0x20] sm:$0xff]   ;;  %v522_v25 = vld [vmem:[%s667_s1 + $0x28] sm:$0xff]  }
   0x8   :  { %457 = vmatpush3.bf16.msra.mxu0 %v506_v6  ;;  %v515_v15 = vld [vmem:[%s667_s1 + $0x98] sm:$0xff]   ;;  %v519_v19 = vld [vmem:[%s667_s1 + $0xa0] sm:$0xff]   ;;  %v523_v26 = vld [vmem:[%s667_s1 + $0xa8] sm:$0xff]  }
   0x9   :  { %479 = vmatpush3.bf16.msra.mxu1 %v507_v7  ;;  %458 = vmatprep.subr.bf16.mxu0 %v508_v8  ;;  %v524_v27 = vld [vmem:[%s667_s1 + $0x70] sm:$0xff]   ;;  %v528_v33 = vld [vmem:[%s667_s1 + $0x78] sm:$0xff]   ;;  %v421_v38 = vld.sshfl [vmem:[%s668_s0] sm:$0x33 pattern:$0x75316420] }
   0xa   :  { %480 = vmatprep.subr.bf16.mxu1 %v509_v9  ;;  %v525_v28 = vld [vmem:[%s667_s1 + $0xf0] sm:$0xff]   ;;  %v529_v34 = vld [vmem:[%s667_s1 + $0xf8] sm:$0xff]   ;;  %v95_v39 = vcombine.high %v421_v38, %v421_v38  ;;  %v102_v40 = vrot.slane %v421_v38, %v101_v35  ;;  %v420_v45 = vld [vmem:[%s669_s2] ss:$0 sm:$0xff]  ;;  %s541_s0 = smov 127  }
   0xb   :  { %v526_v31 = vld [vmem:[%s667_s1 + $0x30] sm:$0xff]   ;;  %v530_v36 = vld [vmem:[%s667_s1 + $0x38] sm:$0xff]  }
   0xc   :  { %459 = vmatpush3.bf16.msra.mxu0 %v510_v10  ;;  %v527_v32 = vld [vmem:[%s667_s1 + $0xb0] sm:$0xff]   ;;  %v531_v37 = vld [vmem:[%s667_s1 + $0xb8] sm:$0xff]   ;;  %v109_v41 = vrot.slane %v95_v39, %v101_v35  ;;  %v110_v42 = vcombine.high %v102_v40, %v102_v40 }
   0xd   :  { %481 = vmatpush3.bf16.msra.mxu1 %v511_v11  ;;  %460 = vmatprep.subr.bf16.mxu0 %v512_v12 }
   0xe   :  { %482 = vmatprep.subr.bf16.mxu1 %v513_v13  ;;  %340 = vmatprep.mubr.bf16.mxu0 %v109_v41  ;;  %v111_v43 = vcombine.high %v109_v41, %v109_v41 }
  0x10   :  { %461 = vmatpush3.bf16.msra.mxu0 %v514_v14  ;;  %380 = vmatprep.mubr.bf16.mxu1 %v111_v43 }
  0x11   :  { %483 = vmatpush3.bf16.msra.mxu1 %v515_v15  ;;  %462 = vmatprep.subr.bf16.mxu0 %v516_v16 }
  0x12   :  { %484 = vmatprep.subr.bf16.mxu1 %v517_v17 }
  0x14   :  { %463 = vmatpush3.bf16.msra.mxu0 %v518_v18 }
  0x15   :  { %485 = vmatpush3.bf16.msra.mxu1 %v519_v19  ;;  %464 = vmatprep.subr.bf16.mxu0 %v520_v20 }
  0x16   :  { %486 = vmatprep.subr.bf16.mxu1 %v521_v21 }
  0x18   :  { %465 = vmatpush3.bf16.msra.mxu0 %v522_v25 }
  0x19   :  { %487 = vmatpush3.bf16.msra.mxu1 %v523_v26  ;;  %466 = vmatprep.subr.bf16.mxu0 %v524_v27 }
  0x1a   :  { %488 = vmatprep.subr.bf16.mxu1 %v525_v28 }
  0x1c   :  { %467 = vmatpush3.bf16.msra.mxu0 %v526_v31 }
  0x1d   :  { %489 = vmatpush3.bf16.msra.mxu1 %v527_v32  ;;  %468 = vmatprep.subr.bf16.mxu0 %v528_v33 }
  0x1e   :  { %490 = vmatprep.subr.bf16.mxu1 %v529_v34 }
  0x20   :  { %469 = vmatpush3.bf16.msra.mxu0 %v530_v36 }
  0x21   :  { %491 = vmatpush3.bf16.msra.mxu1 %v531_v37 }
  0x23   :  { %341 = vmatmul.mubr.bf16.vlgmr.msra.gmra.mrb[0].mxu0 %v102_v40 }
  0x24   :  { %381 = vmatmul.mubr.bf16.vlgmr.msra.gmra.mrb[0].mxu1 %v110_v42 }
  0xf6   :  { %v470_v44 = vpop.f32.mrb[0].mxu0 }
  0xf7   :  { %v471_v46 = vpop.f32.mrb[1].mxu0  ;;  %v492_v47 = vpop.f32.mrb[0].mxu1 }
  0xf8   :  { %v472_v48 = vadd.f32 %v471_v46, %v470_v44  ;;  %v473_v49 = vpop.f32.mrb[2].mxu0  ;;  %v493_v50 = vpop.f32.mrb[1].mxu1 }
  0xf9   :  { %v474_v51 = vpop.f32.mrb[3].mxu0  ;;  %v494_v53 = vadd.f32 %v493_v50, %v492_v47  ;;  %v495_v54 = vpop.f32.mrb[2].mxu1 }
  0xfa   :  { %v343_v52 = vadd.f32 %v472_v48, %v420_v45  ;;  %v496_v55 = vpop.f32.mrb[3].mxu1 }
  0xfc   :  { %v383_v56 = vadd.f32 %v494_v53, %v343_v52 }
  0xfe   :  { %v395_v57 = vsel %vm394_vm0, %v383_v56, -inf  ;;  %v388_v0 = vsub.f32 0.0, %v383_v56 }
  0xff   :  { %396 = vmax.xlane.f32.xlu0 %v395_v57 }
 0x100   :  { %v389_v1 = vmul.f32 1.442695, %v388_v0 }
 0x18c   :  { %v397_v58 = vpop.xlane.xlu0 %396 }
 0x18d   :  { %v398_v59 = vsub.f32 %v383_v56, %v397_v58 }
 0x18f   :  { %v399_v60 = vmul.f32 1.442695, %v398_v59 }
 0x191   :  { %532 = vpow2.f32 %v399_v60 }
 0x192   :  { %534 = vpow2.f32 %v389_v1 }
 0x19b   :  { %v533_v61 = vpop.eup %532 }
 0x19c   :  { %402 = vrot.lane.b32.xlu0 %v533_v61, %s541_s0  ;;  %v535_v2 = vpop.eup %534 }
 0x19d   :  { %v391_v3 = vadd.f32 1.0, %v535_v2 }
 0x20e   :  { %v403_v62 = vpop.permute.xlu0 %402 }
 0x20f   :  { %v406_v63 = vsel %vm405_vm1, %v403_v62, 0.0 }
 0x210   :  { %407 = vadd.xlane.f32.xlu1 %v406_v63 }
 0x29d   :  { %v408_v4 = vpop.xlane.xlu1 %407 }
 0x29e   :  { %536 = vrcp.f32 %v408_v4 }
 0x29f   :  { %538 = vrcp.f32 %v391_v3 }
 0x2a8   :  { %v537_v5 = vpop.eup %536 }
 0x2a9   :  { %v410_v6 = vmul.f32 %v537_v5, %v533_v61  ;;  %v539_v7 = vpop.eup %538 }
 0x2ab   :  { %v412_v8 = vsel %vm411_vm2, %v539_v7, %v410_v6 }
 0x2ac   :  { %v414_v9 = vsel %vm413_vm3, %v412_v8, 0.0 }
 0x2ad   :  { %415 = vst [vmem:[%s670_s3] sm:$0x3] %v414_v9 }

</bundles_post_ra>
